<compile_context>
chip_gen: v6e
topology: v6e:2x2x1
jax: 0.10.0
libtpu: 0.0.40
codegen_flags: <defaults>
</compile_context>

<pallas_src>
import numpy as np

import jax
import jax.numpy as jnp
from jax.experimental import pallas as pl
from jax.experimental.pallas import tpu as pltpu


# ----------------------------------------------------------------------------
# Parameter preparation (runs once, plain numpy)
# ----------------------------------------------------------------------------
def _conv_band_matrices(w_conv, w_out, in_padded):
    """Banded conv weights for the (h, w*C + c) slab layout.

    Returns m of shape (K, Win*Cin, w_out*Cout) so that
      out[h, w*Cout + co] = sum_kh  A[h + kh, :] @ m[kh]
    where A is the row-padded input slab with lanes win*Cin + ci.  If
    in_padded, the input width is already zero-padded; otherwise OOB taps are
    dropped (== zero padding)."""
    w_conv = np.asarray(w_conv, np.float32)
    Cout, Cin, K, _ = w_conv.shape
    pad = (K - 1) // 2
    Win = w_out + 2 * pad if in_padded else w_out
    G = np.zeros((K, Cin, Cout, Win * Cin, w_out * Cout), np.float32)
    for kw in range(K):
        for ci in range(Cin):
            for co in range(Cout):
                for w in range(w_out):
                    win = (w + kw) if in_padded else (w + kw - pad)
                    if 0 <= win < Win:
                        G[kw, ci, co, win * Cin + ci, w * Cout + co] = 1.0
    return np.einsum("oihw,wioab->hab", w_conv, G)


def _pool_selectors(h_in, w_in, ch, pad_out):
    """2x2 max-pool selection matrices for the (h, w*ch + c) slab layout.

    pooled = max(se @ x, so @ x) followed by elementwise max of the two
    column selections (@ pe, @ po).  If pad_out, the pooled slab gets a
    one-pixel zero border so it is ready for the next padded conv."""
    h_out, w_out = h_in // 2, w_in // 2
    r = 1 if pad_out else 0
    se = np.zeros((h_out + 2 * r, h_in), np.float32)
    so = np.zeros_like(se)
    for h in range(h_out):
        se[h + r, 2 * h] = 1.0
        so[h + r, 2 * h + 1] = 1.0
    pe = np.zeros((w_in * ch, (w_out + 2 * r) * ch), np.float32)
    po = np.zeros_like(pe)
    for w in range(w_out):
        for c in range(ch):
            pe[(2 * w) * ch + c, (w + r) * ch + c] = 1.0
            po[(2 * w + 1) * ch + c, (w + r) * ch + c] = 1.0
    return se, so, pe, po


def _pack_slab(named, lane_width=128):
    """Vertically pack 2-D f32 matrices into one lane-padded constant slab.

    Each segment's row offset is rounded up to a multiple of 8 so the
    in-kernel static slices are sublane-aligned."""
    offsets, shapes = {}, {}
    row = 0
    for name, a in named:
        a = np.asarray(a, np.float32)
        assert a.ndim == 2 and a.shape[1] <= lane_width, (name, a.shape)
        offsets[name] = row
        shapes[name] = a.shape
        row += ((a.shape[0] + 7) // 8) * 8
    slab = np.zeros((max(8, row), lane_width), np.float32)
    for name, a in named:
        a = np.asarray(a, np.float32)
        slab[offsets[name]:offsets[name] + a.shape[0], :a.shape[1]] = a
    return jnp.asarray(slab), offsets, shapes


def prepare_params(params, *, image_hw=28, kernel_size=3, stride=1, padding=1):
    assert kernel_size == 3 and stride == 1 and padding == 1 and image_hw == 28, (
        "fused kernel is specialized to the module's effective config")
    assert params["conv1_w"].shape[1] == 1, "fused kernel assumes input_channels == 1"

    w1 = np.asarray(params["conv1_w"], np.float32)          # (C1, 1, 3, 3)
    w2 = np.asarray(params["conv2_w"], np.float32)          # (C2, C1, 3, 3)
    C1, C2 = w1.shape[0], w2.shape[0]
    H = image_hw                                            # 28
    Hq = H // 2                                             # 14
    Hf = Hq // 2                                            # 7

    # Banded conv weights (width zero-padding baked in).
    m1 = _conv_band_matrices(w1, H, in_padded=False)        # (3, 28, 28*C1)
    m2 = _conv_band_matrices(w2, Hq, in_padded=True)        # (3, 16*C1, 14*C2)

    # Bias rows matching the (h, w*C + c) lane layout.
    b1 = np.tile(np.asarray(params["conv1_b"], np.float32), H).reshape(1, H * C1)
    b2 = np.tile(np.asarray(params["conv2_b"], np.float32), Hq).reshape(1, Hq * C2)

    # Pool selectors (stage 1 re-pads rows & width for conv2).
    s1e, s1o, p1e, p1o = _pool_selectors(H, H, C1, pad_out=True)    # (16,28),(112,64)
    s2e, s2o, p2e, p2o = _pool_selectors(Hq, Hq, C2, pad_out=False) # (7,14),(112,56)

    # fc1: PyTorch's CHW flatten absorbed into the weight; laid out as one
    # (Hf*C2, Hf*FCH) matrix so fc1 becomes a single M=Hf matmul per image
    # plus a block-diagonal lane gather.
    fc1_w = np.asarray(params["fc1_w"], np.float32)          # (FCH, C2*Hf*Hf)
    FCH = fc1_w.shape[0]
    wfc1 = (fc1_w.reshape(FCH, C2, Hf, Hf)
                 .transpose(2, 3, 1, 0)
                 .reshape(Hf, Hf * C2, FCH))                 # [h, w*C2+c, j]
    wcat = np.ascontiguousarray(
        wfc1.transpose(1, 0, 2).reshape(Hf * C2, Hf * FCH))  # (56, Hf*FCH)
    fc1b = np.asarray(params["fc1_b"], np.float32).reshape(1, FCH)

    # fc2 padded to a lane-dense 128-wide output.
    num_classes = int(params["fc2_w"].shape[0])
    NC_PAD = 128
    assert num_classes <= NC_PAD
    wfc2p = np.zeros((FCH, NC_PAD), np.float32)
    wfc2p[:, :num_classes] = np.asarray(params["fc2_w"], np.float32).T
    fc2bp = np.zeros((1, NC_PAD), np.float32)
    fc2bp[0, :num_classes] = np.asarray(params["fc2_b"], np.float32)

    named = [("m1k0", m1[0]), ("m1k1", m1[1]), ("m1k2", m1[2]),
             ("m2k0", m2[0]), ("m2k1", m2[1]), ("m2k2", m2[2]),
             ("s1e", s1e), ("s1o", s1o), ("p1e", p1e), ("p1o", p1o),
             ("s2e", s2e), ("s2o", s2o), ("p2e", p2e), ("p2o", p2o),
             ("b1", b1), ("b2", b2), ("fc1b", fc1b),
             ("wfc2p", wfc2p), ("fc2bp", fc2bp)]
    slab, seg, seg_shapes = _pack_slab(named)

    return {
        "slab": slab,
        "wcat": jnp.asarray(wcat),
        "seg": seg,
        "seg_shapes": seg_shapes,
        "dims": dict(H=H, Hq=Hq, Hf=Hf, C1=C1, C2=C2, FCH=FCH,
                     num_classes=num_classes, nc_pad=NC_PAD),
    }


# ----------------------------------------------------------------------------
# Fused Pallas kernel (B images per grid step)
# ----------------------------------------------------------------------------
def _make_kernel(seg, shapes, dims, B):
    H, Hq, Hf = dims["H"], dims["Hq"], dims["Hf"]
    FCH = dims["FCH"]
    K = 3

    def kernel(x_ref, slab_ref, wcat_ref, out_ref, xp1_s, a2_s, h1_s):
        def dot(a, b):
            return jnp.dot(a, b, preferred_element_type=jnp.float32)

        def w(name):                       # static, 8-aligned slab slice -> value
            r0 = seg[name]
            r, c = shapes[name]
            return slab_ref[r0:r0 + r, 0:c]

        # Zero the conv1 row-padding border once per grid step (rows 1..H are
        # overwritten per image below; rows 0 and H+1 stay zero).
        xp1_s[...] = jnp.zeros_like(xp1_s)

        for b in range(B):                 # unrolled over the batch block
            # ---- conv1 + ReLU (banded matmuls on the row-padded slab) ----
            xp1_s[1:1 + H, :] = x_ref[0, b, 0, :, :]
            c1 = dot(xp1_s[0:H, :], w("m1k0"))
            for kh in range(1, K):
                c1 = c1 + dot(xp1_s[kh:kh + H, :], w("m1k" + str(kh)))
            c1 = jnp.maximum(c1 + w("b1"), 0.0)                          # (28, 112)

            # ---- maxpool1 (2x2) + zero re-pad for conv2 ----
            r1 = jnp.maximum(dot(w("s1e"), c1), dot(w("s1o"), c1))       # (16, 112)
            a2_s[...] = jnp.maximum(dot(r1, w("p1e")), dot(r1, w("p1o")))  # (16, 64)

            # ---- conv2 + ReLU ----
            c2 = dot(a2_s[0:Hq, :], w("m2k0"))
            for kh in range(1, K):
                c2 = c2 + dot(a2_s[kh:kh + Hq, :], w("m2k" + str(kh)))
            c2 = jnp.maximum(c2 + w("b2"), 0.0)                          # (14, 112)

            # ---- maxpool2 (2x2) ----
            r2 = jnp.maximum(dot(w("s2e"), c2), dot(w("s2o"), c2))       # (7, 112)
            p2 = jnp.maximum(dot(r2, w("p2e")), dot(r2, w("p2o")))       # (7, 56)

            # ---- fc1: one M=Hf matmul + block-diagonal lane gather ----
            t = dot(p2, wcat_ref[...])                                   # (7, Hf*FCH)
            acc = w("fc1b")
            for h in range(Hf):
                acc = acc + t[h:h + 1, h * FCH:(h + 1) * FCH]
            h1_s[b:b + 1, :] = jnp.maximum(acc, 0.0)                     # (1, FCH)

        # ---- fc2: single batched matmul for the block, lane-dense store ----
        out_ref[0, :, :] = dot(h1_s[...], w("wfc2p")) + w("fc2bp")       # (B, 128)

    return kernel


def make_forward(prep):
    slab, wcat = prep["slab"], prep["wcat"]
    seg, shapes, dims = prep["seg"], prep["seg_shapes"], prep["dims"]
    H, Hq, C1, FCH = dims["H"], dims["Hq"], dims["C1"], dims["FCH"]
    NC_PAD, num_classes = dims["nc_pad"], dims["num_classes"]

    def fwd(x):
        assert x.shape[1] == 1 and x.shape[2] == H and x.shape[3] == H, x.shape
        N = x.shape[0]
        # Per-step batch block: amortize the fixed per-step overhead while
        # keeping >= 2 "parallel" grid steps when N >= 2 (feeds both v7x TCs).
        if N >= 16:
            B = 8
        elif N >= 2:
            B = N // 2
        else:
            B = 1
        G = pl.cdiv(N, B)
        n_pad = G * B
        xf = x.astype(jnp.float32)
        if n_pad != N:
            xf = jnp.concatenate(
                [xf, jnp.zeros((n_pad - N,) + x.shape[1:], jnp.float32)], axis=0)
        xg = xf.reshape(G, B, 1, H, H)

        kernel = _make_kernel(seg, shapes, dims, B)
        out = pl.pallas_call(
            kernel,
            grid=(G,),
            in_specs=[
                pl.BlockSpec((1, B, 1, H, H), lambda g: (g, 0, 0, 0, 0)),
                pl.BlockSpec(slab.shape, lambda g: (0, 0)),
                pl.BlockSpec(wcat.shape, lambda g: (0, 0)),
            ],
            out_specs=pl.BlockSpec((1, B, NC_PAD), lambda g: (g, 0, 0)),
            out_shape=jax.ShapeDtypeStruct((G, B, NC_PAD), jnp.float32),
            scratch_shapes=[
                pltpu.VMEM((H + 2, H), jnp.float32),               # padded conv1 slab
                pltpu.VMEM((Hq + 2, (Hq + 2) * C1), jnp.float32),  # padded pool1 slab
                pltpu.VMEM((B, FCH), jnp.float32),                 # fc1 activations
            ],
            compiler_params=pltpu.CompilerParams(
                dimension_semantics=("parallel",)),
        )(xg, slab, wcat)
        return out.reshape(n_pad, NC_PAD)[:N, :num_classes]

    return jax.jit(fwd)


# ----------------------------------------------------------------------------
# Pure-JAX reference (for validation) and parameter init
# ----------------------------------------------------------------------------
def reference_forward(params, x):
    hi = jax.lax.Precision.HIGHEST

    def conv(x, w, b):
        y = jax.lax.conv_general_dilated(
            x, w, window_strides=(1, 1), padding=((1, 1), (1, 1)),
            dimension_numbers=("NCHW", "OIHW", "NCHW"), precision=hi)
        return y + b[None, :, None, None]

    def pool(x):
        return jax.lax.reduce_window(x, -jnp.inf, jax.lax.max,
                                     (1, 1, 2, 2), (1, 1, 2, 2), "VALID")

    y = pool(jnp.maximum(conv(x, params["conv1_w"], params["conv1_b"]), 0.0))
    y = pool(jnp.maximum(conv(y, params["conv2_w"], params["conv2_b"]), 0.0))
    flat = y.reshape(x.shape[0], -1)
    h = jnp.maximum(jnp.dot(flat, params["fc1_w"].T, precision=hi) + params["fc1_b"], 0.0)
    return jnp.dot(h, params["fc2_w"].T, precision=hi) + params["fc2_b"]


def init_params(key, input_channels, conv_channels, kernel_size,
                fc_hidden_size, num_classes):
    c1, c2 = conv_channels
    flattened_size = (28 // (2 * 2)) ** 2 * c2            # hardcoded 28 as in module
    ks = jax.random.split(key, 8)
    f32 = jnp.float32
    return {
        "conv1_w": 0.1 * jax.random.normal(ks[0], (c1, input_channels, kernel_size, kernel_size), f32),
        "conv1_b": 0.1 * jax.random.normal(ks[1], (c1,), f32),
        "conv2_w": 0.1 * jax.random.normal(ks[2], (c2, c1, kernel_size, kernel_size), f32),
        "conv2_b": 0.1 * jax.random.normal(ks[3], (c2,), f32),
        "fc1_w": 0.1 * jax.random.normal(ks[4], (fc_hidden_size, flattened_size), f32),
        "fc1_b": 0.1 * jax.random.normal(ks[5], (fc_hidden_size,), f32),
        "fc2_w": 0.1 * jax.random.normal(ks[6], (num_classes, fc_hidden_size), f32),
        "fc2_b": 0.1 * jax.random.normal(ks[7], (num_classes,), f32),
    }


if __name__ == "__main__":
    # Module's flattened_size hardcodes a 28x28 input with shape-preserving
    # convs: spatial=28, kernel_size=3, stride=1, padding=1.
    batch = 8                      # -> per-step block B=4, grid of 2 parallel steps
    input_channels = 1
    conv_channels = (4, 8)
    kernel_size, stride, padding = 3, 1, 1
    fc_hidden_size = 32
    num_classes = 10

    key = jax.random.PRNGKey(0)
    k_params, k_x = jax.random.split(key)
    params = init_params(k_params, input_channels, conv_channels, kernel_size,
                         fc_hidden_size, num_classes)
    x = jax.random.normal(k_x, (batch, input_channels, 28, 28), jnp.float32)

    prep = prepare_params(params, image_hw=28, kernel_size=kernel_size,
                          stride=stride, padding=padding)
    fwd = make_forward(prep)

    out = fwd(x)
    jax.block_until_ready(out)
    assert out.shape == (batch, num_classes), out.shape

    ref = reference_forward(params, x)
    np.testing.assert_allclose(np.asarray(out), np.asarray(ref), rtol=5e-3, atol=5e-3)
    print("KERNEL_OK")
</pallas_src>

<mosaic_0001>
module attributes {stable_mosaic.version = 11 : i64} {
  func.func @kernel(%arg0: i32, %arg1: memref<1x4x1x28x28xf32, #tpu.memory_space<vmem>>, %arg2: memref<848x128xf32, #tpu.memory_space<vmem>>, %arg3: memref<56x224xf32, #tpu.memory_space<vmem>>, %arg4: memref<1x4x128xf32, #tpu.memory_space<vmem>>, %arg5: memref<30x28xf32, #tpu.memory_space<vmem>>, %arg6: memref<16x64xf32, #tpu.memory_space<vmem>>, %arg7: memref<4x32xf32, #tpu.memory_space<vmem>>) attributes {dimension_semantics = [#tpu.dimension_semantics<parallel>], iteration_bounds = array<i64: 2>, scalar_prefetch = 0 : i64, scratch_operands = 3 : i64, tpu.core_type = #tpu.core_type<tc>, window_params = [{transform_indices = @transform_0, window_bounds = array<i64: 1, 4, 1, 28, 28>}, {pipeline_mode = #tpu.pipeline_mode<synchronous>, transform_indices = @transform_1, window_bounds = array<i64: 848, 128>}, {pipeline_mode = #tpu.pipeline_mode<synchronous>, transform_indices = @transform_2, window_bounds = array<i64: 56, 224>}, {transform_indices = @transform_3, window_bounds = array<i64: 1, 4, 128>}]} {
    %cst = arith.constant 0.000000e+00 : f32
    %0 = vector.broadcast %cst : f32 to vector<30x28xf32>
    %c0 = arith.constant 0 : index
    %c0_0 = arith.constant 0 : index
    %1 = vector.load %arg5[%c0, %c0_0] : memref<30x28xf32, #tpu.memory_space<vmem>>, vector<30x28xf32>
    tpu.vector_store %arg5[%c0, %c0_0], %0 {strides = array<i32>} : memref<30x28xf32, #tpu.memory_space<vmem>>, vector<30x28xf32>,
    %c0_1 = arith.constant 0 : index
    %c0_2 = arith.constant 0 : index
    %c0_3 = arith.constant 0 : index
    %c0_4 = arith.constant 0 : index
    %c0_5 = arith.constant 0 : index
    %2 = vector.load %arg1[%c0_1, %c0_2, %c0_3, %c0_4, %c0_5] : memref<1x4x1x28x28xf32, #tpu.memory_space<vmem>>, vector<1x1x1x28x28xf32>
    %3 = vector.shape_cast %2 : vector<1x1x1x28x28xf32> to vector<28x28xf32>
    %c1 = arith.constant 1 : index
    %c0_6 = arith.constant 0 : index
    %4 = vector.load %arg5[%c1, %c0_6] : memref<30x28xf32, #tpu.memory_space<vmem>>, vector<28x28xf32>
    tpu.vector_store %arg5[%c1, %c0_6], %3 {strides = array<i32>} : memref<30x28xf32, #tpu.memory_space<vmem>>, vector<28x28xf32>,
    %c0_7 = arith.constant 0 : index
    %c0_8 = arith.constant 0 : index
    %5 = vector.load %arg5[%c0_7, %c0_8] : memref<30x28xf32, #tpu.memory_space<vmem>>, vector<28x28xf32>
    %c0_9 = arith.constant 0 : index
    %c0_10 = arith.constant 0 : index
    %6 = vector.load %arg2[%c0_9, %c0_10] : memref<848x128xf32, #tpu.memory_space<vmem>>, vector<28x112xf32>
    %cst_11 = arith.constant dense<0.000000e+00> : vector<28x112xf32>
    %7 = tpu.matmul %5, %6, %cst_11 {dimension_numbers = #tpu.dot_dimension_numbers<[1], [0], [0], [1], [0, 0, 1, 1], [], []>} : vector<28x28xf32>, vector<28x112xf32>, vector<28x112xf32> -> vector<28x112xf32>
    %c1_12 = arith.constant 1 : index
    %c0_13 = arith.constant 0 : index
    %8 = vector.load %arg5[%c1_12, %c0_13] : memref<30x28xf32, #tpu.memory_space<vmem>>, vector<28x28xf32>
    %c32 = arith.constant 32 : index
    %c0_14 = arith.constant 0 : index
    %9 = vector.load %arg2[%c32, %c0_14] : memref<848x128xf32, #tpu.memory_space<vmem>>, vector<28x112xf32>
    %cst_15 = arith.constant dense<0.000000e+00> : vector<28x112xf32>
    %10 = tpu.matmul %8, %9, %cst_15 {dimension_numbers = #tpu.dot_dimension_numbers<[1], [0], [0], [1], [0, 0, 1, 1], [], []>} : vector<28x28xf32>, vector<28x112xf32>, vector<28x112xf32> -> vector<28x112xf32>
    %11 = arith.addf %7, %10 : vector<28x112xf32>
    %c2 = arith.constant 2 : index
    %c0_16 = arith.constant 0 : index
    %12 = vector.load %arg5[%c2, %c0_16] : memref<30x28xf32, #tpu.memory_space<vmem>>, vector<28x28xf32>
    %c64 = arith.constant 64 : index
    %c0_17 = arith.constant 0 : index
    %13 = vector.load %arg2[%c64, %c0_17] : memref<848x128xf32, #tpu.memory_space<vmem>>, vector<28x112xf32>
    %cst_18 = arith.constant dense<0.000000e+00> : vector<28x112xf32>
    %14 = tpu.matmul %12, %13, %cst_18 {dimension_numbers = #tpu.dot_dimension_numbers<[1], [0], [0], [1], [0, 0, 1, 1], [], []>} : vector<28x28xf32>, vector<28x112xf32>, vector<28x112xf32> -> vector<28x112xf32>
    %15 = arith.addf %11, %14 : vector<28x112xf32>
    %c784 = arith.constant 784 : index
    %c0_19 = arith.constant 0 : index
    %16 = vector.load %arg2[%c784, %c0_19] : memref<848x128xf32, #tpu.memory_space<vmem>>, vector<1x112xf32>
    %17 = vector.broadcast %16 : vector<1x112xf32> to vector<28x112xf32>
    %18 = arith.addf %15, %17 : vector<28x112xf32>
    %cst_20 = arith.constant 0.000000e+00 : f32
    %19 = vector.broadcast %cst_20 : f32 to vector<28x112xf32>
    %20 = arith.maximumf %18, %19 : vector<28x112xf32>
    %c288 = arith.constant 288 : index
    %c0_21 = arith.constant 0 : index
    %21 = vector.load %arg2[%c288, %c0_21] : memref<848x128xf32, #tpu.memory_space<vmem>>, vector<16x28xf32>
    %cst_22 = arith.constant dense<0.000000e+00> : vector<16x112xf32>
    %22 = tpu.matmul %21, %20, %cst_22 {dimension_numbers = #tpu.dot_dimension_numbers<[1], [0], [0], [1], [0, 0, 1, 1], [], []>} : vector<16x28xf32>, vector<28x112xf32>, vector<16x112xf32> -> vector<16x112xf32>
    %c304 = arith.constant 304 : index
    %c0_23 = arith.constant 0 : index
    %23 = vector.load %arg2[%c304, %c0_23] : memref<848x128xf32, #tpu.memory_space<vmem>>, vector<16x28xf32>
    %cst_24 = arith.constant dense<0.000000e+00> : vector<16x112xf32>
    %24 = tpu.matmul %23, %20, %cst_24 {dimension_numbers = #tpu.dot_dimension_numbers<[1], [0], [0], [1], [0, 0, 1, 1], [], []>} : vector<16x28xf32>, vector<28x112xf32>, vector<16x112xf32> -> vector<16x112xf32>
    %25 = arith.maximumf %22, %24 : vector<16x112xf32>
    %c320 = arith.constant 320 : index
    %c0_25 = arith.constant 0 : index
    %26 = vector.load %arg2[%c320, %c0_25] : memref<848x128xf32, #tpu.memory_space<vmem>>, vector<112x64xf32>
    %cst_26 = arith.constant dense<0.000000e+00> : vector<16x64xf32>
    %27 = tpu.matmul %25, %26, %cst_26 {dimension_numbers = #tpu.dot_dimension_numbers<[1], [0], [0], [1], [0, 0, 1, 1], [], []>} : vector<16x112xf32>, vector<112x64xf32>, vector<16x64xf32> -> vector<16x64xf32>
    %c432 = arith.constant 432 : index
    %c0_27 = arith.constant 0 : index
    %28 = vector.load %arg2[%c432, %c0_27] : memref<848x128xf32, #tpu.memory_space<vmem>>, vector<112x64xf32>
    %cst_28 = arith.constant dense<0.000000e+00> : vector<16x64xf32>
    %29 = tpu.matmul %25, %28, %cst_28 {dimension_numbers = #tpu.dot_dimension_numbers<[1], [0], [0], [1], [0, 0, 1, 1], [], []>} : vector<16x112xf32>, vector<112x64xf32>, vector<16x64xf32> -> vector<16x64xf32>
    %30 = arith.maximumf %27, %29 : vector<16x64xf32>
    %c0_29 = arith.constant 0 : index
    %c0_30 = arith.constant 0 : index
    %31 = vector.load %arg6[%c0_29, %c0_30] : memref<16x64xf32, #tpu.memory_space<vmem>>, vector<16x64xf32>
    tpu.vector_store %arg6[%c0_29, %c0_30], %30 {strides = array<i32>} : memref<16x64xf32, #tpu.memory_space<vmem>>, vector<16x64xf32>,
    %c0_31 = arith.constant 0 : index
    %c0_32 = arith.constant 0 : index
    %32 = vector.load %arg6[%c0_31, %c0_32] : memref<16x64xf32, #tpu.memory_space<vmem>>, vector<14x64xf32>
    %c96 = arith.constant 96 : index
    %c0_33 = arith.constant 0 : index
    %33 = vector.load %arg2[%c96, %c0_33] : memref<848x128xf32, #tpu.memory_space<vmem>>, vector<64x112xf32>
    %cst_34 = arith.constant dense<0.000000e+00> : vector<14x112xf32>
    %34 = tpu.matmul %32, %33, %cst_34 {dimension_numbers = #tpu.dot_dimension_numbers<[1], [0], [0], [1], [0, 0, 1, 1], [], []>} : vector<14x64xf32>, vector<64x112xf32>, vector<14x112xf32> -> vector<14x112xf32>
    %c1_35 = arith.constant 1 : index
    %c0_36 = arith.constant 0 : index
    %35 = vector.load %arg6[%c1_35, %c0_36] : memref<16x64xf32, #tpu.memory_space<vmem>>, vector<14x64xf32>
    %c160 = arith.constant 160 : index
    %c0_37 = arith.constant 0 : index
    %36 = vector.load %arg2[%c160, %c0_37] : memref<848x128xf32, #tpu.memory_space<vmem>>, vector<64x112xf32>
    %cst_38 = arith.constant dense<0.000000e+00> : vector<14x112xf32>
    %37 = tpu.matmul %35, %36, %cst_38 {dimension_numbers = #tpu.dot_dimension_numbers<[1], [0], [0], [1], [0, 0, 1, 1], [], []>} : vector<14x64xf32>, vector<64x112xf32>, vector<14x112xf32> -> vector<14x112xf32>
    %38 = arith.addf %34, %37 : vector<14x112xf32>
    %c2_39 = arith.constant 2 : index
    %c0_40 = arith.constant 0 : index
    %39 = vector.load %arg6[%c2_39, %c0_40] : memref<16x64xf32, #tpu.memory_space<vmem>>, vector<14x64xf32>
    %c224 = arith.constant 224 : index
    %c0_41 = arith.constant 0 : index
    %40 = vector.load %arg2[%c224, %c0_41] : memref<848x128xf32, #tpu.memory_space<vmem>>, vector<64x112xf32>
    %cst_42 = arith.constant dense<0.000000e+00> : vector<14x112xf32>
    %41 = tpu.matmul %39, %40, %cst_42 {dimension_numbers = #tpu.dot_dimension_numbers<[1], [0], [0], [1], [0, 0, 1, 1], [], []>} : vector<14x64xf32>, vector<64x112xf32>, vector<14x112xf32> -> vector<14x112xf32>
    %42 = arith.addf %38, %41 : vector<14x112xf32>
    %c792 = arith.constant 792 : index
    %c0_43 = arith.constant 0 : index
    %43 = vector.load %arg2[%c792, %c0_43] : memref<848x128xf32, #tpu.memory_space<vmem>>, vector<1x112xf32>
    %44 = vector.broadcast %43 : vector<1x112xf32> to vector<14x112xf32>
    %45 = arith.addf %42, %44 : vector<14x112xf32>
    %cst_44 = arith.constant 0.000000e+00 : f32
    %46 = vector.broadcast %cst_44 : f32 to vector<14x112xf32>
    %47 = arith.maximumf %45, %46 : vector<14x112xf32>
    %c544 = arith.constant 544 : index
    %c0_45 = arith.constant 0 : index
    %48 = vector.load %arg2[%c544, %c0_45] : memref<848x128xf32, #tpu.memory_space<vmem>>, vector<7x14xf32>
    %cst_46 = arith.constant dense<0.000000e+00> : vector<7x112xf32>
    %49 = tpu.matmul %48, %47, %cst_46 {dimension_numbers = #tpu.dot_dimension_numbers<[1], [0], [0], [1], [0, 0, 1, 1], [], []>} : vector<7x14xf32>, vector<14x112xf32>, vector<7x112xf32> -> vector<7x112xf32>
    %c552 = arith.constant 552 : index
    %c0_47 = arith.constant 0 : index
    %50 = vector.load %arg2[%c552, %c0_47] : memref<848x128xf32, #tpu.memory_space<vmem>>, vector<7x14xf32>
    %cst_48 = arith.constant dense<0.000000e+00> : vector<7x112xf32>
    %51 = tpu.matmul %50, %47, %cst_48 {dimension_numbers = #tpu.dot_dimension_numbers<[1], [0], [0], [1], [0, 0, 1, 1], [], []>} : vector<7x14xf32>, vector<14x112xf32>, vector<7x112xf32> -> vector<7x112xf32>
    %52 = arith.maximumf %49, %51 : vector<7x112xf32>
    %c560 = arith.constant 560 : index
    %c0_49 = arith.constant 0 : index
    %53 = vector.load %arg2[%c560, %c0_49] : memref<848x128xf32, #tpu.memory_space<vmem>>, vector<112x56xf32>
    %cst_50 = arith.constant dense<0.000000e+00> : vector<7x56xf32>
    %54 = tpu.matmul %52, %53, %cst_50 {dimension_numbers = #tpu.dot_dimension_numbers<[1], [0], [0], [1], [0, 0, 1, 1], [], []>} : vector<7x112xf32>, vector<112x56xf32>, vector<7x56xf32> -> vector<7x56xf32>
    %c672 = arith.constant 672 : index
    %c0_51 = arith.constant 0 : index
    %55 = vector.load %arg2[%c672, %c0_51] : memref<848x128xf32, #tpu.memory_space<vmem>>, vector<112x56xf32>
    %cst_52 = arith.constant dense<0.000000e+00> : vector<7x56xf32>
    %56 = tpu.matmul %52, %55, %cst_52 {dimension_numbers = #tpu.dot_dimension_numbers<[1], [0], [0], [1], [0, 0, 1, 1], [], []>} : vector<7x112xf32>, vector<112x56xf32>, vector<7x56xf32> -> vector<7x56xf32>
    %57 = arith.maximumf %54, %56 : vector<7x56xf32>
    %c0_53 = arith.constant 0 : index
    %c0_54 = arith.constant 0 : index
    %58 = vector.load %arg3[%c0_53, %c0_54] : memref<56x224xf32, #tpu.memory_space<vmem>>, vector<56x224xf32>
    %cst_55 = arith.constant dense<0.000000e+00> : vector<7x224xf32>
    %59 = tpu.matmul %57, %58, %cst_55 {dimension_numbers = #tpu.dot_dimension_numbers<[1], [0], [0], [1], [0, 0, 1, 1], [], []>} : vector<7x56xf32>, vector<56x224xf32>, vector<7x224xf32> -> vector<7x224xf32>
    %c800 = arith.constant 800 : index
    %c0_56 = arith.constant 0 : index
    %60 = vector.load %arg2[%c800, %c0_56] : memref<848x128xf32, #tpu.memory_space<vmem>>, vector<1x32xf32>
    %61 = vector.extract_strided_slice %59 {offsets = [0, 0], sizes = [1, 32], strides = [1, 1]} : vector<7x224xf32> to vector<1x32xf32>
    %62 = arith.addf %60, %61 : vector<1x32xf32>
    %63 = vector.extract_strided_slice %59 {offsets = [1, 32], sizes = [1, 32], strides = [1, 1]} : vector<7x224xf32> to vector<1x32xf32>
    %64 = arith.addf %62, %63 : vector<1x32xf32>
    %65 = vector.extract_strided_slice %59 {offsets = [2, 64], sizes = [1, 32], strides = [1, 1]} : vector<7x224xf32> to vector<1x32xf32>
    %66 = arith.addf %64, %65 : vector<1x32xf32>
    %67 = vector.extract_strided_slice %59 {offsets = [3, 96], sizes = [1, 32], strides = [1, 1]} : vector<7x224xf32> to vector<1x32xf32>
    %68 = arith.addf %66, %67 : vector<1x32xf32>
    %69 = vector.extract_strided_slice %59 {offsets = [4, 128], sizes = [1, 32], strides = [1, 1]} : vector<7x224xf32> to vector<1x32xf32>
    %70 = arith.addf %68, %69 : vector<1x32xf32>
    %71 = vector.extract_strided_slice %59 {offsets = [5, 160], sizes = [1, 32], strides = [1, 1]} : vector<7x224xf32> to vector<1x32xf32>
    %72 = arith.addf %70, %71 : vector<1x32xf32>
    %73 = vector.extract_strided_slice %59 {offsets = [6, 192], sizes = [1, 32], strides = [1, 1]} : vector<7x224xf32> to vector<1x32xf32>
    %74 = arith.addf %72, %73 : vector<1x32xf32>
    %cst_57 = arith.constant 0.000000e+00 : f32
    %75 = vector.broadcast %cst_57 : f32 to vector<1x32xf32>
    %76 = arith.maximumf %74, %75 : vector<1x32xf32>
    %c0_58 = arith.constant 0 : index
    %c0_59 = arith.constant 0 : index
    %77 = vector.load %arg7[%c0_58, %c0_59] : memref<4x32xf32, #tpu.memory_space<vmem>>, vector<1x32xf32>
    tpu.vector_store %arg7[%c0_58, %c0_59], %76 {strides = array<i32>} : memref<4x32xf32, #tpu.memory_space<vmem>>, vector<1x32xf32>,
    %c0_60 = arith.constant 0 : index
    %c1_61 = arith.constant 1 : index
    %c0_62 = arith.constant 0 : index
    %c0_63 = arith.constant 0 : index
    %c0_64 = arith.constant 0 : index
    %78 = vector.load %arg1[%c0_60, %c1_61, %c0_62, %c0_63, %c0_64] : memref<1x4x1x28x28xf32, #tpu.memory_space<vmem>>, vector<1x1x1x28x28xf32>
    %79 = vector.shape_cast %78 : vector<1x1x1x28x28xf32> to vector<28x28xf32>
    %c1_65 = arith.constant 1 : index
    %c0_66 = arith.constant 0 : index
    %80 = vector.load %arg5[%c1_65, %c0_66] : memref<30x28xf32, #tpu.memory_space<vmem>>, vector<28x28xf32>
    tpu.vector_store %arg5[%c1_65, %c0_66], %79 {strides = array<i32>} : memref<30x28xf32, #tpu.memory_space<vmem>>, vector<28x28xf32>,
    %c0_67 = arith.constant 0 : index
    %c0_68 = arith.constant 0 : index
    %81 = vector.load %arg5[%c0_67, %c0_68] : memref<30x28xf32, #tpu.memory_space<vmem>>, vector<28x28xf32>
    %c0_69 = arith.constant 0 : index
    %c0_70 = arith.constant 0 : index
    %82 = vector.load %arg2[%c0_69, %c0_70] : memref<848x128xf32, #tpu.memory_space<vmem>>, vector<28x112xf32>
    %cst_71 = arith.constant dense<0.000000e+00> : vector<28x112xf32>
    %83 = tpu.matmul %81, %82, %cst_71 {dimension_numbers = #tpu.dot_dimension_numbers<[1], [0], [0], [1], [0, 0, 1, 1], [], []>} : vector<28x28xf32>, vector<28x112xf32>, vector<28x112xf32> -> vector<28x112xf32>
    %c1_72 = arith.constant 1 : index
    %c0_73 = arith.constant 0 : index
    %84 = vector.load %arg5[%c1_72, %c0_73] : memref<30x28xf32, #tpu.memory_space<vmem>>, vector<28x28xf32>
    %c32_74 = arith.constant 32 : index
    %c0_75 = arith.constant 0 : index
    %85 = vector.load %arg2[%c32_74, %c0_75] : memref<848x128xf32, #tpu.memory_space<vmem>>, vector<28x112xf32>
    %cst_76 = arith.constant dense<0.000000e+00> : vector<28x112xf32>
    %86 = tpu.matmul %84, %85, %cst_76 {dimension_numbers = #tpu.dot_dimension_numbers<[1], [0], [0], [1], [0, 0, 1, 1], [], []>} : vector<28x28xf32>, vector<28x112xf32>, vector<28x112xf32> -> vector<28x112xf32>
    %87 = arith.addf %83, %86 : vector<28x112xf32>
    %c2_77 = arith.constant 2 : index
    %c0_78 = arith.constant 0 : index
    %88 = vector.load %arg5[%c2_77, %c0_78] : memref<30x28xf32, #tpu.memory_space<vmem>>, vector<28x28xf32>
    %c64_79 = arith.constant 64 : index
    %c0_80 = arith.constant 0 : index
    %89 = vector.load %arg2[%c64_79, %c0_80] : memref<848x128xf32, #tpu.memory_space<vmem>>, vector<28x112xf32>
    %cst_81 = arith.constant dense<0.000000e+00> : vector<28x112xf32>
    %90 = tpu.matmul %88, %89, %cst_81 {dimension_numbers = #tpu.dot_dimension_numbers<[1], [0], [0], [1], [0, 0, 1, 1], [], []>} : vector<28x28xf32>, vector<28x112xf32>, vector<28x112xf32> -> vector<28x112xf32>
    %91 = arith.addf %87, %90 : vector<28x112xf32>
    %c784_82 = arith.constant 784 : index
    %c0_83 = arith.constant 0 : index
    %92 = vector.load %arg2[%c784_82, %c0_83] : memref<848x128xf32, #tpu.memory_space<vmem>>, vector<1x112xf32>
    %93 = vector.broadcast %92 : vector<1x112xf32> to vector<28x112xf32>
    %94 = arith.addf %91, %93 : vector<28x112xf32>
    %cst_84 = arith.constant 0.000000e+00 : f32
    %95 = vector.broadcast %cst_84 : f32 to vector<28x112xf32>
    %96 = arith.maximumf %94, %95 : vector<28x112xf32>
    %c288_85 = arith.constant 288 : index
    %c0_86 = arith.constant 0 : index
    %97 = vector.load %arg2[%c288_85, %c0_86] : memref<848x128xf32, #tpu.memory_space<vmem>>, vector<16x28xf32>
    %cst_87 = arith.constant dense<0.000000e+00> : vector<16x112xf32>
    %98 = tpu.matmul %97, %96, %cst_87 {dimension_numbers = #tpu.dot_dimension_numbers<[1], [0], [0], [1], [0, 0, 1, 1], [], []>} : vector<16x28xf32>, vector<28x112xf32>, vector<16x112xf32> -> vector<16x112xf32>
    %c304_88 = arith.constant 304 : index
    %c0_89 = arith.constant 0 : index
    %99 = vector.load %arg2[%c304_88, %c0_89] : memref<848x128xf32, #tpu.memory_space<vmem>>, vector<16x28xf32>
    %cst_90 = arith.constant dense<0.000000e+00> : vector<16x112xf32>
    %100 = tpu.matmul %99, %96, %cst_90 {dimension_numbers = #tpu.dot_dimension_numbers<[1], [0], [0], [1], [0, 0, 1, 1], [], []>} : vector<16x28xf32>, vector<28x112xf32>, vector<16x112xf32> -> vector<16x112xf32>
    %101 = arith.maximumf %98, %100 : vector<16x112xf32>
    %c320_91 = arith.constant 320 : index
    %c0_92 = arith.constant 0 : index
    %102 = vector.load %arg2[%c320_91, %c0_92] : memref<848x128xf32, #tpu.memory_space<vmem>>, vector<112x64xf32>
    %cst_93 = arith.constant dense<0.000000e+00> : vector<16x64xf32>
    %103 = tpu.matmul %101, %102, %cst_93 {dimension_numbers = #tpu.dot_dimension_numbers<[1], [0], [0], [1], [0, 0, 1, 1], [], []>} : vector<16x112xf32>, vector<112x64xf32>, vector<16x64xf32> -> vector<16x64xf32>
    %c432_94 = arith.constant 432 : index
    %c0_95 = arith.constant 0 : index
    %104 = vector.load %arg2[%c432_94, %c0_95] : memref<848x128xf32, #tpu.memory_space<vmem>>, vector<112x64xf32>
    %cst_96 = arith.constant dense<0.000000e+00> : vector<16x64xf32>
    %105 = tpu.matmul %101, %104, %cst_96 {dimension_numbers = #tpu.dot_dimension_numbers<[1], [0], [0], [1], [0, 0, 1, 1], [], []>} : vector<16x112xf32>, vector<112x64xf32>, vector<16x64xf32> -> vector<16x64xf32>
    %106 = arith.maximumf %103, %105 : vector<16x64xf32>
    %c0_97 = arith.constant 0 : index
    %c0_98 = arith.constant 0 : index
    %107 = vector.load %arg6[%c0_97, %c0_98] : memref<16x64xf32, #tpu.memory_space<vmem>>, vector<16x64xf32>
    tpu.vector_store %arg6[%c0_97, %c0_98], %106 {strides = array<i32>} : memref<16x64xf32, #tpu.memory_space<vmem>>, vector<16x64xf32>,
    %c0_99 = arith.constant 0 : index
    %c0_100 = arith.constant 0 : index
    %108 = vector.load %arg6[%c0_99, %c0_100] : memref<16x64xf32, #tpu.memory_space<vmem>>, vector<14x64xf32>
    %c96_101 = arith.constant 96 : index
    %c0_102 = arith.constant 0 : index
    %109 = vector.load %arg2[%c96_101, %c0_102] : memref<848x128xf32, #tpu.memory_space<vmem>>, vector<64x112xf32>
    %cst_103 = arith.constant dense<0.000000e+00> : vector<14x112xf32>
    %110 = tpu.matmul %108, %109, %cst_103 {dimension_numbers = #tpu.dot_dimension_numbers<[1], [0], [0], [1], [0, 0, 1, 1], [], []>} : vector<14x64xf32>, vector<64x112xf32>, vector<14x112xf32> -> vector<14x112xf32>
    %c1_104 = arith.constant 1 : index
    %c0_105 = arith.constant 0 : index
    %111 = vector.load %arg6[%c1_104, %c0_105] : memref<16x64xf32, #tpu.memory_space<vmem>>, vector<14x64xf32>
    %c160_106 = arith.constant 160 : index
    %c0_107 = arith.constant 0 : index
    %112 = vector.load %arg2[%c160_106, %c0_107] : memref<848x128xf32, #tpu.memory_space<vmem>>, vector<64x112xf32>
    %cst_108 = arith.constant dense<0.000000e+00> : vector<14x112xf32>
    %113 = tpu.matmul %111, %112, %cst_108 {dimension_numbers = #tpu.dot_dimension_numbers<[1], [0], [0], [1], [0, 0, 1, 1], [], []>} : vector<14x64xf32>, vector<64x112xf32>, vector<14x112xf32> -> vector<14x112xf32>
    %114 = arith.addf %110, %113 : vector<14x112xf32>
    %c2_109 = arith.constant 2 : index
    %c0_110 = arith.constant 0 : index
    %115 = vector.load %arg6[%c2_109, %c0_110] : memref<16x64xf32, #tpu.memory_space<vmem>>, vector<14x64xf32>
    %c224_111 = arith.constant 224 : index
    %c0_112 = arith.constant 0 : index
    %116 = vector.load %arg2[%c224_111, %c0_112] : memref<848x128xf32, #tpu.memory_space<vmem>>, vector<64x112xf32>
    %cst_113 = arith.constant dense<0.000000e+00> : vector<14x112xf32>
    %117 = tpu.matmul %115, %116, %cst_113 {dimension_numbers = #tpu.dot_dimension_numbers<[1], [0], [0], [1], [0, 0, 1, 1], [], []>} : vector<14x64xf32>, vector<64x112xf32>, vector<14x112xf32> -> vector<14x112xf32>
    %118 = arith.addf %114, %117 : vector<14x112xf32>
    %c792_114 = arith.constant 792 : index
    %c0_115 = arith.constant 0 : index
    %119 = vector.load %arg2[%c792_114, %c0_115] : memref<848x128xf32, #tpu.memory_space<vmem>>, vector<1x112xf32>
    %120 = vector.broadcast %119 : vector<1x112xf32> to vector<14x112xf32>
    %121 = arith.addf %118, %120 : vector<14x112xf32>
    %cst_116 = arith.constant 0.000000e+00 : f32
    %122 = vector.broadcast %cst_116 : f32 to vector<14x112xf32>
    %123 = arith.maximumf %121, %122 : vector<14x112xf32>
    %c544_117 = arith.constant 544 : index
    %c0_118 = arith.constant 0 : index
    %124 = vector.load %arg2[%c544_117, %c0_118] : memref<848x128xf32, #tpu.memory_space<vmem>>, vector<7x14xf32>
    %cst_119 = arith.constant dense<0.000000e+00> : vector<7x112xf32>
    %125 = tpu.matmul %124, %123, %cst_119 {dimension_numbers = #tpu.dot_dimension_numbers<[1], [0], [0], [1], [0, 0, 1, 1], [], []>} : vector<7x14xf32>, vector<14x112xf32>, vector<7x112xf32> -> vector<7x112xf32>
    %c552_120 = arith.constant 552 : index
    %c0_121 = arith.constant 0 : index
    %126 = vector.load %arg2[%c552_120, %c0_121] : memref<848x128xf32, #tpu.memory_space<vmem>>, vector<7x14xf32>
    %cst_122 = arith.constant dense<0.000000e+00> : vector<7x112xf32>
    %127 = tpu.matmul %126, %123, %cst_122 {dimension_numbers = #tpu.dot_dimension_numbers<[1], [0], [0], [1], [0, 0, 1, 1], [], []>} : vector<7x14xf32>, vector<14x112xf32>, vector<7x112xf32> -> vector<7x112xf32>
    %128 = arith.maximumf %125, %127 : vector<7x112xf32>
    %c560_123 = arith.constant 560 : index
    %c0_124 = arith.constant 0 : index
    %129 = vector.load %arg2[%c560_123, %c0_124] : memref<848x128xf32, #tpu.memory_space<vmem>>, vector<112x56xf32>
    %cst_125 = arith.constant dense<0.000000e+00> : vector<7x56xf32>
    %130 = tpu.matmul %128, %129, %cst_125 {dimension_numbers = #tpu.dot_dimension_numbers<[1], [0], [0], [1], [0, 0, 1, 1], [], []>} : vector<7x112xf32>, vector<112x56xf32>, vector<7x56xf32> -> vector<7x56xf32>
    %c672_126 = arith.constant 672 : index
    %c0_127 = arith.constant 0 : index
    %131 = vector.load %arg2[%c672_126, %c0_127] : memref<848x128xf32, #tpu.memory_space<vmem>>, vector<112x56xf32>
    %cst_128 = arith.constant dense<0.000000e+00> : vector<7x56xf32>
    %132 = tpu.matmul %128, %131, %cst_128 {dimension_numbers = #tpu.dot_dimension_numbers<[1], [0], [0], [1], [0, 0, 1, 1], [], []>} : vector<7x112xf32>, vector<112x56xf32>, vector<7x56xf32> -> vector<7x56xf32>
    %133 = arith.maximumf %130, %132 : vector<7x56xf32>
    %c0_129 = arith.constant 0 : index
    %c0_130 = arith.constant 0 : index
    %134 = vector.load %arg3[%c0_129, %c0_130] : memref<56x224xf32, #tpu.memory_space<vmem>>, vector<56x224xf32>
    %cst_131 = arith.constant dense<0.000000e+00> : vector<7x224xf32>
    %135 = tpu.matmul %133, %134, %cst_131 {dimension_numbers = #tpu.dot_dimension_numbers<[1], [0], [0], [1], [0, 0, 1, 1], [], []>} : vector<7x56xf32>, vector<56x224xf32>, vector<7x224xf32> -> vector<7x224xf32>
    %c800_132 = arith.constant 800 : index
    %c0_133 = arith.constant 0 : index
    %136 = vector.load %arg2[%c800_132, %c0_133] : memref<848x128xf32, #tpu.memory_space<vmem>>, vector<1x32xf32>
    %137 = vector.extract_strided_slice %135 {offsets = [0, 0], sizes = [1, 32], strides = [1, 1]} : vector<7x224xf32> to vector<1x32xf32>
    %138 = arith.addf %136, %137 : vector<1x32xf32>
    %139 = vector.extract_strided_slice %135 {offsets = [1, 32], sizes = [1, 32], strides = [1, 1]} : vector<7x224xf32> to vector<1x32xf32>
    %140 = arith.addf %138, %139 : vector<1x32xf32>
    %141 = vector.extract_strided_slice %135 {offsets = [2, 64], sizes = [1, 32], strides = [1, 1]} : vector<7x224xf32> to vector<1x32xf32>
    %142 = arith.addf %140, %141 : vector<1x32xf32>
    %143 = vector.extract_strided_slice %135 {offsets = [3, 96], sizes = [1, 32], strides = [1, 1]} : vector<7x224xf32> to vector<1x32xf32>
    %144 = arith.addf %142, %143 : vector<1x32xf32>
    %145 = vector.extract_strided_slice %135 {offsets = [4, 128], sizes = [1, 32], strides = [1, 1]} : vector<7x224xf32> to vector<1x32xf32>
    %146 = arith.addf %144, %145 : vector<1x32xf32>
    %147 = vector.extract_strided_slice %135 {offsets = [5, 160], sizes = [1, 32], strides = [1, 1]} : vector<7x224xf32> to vector<1x32xf32>
    %148 = arith.addf %146, %147 : vector<1x32xf32>
    %149 = vector.extract_strided_slice %135 {offsets = [6, 192], sizes = [1, 32], strides = [1, 1]} : vector<7x224xf32> to vector<1x32xf32>
    %150 = arith.addf %148, %149 : vector<1x32xf32>
    %cst_134 = arith.constant 0.000000e+00 : f32
    %151 = vector.broadcast %cst_134 : f32 to vector<1x32xf32>
    %152 = arith.maximumf %150, %151 : vector<1x32xf32>
    %c1_135 = arith.constant 1 : index
    %c0_136 = arith.constant 0 : index
    %153 = vector.load %arg7[%c1_135, %c0_136] : memref<4x32xf32, #tpu.memory_space<vmem>>, vector<1x32xf32>
    tpu.vector_store %arg7[%c1_135, %c0_136], %152 {strides = array<i32>} : memref<4x32xf32, #tpu.memory_space<vmem>>, vector<1x32xf32>,
    %c0_137 = arith.constant 0 : index
    %c2_138 = arith.constant 2 : index
    %c0_139 = arith.constant 0 : index
    %c0_140 = arith.constant 0 : index
    %c0_141 = arith.constant 0 : index
    %154 = vector.load %arg1[%c0_137, %c2_138, %c0_139, %c0_140, %c0_141] : memref<1x4x1x28x28xf32, #tpu.memory_space<vmem>>, vector<1x1x1x28x28xf32>
    %155 = vector.shape_cast %154 : vector<1x1x1x28x28xf32> to vector<28x28xf32>
    %c1_142 = arith.constant 1 : index
    %c0_143 = arith.constant 0 : index
    %156 = vector.load %arg5[%c1_142, %c0_143] : memref<30x28xf32, #tpu.memory_space<vmem>>, vector<28x28xf32>
    tpu.vector_store %arg5[%c1_142, %c0_143], %155 {strides = array<i32>} : memref<30x28xf32, #tpu.memory_space<vmem>>, vector<28x28xf32>,
    %c0_144 = arith.constant 0 : index
    %c0_145 = arith.constant 0 : index
    %157 = vector.load %arg5[%c0_144, %c0_145] : memref<30x28xf32, #tpu.memory_space<vmem>>, vector<28x28xf32>
    %c0_146 = arith.constant 0 : index
    %c0_147 = arith.constant 0 : index
    %158 = vector.load %arg2[%c0_146, %c0_147] : memref<848x128xf32, #tpu.memory_space<vmem>>, vector<28x112xf32>
    %cst_148 = arith.constant dense<0.000000e+00> : vector<28x112xf32>
    %159 = tpu.matmul %157, %158, %cst_148 {dimension_numbers = #tpu.dot_dimension_numbers<[1], [0], [0], [1], [0, 0, 1, 1], [], []>} : vector<28x28xf32>, vector<28x112xf32>, vector<28x112xf32> -> vector<28x112xf32>
    %c1_149 = arith.constant 1 : index
    %c0_150 = arith.constant 0 : index
    %160 = vector.load %arg5[%c1_149, %c0_150] : memref<30x28xf32, #tpu.memory_space<vmem>>, vector<28x28xf32>
    %c32_151 = arith.constant 32 : index
    %c0_152 = arith.constant 0 : index
    %161 = vector.load %arg2[%c32_151, %c0_152] : memref<848x128xf32, #tpu.memory_space<vmem>>, vector<28x112xf32>
    %cst_153 = arith.constant dense<0.000000e+00> : vector<28x112xf32>
    %162 = tpu.matmul %160, %161, %cst_153 {dimension_numbers = #tpu.dot_dimension_numbers<[1], [0], [0], [1], [0, 0, 1, 1], [], []>} : vector<28x28xf32>, vector<28x112xf32>, vector<28x112xf32> -> vector<28x112xf32>
    %163 = arith.addf %159, %162 : vector<28x112xf32>
    %c2_154 = arith.constant 2 : index
    %c0_155 = arith.constant 0 : index
    %164 = vector.load %arg5[%c2_154, %c0_155] : memref<30x28xf32, #tpu.memory_space<vmem>>, vector<28x28xf32>
    %c64_156 = arith.constant 64 : index
    %c0_157 = arith.constant 0 : index
    %165 = vector.load %arg2[%c64_156, %c0_157] : memref<848x128xf32, #tpu.memory_space<vmem>>, vector<28x112xf32>
    %cst_158 = arith.constant dense<0.000000e+00> : vector<28x112xf32>
    %166 = tpu.matmul %164, %165, %cst_158 {dimension_numbers = #tpu.dot_dimension_numbers<[1], [0], [0], [1], [0, 0, 1, 1], [], []>} : vector<28x28xf32>, vector<28x112xf32>, vector<28x112xf32> -> vector<28x112xf32>
    %167 = arith.addf %163, %166 : vector<28x112xf32>
    %c784_159 = arith.constant 784 : index
    %c0_160 = arith.constant 0 : index
    %168 = vector.load %arg2[%c784_159, %c0_160] : memref<848x128xf32, #tpu.memory_space<vmem>>, vector<1x112xf32>
    %169 = vector.broadcast %168 : vector<1x112xf32> to vector<28x112xf32>
    %170 = arith.addf %167, %169 : vector<28x112xf32>
    %cst_161 = arith.constant 0.000000e+00 : f32
    %171 = vector.broadcast %cst_161 : f32 to vector<28x112xf32>
    %172 = arith.maximumf %170, %171 : vector<28x112xf32>
    %c288_162 = arith.constant 288 : index
    %c0_163 = arith.constant 0 : index
    %173 = vector.load %arg2[%c288_162, %c0_163] : memref<848x128xf32, #tpu.memory_space<vmem>>, vector<16x28xf32>
    %cst_164 = arith.constant dense<0.000000e+00> : vector<16x112xf32>
    %174 = tpu.matmul %173, %172, %cst_164 {dimension_numbers = #tpu.dot_dimension_numbers<[1], [0], [0], [1], [0, 0, 1, 1], [], []>} : vector<16x28xf32>, vector<28x112xf32>, vector<16x112xf32> -> vector<16x112xf32>
    %c304_165 = arith.constant 304 : index
    %c0_166 = arith.constant 0 : index
    %175 = vector.load %arg2[%c304_165, %c0_166] : memref<848x128xf32, #tpu.memory_space<vmem>>, vector<16x28xf32>
    %cst_167 = arith.constant dense<0.000000e+00> : vector<16x112xf32>
    %176 = tpu.matmul %175, %172, %cst_167 {dimension_numbers = #tpu.dot_dimension_numbers<[1], [0], [0], [1], [0, 0, 1, 1], [], []>} : vector<16x28xf32>, vector<28x112xf32>, vector<16x112xf32> -> vector<16x112xf32>
    %177 = arith.maximumf %174, %176 : vector<16x112xf32>
    %c320_168 = arith.constant 320 : index
    %c0_169 = arith.constant 0 : index
    %178 = vector.load %arg2[%c320_168, %c0_169] : memref<848x128xf32, #tpu.memory_space<vmem>>, vector<112x64xf32>
    %cst_170 = arith.constant dense<0.000000e+00> : vector<16x64xf32>
    %179 = tpu.matmul %177, %178, %cst_170 {dimension_numbers = #tpu.dot_dimension_numbers<[1], [0], [0], [1], [0, 0, 1, 1], [], []>} : vector<16x112xf32>, vector<112x64xf32>, vector<16x64xf32> -> vector<16x64xf32>
    %c432_171 = arith.constant 432 : index
    %c0_172 = arith.constant 0 : index
    %180 = vector.load %arg2[%c432_171, %c0_172] : memref<848x128xf32, #tpu.memory_space<vmem>>, vector<112x64xf32>
    %cst_173 = arith.constant dense<0.000000e+00> : vector<16x64xf32>
    %181 = tpu.matmul %177, %180, %cst_173 {dimension_numbers = #tpu.dot_dimension_numbers<[1], [0], [0], [1], [0, 0, 1, 1], [], []>} : vector<16x112xf32>, vector<112x64xf32>, vector<16x64xf32> -> vector<16x64xf32>
    %182 = arith.maximumf %179, %181 : vector<16x64xf32>
    %c0_174 = arith.constant 0 : index
    %c0_175 = arith.constant 0 : index
    %183 = vector.load %arg6[%c0_174, %c0_175] : memref<16x64xf32, #tpu.memory_space<vmem>>, vector<16x64xf32>
    tpu.vector_store %arg6[%c0_174, %c0_175], %182 {strides = array<i32>} : memref<16x64xf32, #tpu.memory_space<vmem>>, vector<16x64xf32>,
    %c0_176 = arith.constant 0 : index
    %c0_177 = arith.constant 0 : index
    %184 = vector.load %arg6[%c0_176, %c0_177] : memref<16x64xf32, #tpu.memory_space<vmem>>, vector<14x64xf32>
    %c96_178 = arith.constant 96 : index
    %c0_179 = arith.constant 0 : index
    %185 = vector.load %arg2[%c96_178, %c0_179] : memref<848x128xf32, #tpu.memory_space<vmem>>, vector<64x112xf32>
    %cst_180 = arith.constant dense<0.000000e+00> : vector<14x112xf32>
    %186 = tpu.matmul %184, %185, %cst_180 {dimension_numbers = #tpu.dot_dimension_numbers<[1], [0], [0], [1], [0, 0, 1, 1], [], []>} : vector<14x64xf32>, vector<64x112xf32>, vector<14x112xf32> -> vector<14x112xf32>
    %c1_181 = arith.constant 1 : index
    %c0_182 = arith.constant 0 : index
    %187 = vector.load %arg6[%c1_181, %c0_182] : memref<16x64xf32, #tpu.memory_space<vmem>>, vector<14x64xf32>
    %c160_183 = arith.constant 160 : index
    %c0_184 = arith.constant 0 : index
    %188 = vector.load %arg2[%c160_183, %c0_184] : memref<848x128xf32, #tpu.memory_space<vmem>>, vector<64x112xf32>
    %cst_185 = arith.constant dense<0.000000e+00> : vector<14x112xf32>
    %189 = tpu.matmul %187, %188, %cst_185 {dimension_numbers = #tpu.dot_dimension_numbers<[1], [0], [0], [1], [0, 0, 1, 1], [], []>} : vector<14x64xf32>, vector<64x112xf32>, vector<14x112xf32> -> vector<14x112xf32>
    %190 = arith.addf %186, %189 : vector<14x112xf32>
    %c2_186 = arith.constant 2 : index
    %c0_187 = arith.constant 0 : index
    %191 = vector.load %arg6[%c2_186, %c0_187] : memref<16x64xf32, #tpu.memory_space<vmem>>, vector<14x64xf32>
    %c224_188 = arith.constant 224 : index
    %c0_189 = arith.constant 0 : index
    %192 = vector.load %arg2[%c224_188, %c0_189] : memref<848x128xf32, #tpu.memory_space<vmem>>, vector<64x112xf32>
    %cst_190 = arith.constant dense<0.000000e+00> : vector<14x112xf32>
    %193 = tpu.matmul %191, %192, %cst_190 {dimension_numbers = #tpu.dot_dimension_numbers<[1], [0], [0], [1], [0, 0, 1, 1], [], []>} : vector<14x64xf32>, vector<64x112xf32>, vector<14x112xf32> -> vector<14x112xf32>
    %194 = arith.addf %190, %193 : vector<14x112xf32>
    %c792_191 = arith.constant 792 : index
    %c0_192 = arith.constant 0 : index
    %195 = vector.load %arg2[%c792_191, %c0_192] : memref<848x128xf32, #tpu.memory_space<vmem>>, vector<1x112xf32>
    %196 = vector.broadcast %195 : vector<1x112xf32> to vector<14x112xf32>
    %197 = arith.addf %194, %196 : vector<14x112xf32>
    %cst_193 = arith.constant 0.000000e+00 : f32
    %198 = vector.broadcast %cst_193 : f32 to vector<14x112xf32>
    %199 = arith.maximumf %197, %198 : vector<14x112xf32>
    %c544_194 = arith.constant 544 : index
    %c0_195 = arith.constant 0 : index
    %200 = vector.load %arg2[%c544_194, %c0_195] : memref<848x128xf32, #tpu.memory_space<vmem>>, vector<7x14xf32>
    %cst_196 = arith.constant dense<0.000000e+00> : vector<7x112xf32>
    %201 = tpu.matmul %200, %199, %cst_196 {dimension_numbers = #tpu.dot_dimension_numbers<[1], [0], [0], [1], [0, 0, 1, 1], [], []>} : vector<7x14xf32>, vector<14x112xf32>, vector<7x112xf32> -> vector<7x112xf32>
    %c552_197 = arith.constant 552 : index
    %c0_198 = arith.constant 0 : index
    %202 = vector.load %arg2[%c552_197, %c0_198] : memref<848x128xf32, #tpu.memory_space<vmem>>, vector<7x14xf32>
    %cst_199 = arith.constant dense<0.000000e+00> : vector<7x112xf32>
    %203 = tpu.matmul %202, %199, %cst_199 {dimension_numbers = #tpu.dot_dimension_numbers<[1], [0], [0], [1], [0, 0, 1, 1], [], []>} : vector<7x14xf32>, vector<14x112xf32>, vector<7x112xf32> -> vector<7x112xf32>
    %204 = arith.maximumf %201, %203 : vector<7x112xf32>
    %c560_200 = arith.constant 560 : index
    %c0_201 = arith.constant 0 : index
    %205 = vector.load %arg2[%c560_200, %c0_201] : memref<848x128xf32, #tpu.memory_space<vmem>>, vector<112x56xf32>
    %cst_202 = arith.constant dense<0.000000e+00> : vector<7x56xf32>
    %206 = tpu.matmul %204, %205, %cst_202 {dimension_numbers = #tpu.dot_dimension_numbers<[1], [0], [0], [1], [0, 0, 1, 1], [], []>} : vector<7x112xf32>, vector<112x56xf32>, vector<7x56xf32> -> vector<7x56xf32>
    %c672_203 = arith.constant 672 : index
    %c0_204 = arith.constant 0 : index
    %207 = vector.load %arg2[%c672_203, %c0_204] : memref<848x128xf32, #tpu.memory_space<vmem>>, vector<112x56xf32>
    %cst_205 = arith.constant dense<0.000000e+00> : vector<7x56xf32>
    %208 = tpu.matmul %204, %207, %cst_205 {dimension_numbers = #tpu.dot_dimension_numbers<[1], [0], [0], [1], [0, 0, 1, 1], [], []>} : vector<7x112xf32>, vector<112x56xf32>, vector<7x56xf32> -> vector<7x56xf32>
    %209 = arith.maximumf %206, %208 : vector<7x56xf32>
    %c0_206 = arith.constant 0 : index
    %c0_207 = arith.constant 0 : index
    %210 = vector.load %arg3[%c0_206, %c0_207] : memref<56x224xf32, #tpu.memory_space<vmem>>, vector<56x224xf32>
    %cst_208 = arith.constant dense<0.000000e+00> : vector<7x224xf32>
    %211 = tpu.matmul %209, %210, %cst_208 {dimension_numbers = #tpu.dot_dimension_numbers<[1], [0], [0], [1], [0, 0, 1, 1], [], []>} : vector<7x56xf32>, vector<56x224xf32>, vector<7x224xf32> -> vector<7x224xf32>
    %c800_209 = arith.constant 800 : index
    %c0_210 = arith.constant 0 : index
    %212 = vector.load %arg2[%c800_209, %c0_210] : memref<848x128xf32, #tpu.memory_space<vmem>>, vector<1x32xf32>
    %213 = vector.extract_strided_slice %211 {offsets = [0, 0], sizes = [1, 32], strides = [1, 1]} : vector<7x224xf32> to vector<1x32xf32>
    %214 = arith.addf %212, %213 : vector<1x32xf32>
    %215 = vector.extract_strided_slice %211 {offsets = [1, 32], sizes = [1, 32], strides = [1, 1]} : vector<7x224xf32> to vector<1x32xf32>
    %216 = arith.addf %214, %215 : vector<1x32xf32>
    %217 = vector.extract_strided_slice %211 {offsets = [2, 64], sizes = [1, 32], strides = [1, 1]} : vector<7x224xf32> to vector<1x32xf32>
    %218 = arith.addf %216, %217 : vector<1x32xf32>
    %219 = vector.extract_strided_slice %211 {offsets = [3, 96], sizes = [1, 32], strides = [1, 1]} : vector<7x224xf32> to vector<1x32xf32>
    %220 = arith.addf %218, %219 : vector<1x32xf32>
    %221 = vector.extract_strided_slice %211 {offsets = [4, 128], sizes = [1, 32], strides = [1, 1]} : vector<7x224xf32> to vector<1x32xf32>
    %222 = arith.addf %220, %221 : vector<1x32xf32>
    %223 = vector.extract_strided_slice %211 {offsets = [5, 160], sizes = [1, 32], strides = [1, 1]} : vector<7x224xf32> to vector<1x32xf32>
    %224 = arith.addf %222, %223 : vector<1x32xf32>
    %225 = vector.extract_strided_slice %211 {offsets = [6, 192], sizes = [1, 32], strides = [1, 1]} : vector<7x224xf32> to vector<1x32xf32>
    %226 = arith.addf %224, %225 : vector<1x32xf32>
    %cst_211 = arith.constant 0.000000e+00 : f32
    %227 = vector.broadcast %cst_211 : f32 to vector<1x32xf32>
    %228 = arith.maximumf %226, %227 : vector<1x32xf32>
    %c2_212 = arith.constant 2 : index
    %c0_213 = arith.constant 0 : index
    %229 = vector.load %arg7[%c2_212, %c0_213] : memref<4x32xf32, #tpu.memory_space<vmem>>, vector<1x32xf32>
    tpu.vector_store %arg7[%c2_212, %c0_213], %228 {strides = array<i32>} : memref<4x32xf32, #tpu.memory_space<vmem>>, vector<1x32xf32>,
    %c0_214 = arith.constant 0 : index
    %c3 = arith.constant 3 : index
    %c0_215 = arith.constant 0 : index
    %c0_216 = arith.constant 0 : index
    %c0_217 = arith.constant 0 : index
    %230 = vector.load %arg1[%c0_214, %c3, %c0_215, %c0_216, %c0_217] : memref<1x4x1x28x28xf32, #tpu.memory_space<vmem>>, vector<1x1x1x28x28xf32>
    %231 = vector.shape_cast %230 : vector<1x1x1x28x28xf32> to vector<28x28xf32>
    %c1_218 = arith.constant 1 : index
    %c0_219 = arith.constant 0 : index
    %232 = vector.load %arg5[%c1_218, %c0_219] : memref<30x28xf32, #tpu.memory_space<vmem>>, vector<28x28xf32>
    tpu.vector_store %arg5[%c1_218, %c0_219], %231 {strides = array<i32>} : memref<30x28xf32, #tpu.memory_space<vmem>>, vector<28x28xf32>,
    %c0_220 = arith.constant 0 : index
    %c0_221 = arith.constant 0 : index
    %233 = vector.load %arg5[%c0_220, %c0_221] : memref<30x28xf32, #tpu.memory_space<vmem>>, vector<28x28xf32>
    %c0_222 = arith.constant 0 : index
    %c0_223 = arith.constant 0 : index
    %234 = vector.load %arg2[%c0_222, %c0_223] : memref<848x128xf32, #tpu.memory_space<vmem>>, vector<28x112xf32>
    %cst_224 = arith.constant dense<0.000000e+00> : vector<28x112xf32>
    %235 = tpu.matmul %233, %234, %cst_224 {dimension_numbers = #tpu.dot_dimension_numbers<[1], [0], [0], [1], [0, 0, 1, 1], [], []>} : vector<28x28xf32>, vector<28x112xf32>, vector<28x112xf32> -> vector<28x112xf32>
    %c1_225 = arith.constant 1 : index
    %c0_226 = arith.constant 0 : index
    %236 = vector.load %arg5[%c1_225, %c0_226] : memref<30x28xf32, #tpu.memory_space<vmem>>, vector<28x28xf32>
    %c32_227 = arith.constant 32 : index
    %c0_228 = arith.constant 0 : index
    %237 = vector.load %arg2[%c32_227, %c0_228] : memref<848x128xf32, #tpu.memory_space<vmem>>, vector<28x112xf32>
    %cst_229 = arith.constant dense<0.000000e+00> : vector<28x112xf32>
    %238 = tpu.matmul %236, %237, %cst_229 {dimension_numbers = #tpu.dot_dimension_numbers<[1], [0], [0], [1], [0, 0, 1, 1], [], []>} : vector<28x28xf32>, vector<28x112xf32>, vector<28x112xf32> -> vector<28x112xf32>
    %239 = arith.addf %235, %238 : vector<28x112xf32>
    %c2_230 = arith.constant 2 : index
    %c0_231 = arith.constant 0 : index
    %240 = vector.load %arg5[%c2_230, %c0_231] : memref<30x28xf32, #tpu.memory_space<vmem>>, vector<28x28xf32>
    %c64_232 = arith.constant 64 : index
    %c0_233 = arith.constant 0 : index
    %241 = vector.load %arg2[%c64_232, %c0_233] : memref<848x128xf32, #tpu.memory_space<vmem>>, vector<28x112xf32>
    %cst_234 = arith.constant dense<0.000000e+00> : vector<28x112xf32>
    %242 = tpu.matmul %240, %241, %cst_234 {dimension_numbers = #tpu.dot_dimension_numbers<[1], [0], [0], [1], [0, 0, 1, 1], [], []>} : vector<28x28xf32>, vector<28x112xf32>, vector<28x112xf32> -> vector<28x112xf32>
    %243 = arith.addf %239, %242 : vector<28x112xf32>
    %c784_235 = arith.constant 784 : index
    %c0_236 = arith.constant 0 : index
    %244 = vector.load %arg2[%c784_235, %c0_236] : memref<848x128xf32, #tpu.memory_space<vmem>>, vector<1x112xf32>
    %245 = vector.broadcast %244 : vector<1x112xf32> to vector<28x112xf32>
    %246 = arith.addf %243, %245 : vector<28x112xf32>
    %cst_237 = arith.constant 0.000000e+00 : f32
    %247 = vector.broadcast %cst_237 : f32 to vector<28x112xf32>
    %248 = arith.maximumf %246, %247 : vector<28x112xf32>
    %c288_238 = arith.constant 288 : index
    %c0_239 = arith.constant 0 : index
    %249 = vector.load %arg2[%c288_238, %c0_239] : memref<848x128xf32, #tpu.memory_space<vmem>>, vector<16x28xf32>
    %cst_240 = arith.constant dense<0.000000e+00> : vector<16x112xf32>
    %250 = tpu.matmul %249, %248, %cst_240 {dimension_numbers = #tpu.dot_dimension_numbers<[1], [0], [0], [1], [0, 0, 1, 1], [], []>} : vector<16x28xf32>, vector<28x112xf32>, vector<16x112xf32> -> vector<16x112xf32>
    %c304_241 = arith.constant 304 : index
    %c0_242 = arith.constant 0 : index
    %251 = vector.load %arg2[%c304_241, %c0_242] : memref<848x128xf32, #tpu.memory_space<vmem>>, vector<16x28xf32>
    %cst_243 = arith.constant dense<0.000000e+00> : vector<16x112xf32>
    %252 = tpu.matmul %251, %248, %cst_243 {dimension_numbers = #tpu.dot_dimension_numbers<[1], [0], [0], [1], [0, 0, 1, 1], [], []>} : vector<16x28xf32>, vector<28x112xf32>, vector<16x112xf32> -> vector<16x112xf32>
    %253 = arith.maximumf %250, %252 : vector<16x112xf32>
    %c320_244 = arith.constant 320 : index
    %c0_245 = arith.constant 0 : index
    %254 = vector.load %arg2[%c320_244, %c0_245] : memref<848x128xf32, #tpu.memory_space<vmem>>, vector<112x64xf32>
    %cst_246 = arith.constant dense<0.000000e+00> : vector<16x64xf32>
    %255 = tpu.matmul %253, %254, %cst_246 {dimension_numbers = #tpu.dot_dimension_numbers<[1], [0], [0], [1], [0, 0, 1, 1], [], []>} : vector<16x112xf32>, vector<112x64xf32>, vector<16x64xf32> -> vector<16x64xf32>
    %c432_247 = arith.constant 432 : index
    %c0_248 = arith.constant 0 : index
    %256 = vector.load %arg2[%c432_247, %c0_248] : memref<848x128xf32, #tpu.memory_space<vmem>>, vector<112x64xf32>
    %cst_249 = arith.constant dense<0.000000e+00> : vector<16x64xf32>
    %257 = tpu.matmul %253, %256, %cst_249 {dimension_numbers = #tpu.dot_dimension_numbers<[1], [0], [0], [1], [0, 0, 1, 1], [], []>} : vector<16x112xf32>, vector<112x64xf32>, vector<16x64xf32> -> vector<16x64xf32>
    %258 = arith.maximumf %255, %257 : vector<16x64xf32>
    %c0_250 = arith.constant 0 : index
    %c0_251 = arith.constant 0 : index
    %259 = vector.load %arg6[%c0_250, %c0_251] : memref<16x64xf32, #tpu.memory_space<vmem>>, vector<16x64xf32>
    tpu.vector_store %arg6[%c0_250, %c0_251], %258 {strides = array<i32>} : memref<16x64xf32, #tpu.memory_space<vmem>>, vector<16x64xf32>,
    %c0_252 = arith.constant 0 : index
    %c0_253 = arith.constant 0 : index
    %260 = vector.load %arg6[%c0_252, %c0_253] : memref<16x64xf32, #tpu.memory_space<vmem>>, vector<14x64xf32>
    %c96_254 = arith.constant 96 : index
    %c0_255 = arith.constant 0 : index
    %261 = vector.load %arg2[%c96_254, %c0_255] : memref<848x128xf32, #tpu.memory_space<vmem>>, vector<64x112xf32>
    %cst_256 = arith.constant dense<0.000000e+00> : vector<14x112xf32>
    %262 = tpu.matmul %260, %261, %cst_256 {dimension_numbers = #tpu.dot_dimension_numbers<[1], [0], [0], [1], [0, 0, 1, 1], [], []>} : vector<14x64xf32>, vector<64x112xf32>, vector<14x112xf32> -> vector<14x112xf32>
    %c1_257 = arith.constant 1 : index
    %c0_258 = arith.constant 0 : index
    %263 = vector.load %arg6[%c1_257, %c0_258] : memref<16x64xf32, #tpu.memory_space<vmem>>, vector<14x64xf32>
    %c160_259 = arith.constant 160 : index
    %c0_260 = arith.constant 0 : index
    %264 = vector.load %arg2[%c160_259, %c0_260] : memref<848x128xf32, #tpu.memory_space<vmem>>, vector<64x112xf32>
    %cst_261 = arith.constant dense<0.000000e+00> : vector<14x112xf32>
    %265 = tpu.matmul %263, %264, %cst_261 {dimension_numbers = #tpu.dot_dimension_numbers<[1], [0], [0], [1], [0, 0, 1, 1], [], []>} : vector<14x64xf32>, vector<64x112xf32>, vector<14x112xf32> -> vector<14x112xf32>
    %266 = arith.addf %262, %265 : vector<14x112xf32>
    %c2_262 = arith.constant 2 : index
    %c0_263 = arith.constant 0 : index
    %267 = vector.load %arg6[%c2_262, %c0_263] : memref<16x64xf32, #tpu.memory_space<vmem>>, vector<14x64xf32>
    %c224_264 = arith.constant 224 : index
    %c0_265 = arith.constant 0 : index
    %268 = vector.load %arg2[%c224_264, %c0_265] : memref<848x128xf32, #tpu.memory_space<vmem>>, vector<64x112xf32>
    %cst_266 = arith.constant dense<0.000000e+00> : vector<14x112xf32>
    %269 = tpu.matmul %267, %268, %cst_266 {dimension_numbers = #tpu.dot_dimension_numbers<[1], [0], [0], [1], [0, 0, 1, 1], [], []>} : vector<14x64xf32>, vector<64x112xf32>, vector<14x112xf32> -> vector<14x112xf32>
    %270 = arith.addf %266, %269 : vector<14x112xf32>
    %c792_267 = arith.constant 792 : index
    %c0_268 = arith.constant 0 : index
    %271 = vector.load %arg2[%c792_267, %c0_268] : memref<848x128xf32, #tpu.memory_space<vmem>>, vector<1x112xf32>
    %272 = vector.broadcast %271 : vector<1x112xf32> to vector<14x112xf32>
    %273 = arith.addf %270, %272 : vector<14x112xf32>
    %cst_269 = arith.constant 0.000000e+00 : f32
    %274 = vector.broadcast %cst_269 : f32 to vector<14x112xf32>
    %275 = arith.maximumf %273, %274 : vector<14x112xf32>
    %c544_270 = arith.constant 544 : index
    %c0_271 = arith.constant 0 : index
    %276 = vector.load %arg2[%c544_270, %c0_271] : memref<848x128xf32, #tpu.memory_space<vmem>>, vector<7x14xf32>
    %cst_272 = arith.constant dense<0.000000e+00> : vector<7x112xf32>
    %277 = tpu.matmul %276, %275, %cst_272 {dimension_numbers = #tpu.dot_dimension_numbers<[1], [0], [0], [1], [0, 0, 1, 1], [], []>} : vector<7x14xf32>, vector<14x112xf32>, vector<7x112xf32> -> vector<7x112xf32>
    %c552_273 = arith.constant 552 : index
    %c0_274 = arith.constant 0 : index
    %278 = vector.load %arg2[%c552_273, %c0_274] : memref<848x128xf32, #tpu.memory_space<vmem>>, vector<7x14xf32>
    %cst_275 = arith.constant dense<0.000000e+00> : vector<7x112xf32>
    %279 = tpu.matmul %278, %275, %cst_275 {dimension_numbers = #tpu.dot_dimension_numbers<[1], [0], [0], [1], [0, 0, 1, 1], [], []>} : vector<7x14xf32>, vector<14x112xf32>, vector<7x112xf32> -> vector<7x112xf32>
    %280 = arith.maximumf %277, %279 : vector<7x112xf32>
    %c560_276 = arith.constant 560 : index
    %c0_277 = arith.constant 0 : index
    %281 = vector.load %arg2[%c560_276, %c0_277] : memref<848x128xf32, #tpu.memory_space<vmem>>, vector<112x56xf32>
    %cst_278 = arith.constant dense<0.000000e+00> : vector<7x56xf32>
    %282 = tpu.matmul %280, %281, %cst_278 {dimension_numbers = #tpu.dot_dimension_numbers<[1], [0], [0], [1], [0, 0, 1, 1], [], []>} : vector<7x112xf32>, vector<112x56xf32>, vector<7x56xf32> -> vector<7x56xf32>
    %c672_279 = arith.constant 672 : index
    %c0_280 = arith.constant 0 : index
    %283 = vector.load %arg2[%c672_279, %c0_280] : memref<848x128xf32, #tpu.memory_space<vmem>>, vector<112x56xf32>
    %cst_281 = arith.constant dense<0.000000e+00> : vector<7x56xf32>
    %284 = tpu.matmul %280, %283, %cst_281 {dimension_numbers = #tpu.dot_dimension_numbers<[1], [0], [0], [1], [0, 0, 1, 1], [], []>} : vector<7x112xf32>, vector<112x56xf32>, vector<7x56xf32> -> vector<7x56xf32>
    %285 = arith.maximumf %282, %284 : vector<7x56xf32>
    %c0_282 = arith.constant 0 : index
    %c0_283 = arith.constant 0 : index
    %286 = vector.load %arg3[%c0_282, %c0_283] : memref<56x224xf32, #tpu.memory_space<vmem>>, vector<56x224xf32>
    %cst_284 = arith.constant dense<0.000000e+00> : vector<7x224xf32>
    %287 = tpu.matmul %285, %286, %cst_284 {dimension_numbers = #tpu.dot_dimension_numbers<[1], [0], [0], [1], [0, 0, 1, 1], [], []>} : vector<7x56xf32>, vector<56x224xf32>, vector<7x224xf32> -> vector<7x224xf32>
    %c800_285 = arith.constant 800 : index
    %c0_286 = arith.constant 0 : index
    %288 = vector.load %arg2[%c800_285, %c0_286] : memref<848x128xf32, #tpu.memory_space<vmem>>, vector<1x32xf32>
    %289 = vector.extract_strided_slice %287 {offsets = [0, 0], sizes = [1, 32], strides = [1, 1]} : vector<7x224xf32> to vector<1x32xf32>
    %290 = arith.addf %288, %289 : vector<1x32xf32>
    %291 = vector.extract_strided_slice %287 {offsets = [1, 32], sizes = [1, 32], strides = [1, 1]} : vector<7x224xf32> to vector<1x32xf32>
    %292 = arith.addf %290, %291 : vector<1x32xf32>
    %293 = vector.extract_strided_slice %287 {offsets = [2, 64], sizes = [1, 32], strides = [1, 1]} : vector<7x224xf32> to vector<1x32xf32>
    %294 = arith.addf %292, %293 : vector<1x32xf32>
    %295 = vector.extract_strided_slice %287 {offsets = [3, 96], sizes = [1, 32], strides = [1, 1]} : vector<7x224xf32> to vector<1x32xf32>
    %296 = arith.addf %294, %295 : vector<1x32xf32>
    %297 = vector.extract_strided_slice %287 {offsets = [4, 128], sizes = [1, 32], strides = [1, 1]} : vector<7x224xf32> to vector<1x32xf32>
    %298 = arith.addf %296, %297 : vector<1x32xf32>
    %299 = vector.extract_strided_slice %287 {offsets = [5, 160], sizes = [1, 32], strides = [1, 1]} : vector<7x224xf32> to vector<1x32xf32>
    %300 = arith.addf %298, %299 : vector<1x32xf32>
    %301 = vector.extract_strided_slice %287 {offsets = [6, 192], sizes = [1, 32], strides = [1, 1]} : vector<7x224xf32> to vector<1x32xf32>
    %302 = arith.addf %300, %301 : vector<1x32xf32>
    %cst_287 = arith.constant 0.000000e+00 : f32
    %303 = vector.broadcast %cst_287 : f32 to vector<1x32xf32>
    %304 = arith.maximumf %302, %303 : vector<1x32xf32>
    %c3_288 = arith.constant 3 : index
    %c0_289 = arith.constant 0 : index
    %305 = vector.load %arg7[%c3_288, %c0_289] : memref<4x32xf32, #tpu.memory_space<vmem>>, vector<1x32xf32>
    tpu.vector_store %arg7[%c3_288, %c0_289], %304 {strides = array<i32>} : memref<4x32xf32, #tpu.memory_space<vmem>>, vector<1x32xf32>,
    %c0_290 = arith.constant 0 : index
    %c0_291 = arith.constant 0 : index
    %306 = vector.load %arg7[%c0_290, %c0_291] : memref<4x32xf32, #tpu.memory_space<vmem>>, vector<4x32xf32>
    %c808 = arith.constant 808 : index
    %c0_292 = arith.constant 0 : index
    %307 = vector.load %arg2[%c808, %c0_292] : memref<848x128xf32, #tpu.memory_space<vmem>>, vector<32x128xf32>
    %cst_293 = arith.constant dense<0.000000e+00> : vector<4x128xf32>
    %308 = tpu.matmul %306, %307, %cst_293 {dimension_numbers = #tpu.dot_dimension_numbers<[1], [0], [0], [1], [0, 0, 1, 1], [], []>} : vector<4x32xf32>, vector<32x128xf32>, vector<4x128xf32> -> vector<4x128xf32>
    %c840 = arith.constant 840 : index
    %c0_294 = arith.constant 0 : index
    %309 = vector.load %arg2[%c840, %c0_294] : memref<848x128xf32, #tpu.memory_space<vmem>>, vector<1x128xf32>
    %310 = vector.broadcast %309 : vector<1x128xf32> to vector<4x128xf32>
    %311 = arith.addf %308, %310 : vector<4x128xf32>
    %c0_295 = arith.constant 0 : index
    %c0_296 = arith.constant 0 : index
    %c0_297 = arith.constant 0 : index
    %312 = vector.load %arg4[%c0_295, %c0_296, %c0_297] : memref<1x4x128xf32, #tpu.memory_space<vmem>>, vector<1x4x128xf32>
    %313 = vector.shape_cast %312 : vector<1x4x128xf32> to vector<4x128xf32>
    %314 = vector.shape_cast %311 : vector<4x128xf32> to vector<1x4x128xf32>
    tpu.vector_store %arg4[%c0_295, %c0_296, %c0_297], %314 {strides = array<i32>} : memref<1x4x128xf32, #tpu.memory_space<vmem>>, vector<1x4x128xf32>,
    return
  }
  func.func @transform_0(%arg0: i32) -> (i32, i32, i32, i32, i32) {
    %c0_i32 = arith.constant 0 : i32
    %c0_i32_0 = arith.constant 0 : i32
    %c0_i32_1 = arith.constant 0 : i32
    %c0_i32_2 = arith.constant 0 : i32
    %c0_i32_3 = arith.constant 0 : i32
    return %arg0, %c0_i32, %c0_i32_0, %c0_i32_1, %c0_i32_2 : i32, i32, i32, i32, i32
  }
  func.func @transform_1(%arg0: i32) -> (i32, i32) {
    %c0_i32 = arith.constant 0 : i32
    %c0_i32_0 = arith.constant 0 : i32
    %c0_i32_1 = arith.constant 0 : i32
    return %c0_i32, %c0_i32_0 : i32, i32
  }
  func.func @transform_2(%arg0: i32) -> (i32, i32) {
    %c0_i32 = arith.constant 0 : i32
    %c0_i32_0 = arith.constant 0 : i32
    %c0_i32_1 = arith.constant 0 : i32
    return %c0_i32, %c0_i32_0 : i32, i32
  }
  func.func @transform_3(%arg0: i32) -> (i32, i32, i32) {
    %c0_i32 = arith.constant 0 : i32
    %c0_i32_0 = arith.constant 0 : i32
    %c0_i32_1 = arith.constant 0 : i32
    return %arg0, %c0_i32, %c0_i32_0 : i32, i32, i32
  }
}

</mosaic_0001>

<bundles_post_ra>
// kernel: fwd.1
= control target key start
LH: loop header
LB: loop body
LE: loop exit
PB: predicated region body
PF: predicated region fallthrough
CT: control target
= control target key end

     0   :  { %8 = vsyncpa [#allocation6], 0  ;;  %s10425_s0 = inlined_call_operand.vmem [shape: f32[2,4,1,28,28], index: 0, kind: input, shape index: {}]   ;;  %s10426_s1 = inlined_call_operand.vmem [shape: f32[848,128], index: 1, kind: input, shape index: {}]   ;;  %s10427_s2 = inlined_call_operand.hbm [shape: f32[56,224], index: 2, kind: input, shape index: {}]   ;;  %s10428_s3 = inlined_call_operand.hbm [shape: f32[2,4,128], index: 3, kind: output, shape index: {}]  }
   0x1   :  { %9 = vsyncpa [#allocation7], 0 }
   0x2   :  { %11 = vsyncpa [#allocation7 + $0x1], 0  ;;  %s8077_s12 = smov 0   ;;  %s8079_s13 = smov 0  }
   0x3   :  { %s8081_s14 = smov 0   ;;  %s8083_s15 = smov 0  }
   0x4 LB: > { %s8098_s16 = sadd.s32 4294967295, %s8046_s15   ;;  %s6123_s17 = sadd.s32 4294967294, %s8046_s15   ;;  %s8046_s15 = sphi %s8083_s15, %s10840_s15   ;;  %s8042_s14 = sphi %s8081_s14, %s10839_s14   ;;  %s8038_s13 = sphi %s8079_s13, %s10838_s13   ;;  %s8034_s12 = sphi %s8077_s12, %s10837_s12  }
   0x5   : > { %s8102_s18 = sadd.s32 1, %s8046_s15   ;;  %s92_s19 = sadd.s32 1, %s8042_s14 }
   0x6   : > { %s89_s20 = ssub.s32 %s8046_s15, %s8102_s18  ;;  %p102_p0 = scmp.ne.s32.totalorder %s8042_s14, %s8038_s13 }
   0x7   : > { %p90_p1 = scmp.eq.s32.totalorder %s89_s20, 0  ;;  %p103_p2 = scmp.eq.s32.totalorder %s8098_s16, 1 }
   0x8   : > { %p108_p3 = scmp.ne.s32.totalorder %s8038_s13, %s8034_s12  ;;  %p109_p4 = scmp.eq.s32.totalorder %s6123_s17, 1 }
   0x9   : > { %s8113_s21 = scalar_select %p90_p1, %s8042_s14, %s92_s19  }
   0xa   : > { %p8115_p5 = por %p103_p2, %p102_p0  ;;  %p8119_p6 = por %p109_p4, %p108_p3 }
   0xb   : > { %p6124_p7 = scmp.ge.s32.totalorder %s8046_s15, 1  ;;  %p116_p8 = scmp.lt.s32.totalorder %s8046_s15, 3 }
   0xc   : > { %s10591_s23 = scalar_select %p8119_p6, 1, 0 }
   0xd   : > { %p7913_p9 = scmp.eq.s32.totalorder %s8098_s16, 0  ;;  %p8126_p10 = pnand %p6124_p7, %p116_p8 }
   0xe   : > { %s8048_s25 = smov [#allocation5]  }
   0xf   : > { %s131_s26 = sshll.u32 %s8048_s25, 4  ;;  %p7905_p11 = pneg %p8126_p10  ;;  %s132_s26 = int_to_ptr.vmem [resolvable:$true] %s131_s26 }
  0x10   : > { %s7967_s27 = scalar_lea.vmem %s132_s26, 1792  ;;  %p7975_p3 = scmp.lt.s32.totalorder %s132_s26, %s132_s26 }
  0x11   : > { %p7906_p12 = pnand %p7913_p9, %p7905_p11  ;;  %p7968_p0 = scmp.ne.s32.totalorder %s132_s26, %s7967_s27 }
  0x12   : > { %p7976_p4 = scmp.lt.s32.totalorder %s7967_s27, %s7967_s27 }
  0x13   : > { %p7958_p13 = pneg %p7906_p12 }
  0x14   : > { %p7977_p6 = por %p7976_p4, %p7975_p3 }
  0x15   : > { %p7970_p1 = pnand %p7968_p0, %p7958_p13 }
  0x17   : > { %p7971_p2 = pneg %p7970_p1 }
  0x19   : > { %p7978_p7 = pnand %p7977_p6, %p7971_p2 }
  0x1b   : > { %7981 = shalt.err (!%p7978_p7)
}
  0x1c   : > { %s8049_s28 = smov 256   ;;  %s8050_s29 = smov 16  }
  0x1d   : > { %7908 = dma.hbm_to_vmem [thread:$0]  (!%p7906_p12), %s10427_s2, 1792, %s132_s26, [#allocation6], %s8049_s28, %s8049_s28, %s8050_s29  }
  0x1e   : > { %155 = sbr.rel (%p8126_p10) target bundleno = 5540 (0x15a4), region = 32 }
  0x23   : > { %8025 = dma.done.wait (%p7913_p9), [#allocation6], 1792  }
  0x24   : > { %8027 = vsyncadd (%p7913_p9), [#allocation6], 4294965504  ;;  %p179_p8 = scmp.lt.s32.totalorder %s8098_s16, 1  ;;  %vm184_vm0 = vcmask 228352   ;;  %v10441_v0 = vmov 0.0   ;;  %vm188_vm1 = vcmask 226304  }
  0x25   : > { %185 = vst.msk [vmem:[#allocation2] sm:$0xff] %vm184_vm0, %v10441_v0  ;;  %186 = vst.msk [vmem:[#allocation2 + $0x8] sm:$0xff] %vm184_vm0, %v10441_v0  ;;  %vm227_vm2 = vcmask 1043456   ;;  %v214_v1 = vld [vmem:[%s10426_s1 + $0x38] sm:$0xf]  ;;  %v8166_v3 = vld [vmem:[%s10426_s1 + $0x30] sm:$0xff] }
  0x26   : > { %187 = vst.msk [vmem:[#allocation2 + $0x10] sm:$0xff] %vm184_vm0, %v10441_v0  ;;  %s180_s5 = scalar_select %p179_p8, %s8098_s16, 1  ;;  %v206_v2 = vld [vmem:[%s10426_s1 + $0x18] sm:$0xf]  ;;  %6852 = vmatprep.subr.msk.mxu0 %vm227_vm2, %v214_v1  ;;  %v8173_v4 = vld [vmem:[%s10426_s1 + $0x10] sm:$0xff]  ;;  %v8180_v5 = vld [vmem:[%s10426_s1 + $0x28] sm:$0xff] }
  0x27   : > { %189 = vst.msk [vmem:[#allocation2 + $0x18] sm:$0x3f] %vm188_vm1, %v10441_v0  ;;  %6866 = vmatprep.subr.msk.mxu1 %vm227_vm2, %v206_v2  ;;  %6853 = vmatpush3.msk.msra.mxu0 %vm227_vm2, %v214_v1  ;;  %v8185_v6 = vld [vmem:[%s10426_s1 + $0x8] sm:$0xff]  ;;  %vm197_vm3 = vcmask 224256   ;;  %v8193_v8 = vld [vmem:[%s10426_s1 + $0x20] sm:$0xff]  ;;  %v8224_v14 = vld [vmem:[%s10426_s1 + $0x50] sm:$0xff] }
  0x28   : > { %s6310_s6 = sshll.u32 %s180_s5, 7  ;;  %6867 = vmatpush3.msk.msra.mxu1 %vm227_vm2, %v206_v2  ;;  %6854 = vmatprep.subr.mxu0 %v8166_v3  ;;  %v8202_v10 = vld [vmem:[%s10426_s1] sm:$0xff]  ;;  %v423_v13 = vld [vmem:[%s10426_s1 + $0x58] sm:$0xf]  ;;  %v8242_v30 = vld [vmem:[%s10426_s1 + $0x48] sm:$0xff]  ;;  %vm726_vm4 = vcmask 916480  }
  0x29   : > { %s8155_s9 = scalar_lea.vmem %s10425_s0, %s6310_s6  ;;  %6868 = vmatprep.subr.mxu1 %v8173_v4  ;;  %6855 = vmatpush3.msra.mxu0 %v8166_v3  ;;  %v8253_v32 = vld [vmem:[%s10426_s1 + $0x40] sm:$0xff]  ;;  %v8271_v34 = vld [vmem:[%s10426_s1 + $0x130] sm:$0xff]  ;;  %v8293_v1 = vld [vmem:[%s10426_s1 + $0x128] sm:$0xff]  ;;  %vm899_vm5 = vcmask 523264   ;;  %vm8052_vm6 = vmmov 0   ;;  %vm1191_vm7 = vcmask 1045504  }
  0x2a   : > { %v190_v7 = vld [vmem:[%s8155_s9] sm:$0xff]  ;;  %v191_v9 = vld [vmem:[%s8155_s9 + $0x8] sm:$0xff]  ;;  %6869 = vmatpush3.msra.mxu1 %v8173_v4  ;;  %v192_v11 = vld [vmem:[%s8155_s9 + $0x10] sm:$0xff]  ;;  %6856 = vmatprep.subr.mxu0 %v8180_v5  ;;  %vm1187_vm8 = vcmask 113664   ;;  %vm1526_vm9 = vcmask 457728   ;;  %s8053_s17 = smov 96  }
  0x2b   : > { %194 = vst.msk [vmem:[#allocation2 + $0x1] sm:$0xff] %vm184_vm0, %v190_v7  ;;  %195 = vst.msk [vmem:[#allocation2 + $0x9] sm:$0xff] %vm184_vm0, %v191_v9  ;;  %v193_v12 = vld [vmem:[%s8155_s9 + $0x18] sm:$0xf]  ;;  %6870 = vmatprep.subr.mxu1 %v8185_v6  ;;  %6857 = vmatpush3.msra.mxu0 %v8180_v5  ;;  %v6172_v15 = vld [vmem:[%s8155_s9 + $0x20] sm:$0xff]  ;;  %s8054_s19 = smov 64  }
  0x2c   : > { %196 = vst.msk [vmem:[#allocation2 + $0x11] sm:$0xff] %vm184_vm0, %v192_v11  ;;  %6871 = vmatpush3.msra.mxu1 %v8185_v6  ;;  %6858 = vmatprep.subr.mxu0 %v8193_v8  ;;  %v6173_v16 = vld [vmem:[%s8155_s9 + $0x28] sm:$0xff]  ;;  %v6174_v17 = vld [vmem:[%s8155_s9 + $0x30] sm:$0xff]  ;;  %v6175_v20 = vld [vmem:[%s8155_s9 + $0x38] sm:$0xf]  ;;  %s8055_s20 = smov 32  }
  0x2d   : > { %198 = vst.msk [vmem:[#allocation2 + $0x19] sm:$0xf] %vm197_vm3, %v193_v12  ;;  %6872 = vmatprep.subr.mxu1 %v8202_v10  ;;  %6859 = vmatpush3.msra.mxu0 %v8193_v8  ;;  %v8266_v33 = vld [vmem:[%s10426_s1 + $0x120] sm:$0xff]  ;;  %v8280_v52 = vld [vmem:[%s10426_s1 + $0x310] ss:$0 sm:$0xff]  ;;  %v8298_v2 = vld [vmem:[%s10426_s1 + $0x138] sm:$0xff] }
  0x2e   : > { %6873 = vmatpush3.msra.mxu1 %v8202_v10  ;;  %6880 = vmatprep.subr.msk.mxu0 %vm227_vm2, %v423_v13  ;;  %v8303_v7 = vld [vmem:[%s10426_s1 + $0x1a8] sm:$0xff]  ;;  %v8308_v9 = vld [vmem:[%s10426_s1 + $0x218] sm:$0xff]  ;;  %v8317_v11 = vld [vmem:[%s10426_s1 + $0x1a0] sm:$0xff]  ;;  %vm1634_vm10 = vcmask 253952   ;;  %vm5963_vm11 = vcmask 261120   ;;  %s6307_s29 = sshll.u32 %s8098_s16, 6 }
  0x2f   : > { %v8322_v12 = vld [vmem:[%s10426_s1 + $0x210] sm:$0xff]  ;;  %s10390_s7 = scalar_lea.hbm %s10428_s3, %s6307_s29  ;;  %s8056_s11 = smov [#allocation8]  }
  0x30   : > { %s7986_s16 = sshll.u32 %s8056_s11, 4  ;;  %s7987_s16 = int_to_ptr.vmem [resolvable:$false] %s7986_s16 }
  0x32   : > { %v207_v18 = vld [vmem:[#allocation2 + $0x1] sm:$0xff]  ;;  %v208_v21 = vld [vmem:[#allocation2 + $0x9] sm:$0xff] }
  0x33   : > { %v199_v19 = vld [vmem:[#allocation2] sm:$0xff]  ;;  %6860 = vmatprep.mubr.msk.f32.mxu0 %vm184_vm0, %v207_v18  ;;  %v200_v22 = vld [vmem:[#allocation2 + $0x8] sm:$0xff]  ;;  %v209_v24 = vld [vmem:[#allocation2 + $0x11] sm:$0xff] }
  0x34   : > { %6874 = vmatprep.mubr.msk.f32.mxu1 %vm184_vm0, %v199_v19  ;;  %v416_v23 = vld [vmem:[#allocation2 + $0x2] sm:$0xff]  ;;  %6861 = vmatmul.mubr.msk.f32.vlgmr.msra.gmra.mxu0 %vm184_vm0, %v208_v21  ;;  %v201_v25 = vld [vmem:[#allocation2 + $0x10] sm:$0xff]  ;;  %v210_v26 = vld [vmem:[#allocation2 + $0x19] sm:$0xf] }
  0x35   : > { %6875 = vmatmul.mubr.msk.f32.vlgmr.msra.gmra.mxu1 %vm184_vm0, %v200_v22  ;;  %1641 = vst.msk [vmem:[#allocation2 + $0x1] sm:$0xff] %vm184_vm0, %v6172_v15  ;;  %6881 = vmatpush3.msk.msra.mxu0 %vm227_vm2, %v423_v13  ;;  %v202_v27 = vld [vmem:[#allocation2 + $0x18] sm:$0xf]  ;;  %v417_v28 = vld [vmem:[#allocation2 + $0xa] sm:$0xff] }
  0x36   : > { %6863 = vmatprep.mubr.msk.f32.mxu0 %vm184_vm0, %v209_v24  ;;  %v418_v29 = vld [vmem:[#allocation2 + $0x12] sm:$0xff]  ;;  %6882 = vmatprep.subr.mxu0 %v8224_v14  ;;  %1642 = vst.msk [vmem:[#allocation2 + $0x9] sm:$0xff] %vm184_vm0, %v6173_v16  ;;  %v419_v31 = vld [vmem:[#allocation2 + $0x1a] sm:$0xf]  ;;  %v8336_v15 = vld [vmem:[%s10426_s1 + $0x208] sm:$0xff] }
  0x37   : > { %6877 = vmatprep.mubr.msk.f32.mxu1 %vm184_vm0, %v201_v25  ;;  %1643 = vst.msk [vmem:[#allocation2 + $0x11] sm:$0xff] %vm184_vm0, %v6174_v17  ;;  %6883 = vmatpush3.msra.mxu0 %v8224_v14  ;;  %v8331_v13 = vld [vmem:[%s10426_s1 + $0x198] sm:$0xff]  ;;  %v8345_v16 = vld [vmem:[%s10426_s1 + $0x190] sm:$0xff]  ;;  %v8350_v17 = vld [vmem:[%s10426_s1 + $0x200] sm:$0xff] }
  0x38   : > { %1644 = vst.msk [vmem:[#allocation2 + $0x19] sm:$0xf] %vm197_vm3, %v6175_v20  ;;  %6864 = vmatmul.mubr.msk.f32.gmra.mxu0 %vm184_vm0, %v210_v26  ;;  %6884 = vmatprep.subr.mxu0 %v8242_v30  ;;  %v8359_v18 = vld [vmem:[%s10426_s1 + $0x188] sm:$0xff]  ;;  %v8364_v19 = vld [vmem:[%s10426_s1 + $0x1f8] sm:$0xff]  ;;  %v8373_v20 = vld [vmem:[%s10426_s1 + $0x180] sm:$0xff] }
  0x39   : > { %6878 = vmatmul.mubr.msk.f32.gmra.mxu1 %vm184_vm0, %v202_v27  ;;  %6888 = vmatprep.mubr.msk.f32.mxu0 %vm184_vm0, %v416_v23  ;;  %v8378_v21 = vld [vmem:[%s10426_s1 + $0x1f0] sm:$0xff]  ;;  %v8387_v22 = vld [vmem:[%s10426_s1 + $0x178] sm:$0xff]  ;;  %v8392_v23 = vld [vmem:[%s10426_s1 + $0x1e8] sm:$0xff] }
  0x3a   : > { %6885 = vmatpush3.msra.mxu0 %v8242_v30  ;;  %6902 = vmatprep.mubr.msk.f32.mxu1 %vm184_vm0, %v8266_v33  ;;  %v8401_v24 = vld [vmem:[%s10426_s1 + $0x170] sm:$0xff]  ;;  %v8406_v25 = vld [vmem:[%s10426_s1 + $0x1e0] sm:$0xff]  ;;  %v8415_v26 = vld [vmem:[%s10426_s1 + $0x168] sm:$0xff] }
  0x3b   : > { %6886 = vmatprep.subr.mxu0 %v8253_v32  ;;  %v8420_v27 = vld [vmem:[%s10426_s1 + $0x1d8] sm:$0xff] }
  0x3c   : > { %6887 = vmatpush3.msra.mxu0 %v8253_v32 }
  0x3d   : > { %6889 = vmatmul.mubr.msk.f32.vlgmr.msra.gmra.mxu0 %vm184_vm0, %v417_v28  ;;  %v8429_v28 = vld [vmem:[%s10426_s1 + $0x160] sm:$0xff] }
  0x3e   : > { %6891 = vmatprep.mubr.msk.f32.mxu0 %vm184_vm0, %v418_v29  ;;  %v8434_v29 = vld [vmem:[%s10426_s1 + $0x1d0] sm:$0xff] }
  0x41   : > { %6892 = vmatmul.mubr.msk.f32.gmra.mxu0 %vm184_vm0, %v419_v31  ;;  %v8443_v31 = vld [vmem:[%s10426_s1 + $0x158] sm:$0xff] }
  0x42   : > { %6913 = vmatprep.mubr.msk.f32.mxu0 %vm184_vm0, %v8271_v34 }
  0xf4   : > { %v6862_v35 = vpop.f32.mrf.mxu0 }
  0xf5   : > { %v6876_v36 = vpop.f32.mrf.mxu1 }
  0xf6   : > { %v297_v37 = vpop.f32.mrf.mxu0  ;;  %v403_v45 = vadd.f32 %v6876_v36, %v6862_v35  ;;  %v8448_v35 = vld [vmem:[%s10426_s1 + $0x1c8] sm:$0xff]  ;;  %v8461_v36 = vld [vmem:[%s10426_s1 + $0x150] sm:$0xff] }
  0xf7   : > { %v397_v38 = vpop.f32.mrf.mxu1 }
  0xf8   : > { %v6865_v39 = vpop.f32.mrf.mxu0  ;;  %v398_v48 = vadd.f32 %v397_v38, %v297_v37  ;;  %v8466_v37 = vld [vmem:[%s10426_s1 + $0x1c0] sm:$0xff]  ;;  %v8475_v38 = vld [vmem:[%s10426_s1 + $0x148] sm:$0xff] }
  0xf9   : > { %v6879_v41 = vpop.f32.mrf.mxu1 }
  0xfa   : > { %v307_v40 = vpop.f32.mrf.mxu0  ;;  %v413_v46 = vadd.f32 %v6879_v41, %v6865_v39  ;;  %v8480_v39 = vld [vmem:[%s10426_s1 + $0x1b8] sm:$0xff]  ;;  %v8494_v41 = vld [vmem:[%s10426_s1 + $0x1b0] sm:$0xff] }
  0xfb   : > { %v407_v43 = vpop.f32.mrf.mxu1 }
  0xfc   : > { %v408_v49 = vadd.f32 %v407_v43, %v307_v40  ;;  %v8489_v40 = vld [vmem:[%s10426_s1 + $0x140] sm:$0xff]  ;;  %v8509_v43 = vld [vmem:[%s10426_s1 + $0x98] sm:$0xff] }
  0xfd   : > { %v6890_v42 = vpop.f32.mrf.mxu0 }
  0xfe   : > { %v525_v50 = vadd.f32 %v6890_v42, %v403_v45  ;;  %v8503_v42 = vld [vmem:[%s10426_s1 + $0xd8] sm:$0xff] }
  0xff   : > { %v505_v44 = vpop.f32.mrf.mxu0 }
 0x100   : > { %v524_v54 = vadd.f32 %v505_v44, %v398_v48  ;;  %v534_v57 = vadd.f32 %v8280_v52, %v525_v50  ;;  %v8517_v50 = vld [vmem:[%s10426_s1 + $0xd0] sm:$0xff] }
 0x101   : > { %v6893_v47 = vpop.f32.mrf.mxu0 }
 0x102   : > { %v527_v51 = vadd.f32 %v6893_v47, %v413_v46  ;;  %v533_v60 = vadd.f32 %v8280_v52, %v524_v54  ;;  %v538_v62 = vmax.f32 %v534_v57, 0.0  ;;  %v8541_v54 = vld [vmem:[%s10426_s1 + $0x88] sm:$0xff]  ;;  %v8562_v57 = vld [vmem:[%s10426_s1 + $0xb8] sm:$0xff] }
 0x103   : > { %v515_v53 = vpop.f32.mrf.mxu0  ;;  %10595 = vst [vmem:[#allocation13_spill] sm:$0xff] %v8562_v57 }
 0x104   : > { %v536_v55 = vadd.f32 %v8280_v52, %v527_v51  ;;  %v526_v56 = vadd.f32 %v515_v53, %v408_v49  ;;  %v537_v63 = vmax.f32 %v533_v60, 0.0  ;;  %v8528_v51 = vld [vmem:[%s10426_s1 + $0x90] sm:$0xff]  ;;  %v8534_v53 = vld [vmem:[%s10426_s1 + $0xc8] sm:$0xff] }
 0x105   : > { %v8579_v60 = vld [vmem:[%s10426_s1 + $0x70] sm:$0xff] }
 0x106   : > { %v540_v58 = vmax.f32 %v536_v55, 0.0  ;;  %v535_v59 = vadd.f32 %v8280_v52, %v526_v56  ;;  %v8548_v55 = vld [vmem:[%s10426_s1 + $0xc0] sm:$0xff]  ;;  %10598 = vst [vmem:[#allocation16_spill] sm:$0xff] %v8579_v60 }
 0x107   : > { %10593 = vst [vmem:[#allocation11_spill] sm:$0xff] %v8548_v55  ;;  %v8555_v56 = vld [vmem:[%s10426_s1 + $0x80] sm:$0xff] }
 0x108   : > { %v539_v61 = vmax.f32 %v535_v59, 0.0  ;;  %6894 = vmatprep.subr.msk.mxu1 %vm227_vm2, %v540_v58  ;;  %6905 = vmatprep.subr.msk.mxu0 %vm227_vm2, %v540_v58  ;;  %10594 = vst [vmem:[#allocation12_spill] sm:$0xff] %v8555_v56  ;;  %v8574_v59 = vld [vmem:[%s10426_s1 + $0xb0] sm:$0xff] }
 0x109   : > { %6895 = vmatpush3.msk.msra.mxu1 %vm227_vm2, %v540_v58  ;;  %6906 = vmatpush3.msk.msra.mxu0 %vm227_vm2, %v540_v58  ;;  %v8569_v58 = vld [vmem:[%s10426_s1 + $0x78] sm:$0xff]  ;;  %10597 = vst [vmem:[#allocation15_spill] sm:$0xff] %v8574_v59 }
 0x10a   : > { %6896 = vmatprep.subr.mxu1 %v539_v61  ;;  %6907 = vmatprep.subr.mxu0 %v539_v61  ;;  %10596 = vst [vmem:[#allocation14_spill] sm:$0xff] %v8569_v58 }
 0x10b   : > { %6897 = vmatpush3.msra.mxu1 %v539_v61  ;;  %6908 = vmatpush3.msra.mxu0 %v539_v61  ;;  %v8586_v61 = vld [vmem:[%s10426_s1 + $0xa8] sm:$0xff] }
 0x10c   : > { %6898 = vmatprep.subr.mxu1 %v538_v62  ;;  %6909 = vmatprep.subr.mxu0 %v538_v62  ;;  %10599 = vst [vmem:[#allocation17_spill] sm:$0xff] %v8586_v61 }
 0x10d   : > { %6899 = vmatpush3.msra.mxu1 %v538_v62  ;;  %6910 = vmatpush3.msra.mxu0 %v538_v62  ;;  %v8593_v62 = vld [vmem:[%s10426_s1 + $0x68] sm:$0xff] }
 0x10e   : > { %6900 = vmatprep.subr.mxu1 %v537_v63  ;;  %6911 = vmatprep.subr.mxu0 %v537_v63  ;;  %10600 = vst [vmem:[#allocation18_spill] sm:$0xff] %v8593_v62 }
 0x10f   : > { %6901 = vmatpush3.msra.mxu1 %v537_v63  ;;  %6912 = vmatpush3.msra.mxu0 %v537_v63  ;;  %v8600_v63 = vld [vmem:[%s10426_s1 + $0xa0] sm:$0xff] }
 0x110   : > { %6903 = vmatmul.mubr.msk.f32.vlgmr.msra.gmra.mxu1 %vm184_vm0, %v8293_v1  ;;  %6914 = vmatmul.mubr.msk.f32.vlgmr.msra.gmra.mxu0 %vm184_vm0, %v8298_v2  ;;  %10601 = vst [vmem:[#allocation19_spill] sm:$0xff] %v8600_v63 }
 0x111   : > { %6916 = vmatprep.subr.mxu1 %v8303_v7  ;;  %6947 = vmatprep.subr.mxu0 %v8308_v9 }
 0x112   : > { %6917 = vmatpush3.msra.mxu1 %v8303_v7  ;;  %6948 = vmatpush3.msra.mxu0 %v8308_v9 }
 0x113   : > { %6918 = vmatprep.subr.mxu1 %v8317_v11  ;;  %6949 = vmatprep.subr.mxu0 %v8322_v12 }
 0x114   : > { %6919 = vmatpush3.msra.mxu1 %v8317_v11  ;;  %6950 = vmatpush3.msra.mxu0 %v8322_v12 }
 0x115   : > { %6920 = vmatprep.subr.mxu1 %v8331_v13  ;;  %6951 = vmatprep.subr.mxu0 %v8336_v15 }
 0x116   : > { %6921 = vmatpush3.msra.mxu1 %v8331_v13  ;;  %6952 = vmatpush3.msra.mxu0 %v8336_v15 }
 0x117   : > { %6922 = vmatprep.subr.mxu1 %v8345_v16  ;;  %6953 = vmatprep.subr.mxu0 %v8350_v17 }
 0x118   : > { %6923 = vmatpush3.msra.mxu1 %v8345_v16  ;;  %6954 = vmatpush3.msra.mxu0 %v8350_v17 }
 0x119   : > { %6924 = vmatprep.subr.mxu1 %v8359_v18  ;;  %6955 = vmatprep.subr.mxu0 %v8364_v19 }
 0x11a   : > { %6925 = vmatpush3.msra.mxu1 %v8359_v18  ;;  %6956 = vmatpush3.msra.mxu0 %v8364_v19 }
 0x11b   : > { %6926 = vmatprep.subr.mxu1 %v8373_v20  ;;  %6957 = vmatprep.subr.mxu0 %v8378_v21 }
 0x11c   : > { %6927 = vmatpush3.msra.mxu1 %v8373_v20  ;;  %6958 = vmatpush3.msra.mxu0 %v8378_v21 }
 0x11d   : > { %6928 = vmatprep.subr.mxu1 %v8387_v22  ;;  %6959 = vmatprep.subr.mxu0 %v8392_v23 }
 0x11e   : > { %6929 = vmatpush3.msra.mxu1 %v8387_v22  ;;  %6960 = vmatpush3.msra.mxu0 %v8392_v23 }
 0x11f   : > { %6930 = vmatprep.subr.mxu1 %v8401_v24  ;;  %6961 = vmatprep.subr.mxu0 %v8406_v25 }
 0x120   : > { %6931 = vmatpush3.msra.mxu1 %v8401_v24  ;;  %6962 = vmatpush3.msra.mxu0 %v8406_v25 }
 0x121   : > { %6932 = vmatprep.subr.mxu1 %v8415_v26  ;;  %6963 = vmatprep.subr.mxu0 %v8420_v27 }
 0x122   : > { %6933 = vmatpush3.msra.mxu1 %v8415_v26  ;;  %6964 = vmatpush3.msra.mxu0 %v8420_v27 }
 0x123   : > { %6934 = vmatprep.subr.mxu1 %v8429_v28  ;;  %6965 = vmatprep.subr.mxu0 %v8434_v29 }
 0x124   : > { %6935 = vmatpush3.msra.mxu1 %v8429_v28  ;;  %6966 = vmatpush3.msra.mxu0 %v8434_v29 }
 0x125   : > { %6936 = vmatprep.subr.mxu1 %v8443_v31  ;;  %6967 = vmatprep.subr.mxu0 %v8448_v35 }
 0x126   : > { %6937 = vmatpush3.msra.mxu1 %v8443_v31  ;;  %6968 = vmatpush3.msra.mxu0 %v8448_v35 }
 0x127   : > { %6938 = vmatprep.subr.mxu1 %v8461_v36  ;;  %6969 = vmatprep.subr.mxu0 %v8466_v37 }
 0x128   : > { %6939 = vmatpush3.msra.mxu1 %v8461_v36  ;;  %6970 = vmatpush3.msra.mxu0 %v8466_v37 }
 0x129   : > { %6940 = vmatprep.subr.mxu1 %v8475_v38  ;;  %6971 = vmatprep.subr.mxu0 %v8480_v39 }
 0x12a   : > { %6941 = vmatpush3.msra.mxu1 %v8475_v38  ;;  %6972 = vmatpush3.msra.mxu0 %v8480_v39 }
 0x12b   : > { %6942 = vmatprep.subr.mxu1 %v8489_v40  ;;  %6973 = vmatprep.subr.mxu0 %v8494_v41 }
 0x12c   : > { %6943 = vmatpush3.msra.mxu1 %v8489_v40  ;;  %6974 = vmatpush3.msra.mxu0 %v8494_v41 }
 0x12d   : > { %6978 = vmatprep.subr.mxu1 %v8503_v42  ;;  %6997 = vmatprep.subr.mxu0 %v8509_v43 }
 0x1d0   : > { %v6904_v44 = vpop.f32.mrf.mxu1  ;;  %v6915_v45 = vpop.f32.mrf.mxu0 }
 0x1d1   : > { %v711_v49 = vmax.f32 %v6904_v44, %v6915_v45  ;;  %v8607_v44 = vld [vmem:[%s10426_s1 + $0x60] sm:$0xff]  ;;  %v8618_v45 = vld [vmem:[%s10426_s1 + $0x118] sm:$0xff] }
 0x1d2   : > { %v618_v46 = vpop.f32.mrf.mxu1  ;;  %v701_v47 = vpop.f32.mrf.mxu0  ;;  %10602 = vst [vmem:[#allocation20_spill] sm:$0xff] %v8607_v44  ;;  %10603 = vst [vmem:[#allocation21_spill] sm:$0xff] %v8618_v45 }
 0x1d3   : > { %v710_v48 = vmax.f32 %v618_v46, %v701_v47 }
 0x1d5   : > { %6944 = vmatprep.mubr.msk.f32.mxu1 %vm726_vm4, %v710_v48  ;;  %6975 = vmatprep.mubr.msk.f32.mxu0 %vm726_vm4, %v710_v48 }
 0x1d6   : > { %6945 = vmatmul.mubr.msk.f32.vlgmr.msra.gmra.mxu1 %vm726_vm4, %v711_v49  ;;  %6976 = vmatmul.mubr.msk.f32.vlgmr.msra.gmra.mxu0 %vm726_vm4, %v711_v49 }
 0x1d7   : > { %6979 = vmatpush3.msra.mxu1 %v8503_v42  ;;  %6998 = vmatpush3.msra.mxu0 %v8509_v43 }
 0x1d8   : > { %6980 = vmatprep.subr.mxu1 %v8517_v50  ;;  %6999 = vmatprep.subr.mxu0 %v8528_v51 }
 0x1d9   : > { %6981 = vmatpush3.msra.mxu1 %v8517_v50  ;;  %7000 = vmatpush3.msra.mxu0 %v8528_v51 }
 0x1da   : > { %6982 = vmatprep.subr.mxu1 %v8534_v53  ;;  %7001 = vmatprep.subr.mxu0 %v8541_v54 }
 0x1db   : > { %6983 = vmatpush3.msra.mxu1 %v8534_v53  ;;  %7002 = vmatpush3.msra.mxu0 %v8541_v54 }
 0x1dc   : > { %6984 = vmatprep.subr.mxu1 %v8548_v55  ;;  %7003 = vmatprep.subr.mxu0 %v8555_v56 }
 0x1dd   : > { %6985 = vmatpush3.msra.mxu1 %v8548_v55  ;;  %7004 = vmatpush3.msra.mxu0 %v8555_v56 }
 0x1de   : > { %6986 = vmatprep.subr.mxu1 %v8562_v57  ;;  %7005 = vmatprep.subr.mxu0 %v8569_v58 }
 0x1df   : > { %6987 = vmatpush3.msra.mxu1 %v8562_v57  ;;  %7006 = vmatpush3.msra.mxu0 %v8569_v58 }
 0x1e0   : > { %6988 = vmatprep.subr.mxu1 %v8574_v59  ;;  %7007 = vmatprep.subr.mxu0 %v8579_v60 }
 0x1e1   : > { %6989 = vmatpush3.msra.mxu1 %v8574_v59  ;;  %7008 = vmatpush3.msra.mxu0 %v8579_v60 }
 0x1e2   : > { %6990 = vmatprep.subr.mxu1 %v8586_v61  ;;  %7009 = vmatprep.subr.mxu0 %v8593_v62 }
 0x1e3   : > { %6991 = vmatpush3.msra.mxu1 %v8586_v61  ;;  %7010 = vmatpush3.msra.mxu0 %v8593_v62 }
 0x1e4   : > { %6992 = vmatprep.subr.mxu1 %v8600_v63  ;;  %7011 = vmatprep.subr.mxu0 %v8607_v44 }
 0x1e5   : > { %6993 = vmatpush3.msra.mxu1 %v8600_v63  ;;  %7012 = vmatpush3.msra.mxu0 %v8607_v44 }
 0x1e6   : > { %7016 = vmatprep.subr.mxu1 %v8618_v45  ;;  %7035 = vmatprep.subr.mxu0 %v10441_v0  ;;  %v8630_v0 = vld [vmem:[%s10426_s1 + $0x110] sm:$0xff] }
 0x1e7   : > { %10604 = vst [vmem:[#allocation22_spill] sm:$0xff] %v8630_v0 }
 0x296   : > { %v6946_v46 = vpop.f32.mrf.mxu1  ;;  %v6977_v47 = vpop.f32.mrf.mxu0 }
 0x297   : > { %v898_v48 = vmax.f32 %v6946_v46, %v6977_v47  ;;  %v8674_v46 = vld [vmem:[%s10426_s1 + $0xe0] sm:$0xff] }
 0x298   : > { %v799_v49 = vpop.f32.mrf.mxu1  ;;  %v888_v62 = vpop.f32.mrf.mxu0  ;;  %10610 = vst [vmem:[#allocation28_spill] sm:$0xff] %v8674_v46 }
 0x299   : > { %901 = vst.msk [vmem:[#allocation3 + $0x8] sm:$0xff] %vm899_vm5, %v898_v48  ;;  %v897_v63 = vmax.f32 %v799_v49, %v888_v62  ;;  %v10611_v48 = vmov 0.0   ;;  %v8689_v49 = vld [vmem:[%s10426_s1 + $0x308] sm:$0xff] }
 0x29a   : > { %10612 = vst [vmem:[#allocation29_spill] sm:$0xff] %v8689_v49 }
 0x29b   : > { %900 = vst.msk [vmem:[#allocation3] sm:$0xff] %vm899_vm5, %v897_v63  ;;  %v8660_v63 = vld [vmem:[%s10426_s1 + $0xf0] sm:$0xff] }
 0x29c   : > { %10608 = vst [vmem:[#allocation26_spill] sm:$0xff] %v8660_v63 }
 0x2a0   : > { %v913_v44 = vld [vmem:[#allocation3 + $0x9] sm:$0x3f] }
 0x2a1   : > { %v903_v59 = vld [vmem:[#allocation3 + $0x8] sm:$0x3f] }
 0x2a2   : > { %v912_v61 = vld [vmem:[#allocation3 + $0x1] sm:$0xff]  ;;  %v1085_v47 = vld [vmem:[#allocation3 + $0xa] sm:$0x3f] }
 0x2a3   : > { %v902_v60 = vld [vmem:[#allocation3] sm:$0xff]  ;;  %6994 = vmatprep.mubr.msk.f32.mxu1 %vm899_vm5, %v912_v61 }
 0x2a4   : > { %7013 = vmatprep.mubr.msk.f32.mxu0 %vm899_vm5, %v902_v60  ;;  %6995 = vmatmul.mubr.msk.f32.vlgmr.msra.gmra.mxu1 %vm899_vm5, %v913_v44  ;;  %v1084_v62 = vld [vmem:[#allocation3 + $0x2] sm:$0xff] }
 0x2a5   : > { %7014 = vmatmul.mubr.msk.f32.vlgmr.msra.gmra.mxu0 %vm899_vm5, %v903_v59  ;;  %7017 = vmatpush3.msra.mxu1 %v8618_v45  ;;  %v8639_v60 = vld [vmem:[%s10426_s1 + $0x108] sm:$0xff]  ;;  %v8646_v61 = vld [vmem:[%s10426_s1 + $0x100] sm:$0xff]  ;;  %v8653_v59 = vld [vmem:[%s10426_s1 + $0xf8] sm:$0xff] }
 0x2a6   : > { %7032 = vmatprep.mubr.msk.f32.mxu1 %vm899_vm5, %v1084_v62  ;;  %10605 = vst [vmem:[#allocation23_spill] sm:$0xff] %v8639_v60  ;;  %7018 = vmatprep.subr.mxu1 %v8630_v0  ;;  %10606 = vst [vmem:[#allocation24_spill] sm:$0xff] %v8646_v61  ;;  %v8667_v44 = vld [vmem:[%s10426_s1 + $0xe8] sm:$0xff]  ;;  %v8696_v62 = vld [vmem:[%s10426_s1 + $0x300] sm:$0xff] }
 0x2a7   : > { %7019 = vmatpush3.msra.mxu1 %v8630_v0  ;;  %10607 = vst [vmem:[#allocation25_spill] sm:$0xff] %v8653_v59  ;;  %10609 = vst [vmem:[#allocation27_spill] sm:$0xff] %v8667_v44  ;;  %7039 = vmatprep.mubr.msk.f32.mxu0 %vm8052_vm6, %v10611_v48 }
 0x2a8   : > { %7020 = vmatprep.subr.mxu1 %v8639_v60  ;;  %10613 = vst [vmem:[#allocation30_spill] sm:$0xff] %v8696_v62 }
 0x2a9   : > { %7021 = vmatpush3.msra.mxu1 %v8639_v60 }
 0x2aa   : > { %7022 = vmatprep.subr.mxu1 %v8646_v61 }
 0x2ab   : > { %7023 = vmatpush3.msra.mxu1 %v8646_v61 }
 0x2ac   : > { %7024 = vmatprep.subr.mxu1 %v8653_v59 }
 0x2ad   : > { %7025 = vmatpush3.msra.mxu1 %v8653_v59 }
 0x2ae   : > { %7026 = vmatprep.subr.mxu1 %v8660_v63 }
 0x2af   : > { %7027 = vmatpush3.msra.mxu1 %v8660_v63 }
 0x2b0   : > { %7028 = vmatprep.subr.mxu1 %v8667_v44 }
 0x2b1   : > { %7029 = vmatpush3.msra.mxu1 %v8667_v44 }
 0x2b2   : > { %7030 = vmatprep.subr.mxu1 %v8674_v46 }
 0x2b3   : > { %7031 = vmatpush3.msra.mxu1 %v8674_v46 }
 0x2b4   : > { %7033 = vmatmul.mubr.msk.f32.vlgmr.msra.gmra.mxu1 %vm899_vm5, %v1085_v47  ;;  %7080 = vmatprep.subr.mxu1 %v10611_v48  ;;  %v8703_v47 = vld [vmem:[%s10426_s1 + $0x2f8] sm:$0xff] }
 0x2b5   : > { %7108 = vmatprep.mubr.msk.f32.mxu1 %vm8052_vm6, %v10611_v48  ;;  %7081 = vmatpush3.msra.mxu1 %v8689_v49  ;;  %10614 = vst [vmem:[#allocation31_spill] sm:$0xff] %v8703_v47  ;;  %v8710_v49 = vld [vmem:[%s10426_s1 + $0x2f0] sm:$0xff] }
 0x2b6   : > { %7082 = vmatprep.subr.mxu1 %v10611_v48  ;;  %10615 = vst [vmem:[#allocation32_spill] sm:$0xff] %v8710_v49 }
 0x2b7   : > { %7083 = vmatpush3.msra.mxu1 %v8696_v62  ;;  %v8717_v62 = vld [vmem:[%s10426_s1 + $0x2e8] sm:$0xff] }
 0x2b8   : > { %7084 = vmatprep.subr.mxu1 %v10611_v48  ;;  %10616 = vst [vmem:[#allocation33_spill] sm:$0xff] %v8717_v62 }
 0x2b9   : > { %7085 = vmatpush3.msra.mxu1 %v8703_v47  ;;  %v8724_v47 = vld [vmem:[%s10426_s1 + $0x2e0] sm:$0xff] }
 0x2ba   : > { %7086 = vmatprep.subr.mxu1 %v10611_v48  ;;  %10617 = vst [vmem:[#allocation34_spill] sm:$0xff] %v8724_v47 }
 0x2bb   : > { %7087 = vmatpush3.msra.mxu1 %v8710_v49  ;;  %v8731_v49 = vld [vmem:[%s10426_s1 + $0x2d8] sm:$0xff] }
 0x2bc   : > { %7088 = vmatprep.subr.mxu1 %v10611_v48  ;;  %10618 = vst [vmem:[#allocation35_spill] sm:$0xff] %v8731_v49 }
 0x2bd   : > { %7089 = vmatpush3.msra.mxu1 %v8717_v62  ;;  %v8738_v62 = vld [vmem:[%s10426_s1 + $0x2d0] sm:$0xff] }
 0x2be   : > { %7090 = vmatprep.subr.mxu1 %v10611_v48  ;;  %10619 = vst [vmem:[#allocation36_spill] sm:$0xff] %v8738_v62 }
 0x2bf   : > { %7091 = vmatpush3.msra.mxu1 %v8724_v47  ;;  %v8745_v47 = vld [vmem:[%s10426_s1 + $0x2c8] sm:$0xff] }
 0x2c0   : > { %7092 = vmatprep.subr.mxu1 %v10611_v48  ;;  %10620 = vst [vmem:[#allocation37_spill] sm:$0xff] %v8745_v47 }
 0x2c1   : > { %7093 = vmatpush3.msra.mxu1 %v8731_v49  ;;  %v8752_v49 = vld [vmem:[%s10426_s1 + $0x2c0] sm:$0xff] }
 0x2c2   : > { %7094 = vmatprep.subr.mxu1 %v10611_v48  ;;  %10621 = vst [vmem:[#allocation38_spill] sm:$0xff] %v8752_v49 }
 0x2c3   : > { %7095 = vmatpush3.msra.mxu1 %v8738_v62 }
 0x2c4   : > { %7096 = vmatprep.subr.mxu1 %v10611_v48 }
 0x2c5   : > { %7097 = vmatpush3.msra.mxu1 %v8745_v47  ;;  %v8759_v47 = vld [vmem:[%s10426_s1 + $0x318] ss:$0 sm:$0xff] }
 0x2c6   : > { %7098 = vmatprep.subr.mxu1 %v10611_v48  ;;  %10622 = vst [vmem:[#allocation39_spill] sm:$0xff] %v8759_v47 }
 0x2c7   : > { %7099 = vmatpush3.msra.mxu1 %v8752_v49 }
 0x2c8   : > { %7100 = vmatprep.subr.mxu1 %v10611_v48 }
 0x364   : > { %v6996_v62 = vpop.f32.mrf.mxu1 }
 0x365   : > { %v7015_v46 = vpop.f32.mrf.mxu0 }
 0x366   : > { %v994_v44 = vpop.f32.mrf.mxu1  ;;  %v1081_v59 = vadd.f32 %v7015_v46, %v6996_v62  ;;  %v1186_v46 = vld [vmem:[%s10426_s1 + $0x220] sm:$0x7f]  ;;  %v8859_v62 = vld [vmem:[%s10426_s1 + $0x2b8] sm:$0xff] }
 0x367   : > { %v1075_v63 = vpop.f32.mrf.mxu0  ;;  %7101 = vmatpush3.msra.mxu1 %v8859_v62 }
 0x368   : > { %v1076_v60 = vadd.f32 %v1075_v63, %v994_v44  ;;  %v8838_v63 = vld [vmem:[%s10426_s1 + $0x258] sm:$0xff]  ;;  %v8845_v44 = vld [vmem:[%s10426_s1 + $0x250] sm:$0xff]  ;;  %7102 = vmatprep.subr.mxu1 %v10611_v48 }
 0x369   : > { %10631 = vst [vmem:[#allocation48_spill] sm:$0xff] %v8838_v63  ;;  %10632 = vst [vmem:[#allocation49_spill] sm:$0xff] %v8845_v44 }
 0x374   : > { %v7034_v61 = vpop.f32.mrf.mxu1 }
 0x375   : > { %v1176_v0 = vadd.f32 %v7034_v61, %v1081_v59  ;;  %v8824_v61 = vld [vmem:[%s10426_s1 + $0x268] sm:$0xff]  ;;  %v8831_v59 = vld [vmem:[%s10426_s1 + $0x260] sm:$0xff] }
 0x376   : > { %v1166_v45 = vpop.f32.mrf.mxu1  ;;  %10629 = vst [vmem:[#allocation46_spill] sm:$0xff] %v8824_v61  ;;  %10630 = vst [vmem:[#allocation47_spill] sm:$0xff] %v8831_v59 }
 0x377   : > { %v1183_v58 = vadd.f32 %v8759_v47, %v1176_v0  ;;  %v1175_v57 = vadd.f32 %v1166_v45, %v1076_v60  ;;  %v1265_v0 = vld [vmem:[%s10426_s1 + $0x228] sm:$0x7f]  ;;  %v8810_v45 = vld [vmem:[%s10426_s1 + $0x278] sm:$0xff]  ;;  %v8817_v60 = vld [vmem:[%s10426_s1 + $0x270] sm:$0xff] }
 0x378   : > { %10627 = vst [vmem:[#allocation44_spill] sm:$0xff] %v8810_v45  ;;  %10628 = vst [vmem:[#allocation45_spill] sm:$0xff] %v8817_v60 }
 0x379   : > { %v1185_v49 = vmax.f32 %v1183_v58, 0.0  ;;  %v1182_v56 = vadd.f32 %v8759_v47, %v1175_v57  ;;  %v8787_v57 = vld [vmem:[%s10426_s1 + $0x290] sm:$0xff]  ;;  %v8803_v58 = vld [vmem:[%s10426_s1 + $0x280] sm:$0xff] }
 0x37a   : > { %10624 = vst [vmem:[#allocation41_spill] sm:$0xff] %v8787_v57  ;;  %10626 = vst [vmem:[#allocation43_spill] sm:$0xff] %v8803_v58  ;;  %v8920_v47 = vld [vmem:[#allocation5 + $0x50] sm:$0xff] }
 0x37b   : > { %v1184_v55 = vmax.f32 %v1182_v56, 0.0  ;;  %7036 = vmatpush3.msk.msra.mxu0 %vm1191_vm7, %v1185_v49  ;;  %v8780_v56 = vld [vmem:[%s10426_s1 + $0x298] sm:$0xff]  ;;  %10643 = vst [vmem:[#allocation60_spill] sm:$0xff] %v8920_v47 }
 0x37c   : > { %7037 = vmatprep.subr.mxu0 %v10611_v48  ;;  %10623 = vst [vmem:[#allocation40_spill] sm:$0xff] %v8780_v56 }
 0x37d   : > { %7038 = vmatpush3.msra.mxu0 %v1184_v55 }
 0x37e   : > { %7040 = vmatmul.mubr.msk.f32.vlgmr.msra.gmra.mxu0 %vm1187_vm8, %v1186_v46  ;;  %7042 = vmatprep.subr.mxu0 %v10611_v48  ;;  %v8868_v46 = vld [vmem:[%s10426_s1 + $0x240] sm:$0xff] }
 0x37f   : > { %7043 = vmatpush3.msk.msra.mxu0 %vm1191_vm7, %v1185_v49  ;;  %7046 = vmatprep.mubr.msk.f32.mxu0 %vm8052_vm6, %v10611_v48  ;;  %v8854_v49 = vld [vmem:[%s10426_s1 + $0x248] sm:$0xff]  ;;  %10634 = vst [vmem:[#allocation51_spill] sm:$0xff] %v8868_v46 }
 0x380   : > { %7044 = vmatprep.subr.mxu0 %v10611_v48  ;;  %10633 = vst [vmem:[#allocation50_spill] sm:$0xff] %v8854_v49 }
 0x381   : > { %7045 = vmatpush3.msra.mxu0 %v1184_v55  ;;  %v8796_v55 = vld [vmem:[%s10426_s1 + $0x288] sm:$0xff] }
 0x382   : > { %7047 = vmatmul.mubr.msk.f32.vlgmr.msra.gmra.mxu0 %vm1187_vm8, %v1265_v0  ;;  %7049 = vmatprep.subr.mxu0 %v10611_v48  ;;  %10625 = vst [vmem:[#allocation42_spill] sm:$0xff] %v8796_v55  ;;  %v8873_v0 = vld [vmem:[%s10426_s1 + $0x2b0] sm:$0xff] }
 0x383   : > { %7050 = vmatpush3.msra.mxu0 %v8780_v56  ;;  %7077 = vmatprep.mubr.msk.f32.mxu0 %vm8052_vm6, %v10611_v48  ;;  %10635 = vst [vmem:[#allocation52_spill] sm:$0xff] %v8873_v0  ;;  %v8916_v56 = vld [vmem:[#allocation5 + $0x58] sm:$0xff] }
 0x384   : > { %7051 = vmatprep.subr.mxu0 %v10611_v48  ;;  %7103 = vmatpush3.msra.mxu1 %v8873_v0  ;;  %10642 = vst [vmem:[#allocation59_spill] sm:$0xff] %v8916_v56 }
 0x385   : > { %7052 = vmatpush3.msra.mxu0 %v8787_v57  ;;  %7104 = vmatprep.subr.mxu1 %v10611_v48 }
 0x386   : > { %7053 = vmatprep.subr.mxu0 %v10611_v48 }
 0x387   : > { %7054 = vmatpush3.msra.mxu0 %v8796_v55  ;;  %v8912_v55 = vld [vmem:[#allocation5 + $0x60] sm:$0xff] }
 0x388   : > { %7055 = vmatprep.subr.mxu0 %v10611_v48  ;;  %10641 = vst [vmem:[#allocation58_spill] sm:$0xff] %v8912_v55 }
 0x389   : > { %7056 = vmatpush3.msra.mxu0 %v8803_v58 }
 0x38a   : > { %7057 = vmatprep.subr.mxu0 %v10611_v48 }
 0x38b   : > { %7058 = vmatpush3.msra.mxu0 %v8810_v45 }
 0x38c   : > { %7059 = vmatprep.subr.mxu0 %v10611_v48 }
 0x38d   : > { %7060 = vmatpush3.msra.mxu0 %v8817_v60 }
 0x38e   : > { %7061 = vmatprep.subr.mxu0 %v10611_v48 }
 0x38f   : > { %7062 = vmatpush3.msra.mxu0 %v8824_v61 }
 0x390   : > { %7063 = vmatprep.subr.mxu0 %v10611_v48 }
 0x391   : > { %7064 = vmatpush3.msra.mxu0 %v8831_v59  ;;  %v8909_v59 = vld [vmem:[#allocation5 + $0x68] sm:$0xff] }
 0x392   : > { %7065 = vmatprep.subr.mxu0 %v10611_v48  ;;  %10640 = vst [vmem:[#allocation57_spill] sm:$0xff] %v8909_v59 }
 0x393   : > { %7066 = vmatpush3.msra.mxu0 %v8838_v63  ;;  %v8901_v63 = vld [vmem:[%s10426_s1 + $0x2a0] sm:$0xff] }
 0x394   : > { %7067 = vmatprep.subr.mxu0 %v10611_v48  ;;  %10639 = vst [vmem:[#allocation56_spill] sm:$0xff] %v8901_v63 }
 0x395   : > { %7068 = vmatpush3.msra.mxu0 %v8845_v44  ;;  %v8887_v44 = vld [vmem:[%s10426_s1 + $0x2a8] sm:$0xff] }
 0x396   : > { %7069 = vmatprep.subr.mxu0 %v10611_v48  ;;  %10637 = vst [vmem:[#allocation54_spill] sm:$0xff] %v8887_v44  ;;  %7105 = vmatpush3.msra.mxu1 %v8887_v44 }
 0x397   : > { %7070 = vmatpush3.msra.mxu0 %v8854_v49  ;;  %v8882_v49 = vld [vmem:[%s10426_s1 + $0x238] sm:$0xff]  ;;  %7106 = vmatprep.subr.mxu1 %v10611_v48 }
 0x398   : > { %7071 = vmatprep.subr.mxu0 %v10611_v48  ;;  %10636 = vst [vmem:[#allocation53_spill] sm:$0xff] %v8882_v49  ;;  %7107 = vmatpush3.msra.mxu1 %v8901_v63 }
 0x399   : > { %7072 = vmatpush3.msra.mxu0 %v8868_v46  ;;  %v8896_v46 = vld [vmem:[%s10426_s1 + $0x230] sm:$0xff] }
 0x39a   : > { %7073 = vmatprep.subr.mxu0 %v10611_v48  ;;  %10638 = vst [vmem:[#allocation55_spill] sm:$0xff] %v8896_v46 }
 0x39b   : > { %7074 = vmatpush3.msra.mxu0 %v8882_v49  ;;  %v1660_v49 = vld [vmem:[%s10426_s1 + $0x38] sm:$0xf] }
 0x39c   : > { %7075 = vmatprep.subr.mxu0 %v10611_v48  ;;  %7111 = vmatprep.subr.msk.mxu1 %vm227_vm2, %v1660_v49 }
 0x39d   : > { %7076 = vmatpush3.msra.mxu0 %v8896_v46  ;;  %v1653_v46 = vld [vmem:[#allocation2 + $0x1] sm:$0xff] }
 0x39e   : > { %1548 = vmatprep.subr.mxu0 %v8909_v59 }
 0x43e   : > { %v1261_v61 = vpop.f32.mrf.mxu0 }
 0x440   : > { %v7041_v60 = vpop.f32.mrf.mxu0 }
 0x441   : > { %v1654_v60 = vld [vmem:[#allocation2 + $0x9] sm:$0xff] }
 0x442   : > { %v1335_v45 = vpop.f32.mrf.mxu0 }
 0x443   : > { %v1339_v58 = vmax.f32 %v1261_v61, %v1335_v45  ;;  %v8924_v45 = vld [vmem:[#allocation5 + $0x48] sm:$0xff]  ;;  %v1652_v61 = vld [vmem:[%s10426_s1 + $0x18] sm:$0xf] }
 0x444   : > { %v7048_v57 = vpop.f32.mrf.mxu0  ;;  %10644 = vst [vmem:[#allocation61_spill] sm:$0xff] %v8924_v45 }
 0x445   : > { %7078 = vmatmul.mubr.msk.f32.vlgmr.msra.gmra.mxu0 %vm726_vm4, %v1339_v58  ;;  %7109 = vmatmul.mubr.msk.f32.vlgmr.msra.gmra.mxu1 %vm726_vm4, %v1339_v58  ;;  %v8928_v57 = vld [vmem:[#allocation5 + $0x40] sm:$0xff]  ;;  %v8932_v58 = vld [vmem:[#allocation5 + $0x38] sm:$0xff] }
 0x446   : > { %7112 = vmatpush3.msk.msra.mxu1 %vm227_vm2, %v1660_v49  ;;  %1549 = vmatpush1.msra.mxu0 %v8912_v55  ;;  %10645 = vst [vmem:[#allocation62_spill] sm:$0xff] %v8928_v57  ;;  %10646 = vst [vmem:[#allocation63_spill] sm:$0xff] %v8932_v58  ;;  %v8943_v49 = vld [vmem:[#allocation5 + $0x30] sm:$0xff] }
 0x447   : > { %7113 = vmatprep.subr.mxu1 %v8166_v3  ;;  %7119 = vmatprep.mubr.msk.f32.mxu1 %vm184_vm0, %v1653_v46  ;;  %10647 = vst [vmem:[#allocation64_spill] sm:$0xff] %v8943_v49  ;;  %v1656_v46 = vld [vmem:[#allocation2 + $0x19] sm:$0xf] }
 0x448   : > { %7114 = vmatpush3.msra.mxu1 %v8166_v3  ;;  %1550 = vmatprep.subr.mxu0 %v8916_v56  ;;  %v1655_v3 = vld [vmem:[#allocation2 + $0x11] sm:$0xff] }
 0x449   : > { %7115 = vmatprep.subr.mxu1 %v8180_v5  ;;  %1551 = vmatpush1.msra.mxu0 %v8920_v47 }
 0x44a   : > { %7116 = vmatpush3.msra.mxu1 %v8180_v5  ;;  %1552 = vmatprep.subr.mxu0 %v8924_v45  ;;  %v8947_v5 = vld [vmem:[#allocation5 + $0x28] sm:$0xff] }
 0x44b   : > { %7117 = vmatprep.subr.mxu1 %v8193_v8  ;;  %1553 = vmatpush1.msra.mxu0 %v8928_v57  ;;  %10648 = vst [vmem:[#allocation65_spill] sm:$0xff] %v8947_v5 }
 0x44c   : > { %7118 = vmatpush3.msra.mxu1 %v8193_v8  ;;  %1554 = vmatprep.subr.mxu0 %v8932_v58  ;;  %v8953_v8 = vld [vmem:[#allocation5 + $0x20] sm:$0xff]  ;;  %v8959_v58 = vld [vmem:[#allocation5 + $0x18] sm:$0xff] }
 0x44d   : > { %7120 = vmatmul.mubr.msk.f32.vlgmr.msra.gmra.mxu1 %vm184_vm0, %v1654_v60  ;;  %7125 = vmatprep.subr.msk.mxu1 %vm227_vm2, %v1652_v61  ;;  %10649 = vst [vmem:[#allocation66_spill] sm:$0xff] %v8953_v8  ;;  %v1645_v60 = vld [vmem:[#allocation2] sm:$0xff]  ;;  %10650 = vst [vmem:[#allocation67_spill] sm:$0xff] %v8959_v58 }
 0x44e   : > { %7126 = vmatpush3.msk.msra.mxu1 %vm227_vm2, %v1652_v61  ;;  %7122 = vmatprep.mubr.msk.f32.mxu1 %vm184_vm0, %v1655_v3  ;;  %v1646_v61 = vld [vmem:[#allocation2 + $0x8] sm:$0xff] }
 0x44f   : > { %7127 = vmatprep.subr.mxu1 %v8173_v4  ;;  %1555 = vmatpush1.msra.mxu0 %v8943_v49  ;;  %v8963_v3 = vld [vmem:[#allocation5 + $0x10] sm:$0xff] }
 0x450   : > { %7128 = vmatpush3.msra.mxu1 %v8173_v4  ;;  %1556 = vmatprep.subr.mxu0 %v8947_v5  ;;  %10651 = vst [vmem:[#allocation68_spill] sm:$0xff] %v8963_v3  ;;  %v8972_v4 = vld [vmem:[#allocation5 + $0x8] sm:$0xff] }
 0x451   : > { %7123 = vmatmul.mubr.msk.f32.gmra.mxu1 %vm184_vm0, %v1656_v46  ;;  %7129 = vmatprep.subr.mxu1 %v8185_v6  ;;  %10652 = vst [vmem:[#allocation69_spill] sm:$0xff] %v8972_v4  ;;  %v1647_v46 = vld [vmem:[#allocation2 + $0x10] sm:$0xff] }
 0x452   : > { %7130 = vmatpush3.msra.mxu1 %v8185_v6  ;;  %1557 = vmatpush1.msra.mxu0 %v8953_v8  ;;  %v8975_v6 = vld [vmem:[#allocation5] sm:$0xff] }
 0x453   : > { %7131 = vmatprep.subr.mxu1 %v8202_v10  ;;  %7133 = vmatprep.mubr.msk.f32.mxu1 %vm184_vm0, %v1645_v60  ;;  %10653 = vst [vmem:[#allocation70_spill] sm:$0xff] %v8975_v6  ;;  %v1868_v60 = vld [vmem:[%s10426_s1 + $0x58] sm:$0xf] }
 0x454   : > { %7132 = vmatpush3.msra.mxu1 %v8202_v10  ;;  %1558 = vmatprep.subr.mxu0 %v8959_v58  ;;  %v1648_v10 = vld [vmem:[#allocation2 + $0x18] sm:$0xf]  ;;  %v1861_v58 = vld [vmem:[#allocation2 + $0x2] sm:$0xff] }
 0x455   : > { %7134 = vmatmul.mubr.msk.f32.vlgmr.msra.gmra.mxu1 %vm184_vm0, %v1646_v61  ;;  %1559 = vmatpush1.msra.mxu0 %v8963_v3 }
 0x456   : > { %1594 = vmatprep.mubr.f32.mxu0 %v10611_v48  ;;  %1560 = vmatprep.subr.mxu0 %v8972_v4 }
 0x457   : > { %1561 = vmatpush1.msra.mxu0 %v8975_v6  ;;  %7136 = vmatprep.mubr.msk.f32.mxu1 %vm184_vm0, %v1647_v46 }
 0x458   : > { %7139 = vmatprep.subr.msk.mxu0 %vm227_vm2, %v1868_v60 }
 0x459   : > { %7137 = vmatmul.mubr.msk.f32.gmra.mxu1 %vm184_vm0, %v1648_v10 }
 0x45a   : > { %7161 = vmatprep.mubr.msk.f32.mxu1 %vm184_vm0, %v8266_v33  ;;  %v1862_v33 = vld [vmem:[#allocation2 + $0xa] sm:$0xff] }
 0x505   : > { %v1423_v61 = vpop.f32.mrf.mxu0  ;;  %v1507_v4 = vpop.f32.mrf.mxu1 }
 0x506   : > { %v1511_v3 = vmax.f32 %v1423_v61, %v1507_v4  ;;  %v1863_v4 = vld [vmem:[#allocation2 + $0x12] sm:$0xff] }
 0x507   : > { %v7079_v6 = vpop.f32.mrf.mxu0  ;;  %v7110_v8 = vpop.f32.mrf.mxu1 }
 0x508   : > { %6171 = vmatmul.mubr.msk.f32.vlgmr.msra.gmra.mxu0 %vm1526_vm9, %v1511_v3  ;;  %v1864_v8 = vld [vmem:[#allocation2 + $0x1a] sm:$0xf] }
 0x509   : > { %7140 = vmatpush3.msk.msra.mxu0 %vm227_vm2, %v1868_v60  ;;  %7147 = vmatprep.mubr.msk.f32.mxu0 %vm184_vm0, %v1861_v58 }
 0x50a   : > { %7141 = vmatprep.subr.mxu0 %v8224_v14 }
 0x50b   : > { %7142 = vmatpush3.msra.mxu0 %v8224_v14 }
 0x50c   : > { %7143 = vmatprep.subr.mxu0 %v8242_v30 }
 0x50d   : > { %7144 = vmatpush3.msra.mxu0 %v8242_v30  ;;  %v7121_v14 = vpop.f32.mrf.mxu1 }
 0x50e   : > { %7145 = vmatprep.subr.mxu0 %v8253_v32 }
 0x50f   : > { %7146 = vmatpush3.msra.mxu0 %v8253_v32  ;;  %v1742_v58 = vpop.f32.mrf.mxu1 }
 0x510   : > { %7148 = vmatmul.mubr.msk.f32.vlgmr.msra.gmra.mxu0 %vm184_vm0, %v1862_v33 }
 0x511   : > { %7150 = vmatprep.mubr.msk.f32.mxu0 %vm184_vm0, %v1863_v4  ;;  %v7124_v3 = vpop.f32.mrf.mxu1 }
 0x513   : > { %v1752_v30 = vpop.f32.mrf.mxu1 }
 0x514   : > { %7151 = vmatmul.mubr.msk.f32.gmra.mxu0 %vm184_vm0, %v1864_v8 }
 0x515   : > { %7172 = vmatprep.mubr.msk.f32.mxu0 %vm184_vm0, %v8271_v34  ;;  %v7135_v6 = vpop.f32.mrf.mxu1 }
 0x516   : > { %v1848_v49 = vadd.f32 %v7135_v6, %v7121_v14 }
 0x517   : > { %v1842_v32 = vpop.f32.mrf.mxu1 }
 0x518   : > { %v1843_v45 = vadd.f32 %v1842_v32, %v1742_v58 }
 0x519   : > { %v7138_v61 = vpop.f32.mrf.mxu1 }
 0x51a   : > { %v1858_v57 = vadd.f32 %v7138_v61, %v7124_v3  ;;  %v10669_v61 = vld [vmem:[#allocation26_spill] sm:$0xff] }
 0x51b   : > { %v1852_v8 = vpop.f32.mrf.mxu1 }
 0x51c   : > { %v1853_v47 = vadd.f32 %v1852_v8, %v1752_v30  ;;  %v10672_v8 = vld [vmem:[#allocation29_spill] sm:$0xff] }
 0x5c8   : > { %v9000_v46 = vpop.f32.mrf.mxu0 }
 0x5c9   : > { %v1604_v10 = vrot.slane %v9000_v46, 1  ;;  %v1609_v60 = vrot.slane %v9000_v46, 2  ;;  %v1614_v4 = vrot.slane %v9000_v46, 3 }
 0x5ca   : > { %v9005_v33 = vpop.f32.mrf.mxu0 }
 0x5cb   : > { %1605 = vrot.lane.b32.xlu0 %v1604_v10, %s8053_s17  ;;  %v1623_v56 = vrot.slane %v9005_v33, 5  ;;  %v1628_v58 = vrot.slane %v9005_v33, 6 }
 0x5cf   : > { %1610 = vrot.lane.b32.xlu0 %v1609_v60, %s8054_s19 }
 0x5d0   : > { %v7149_v34 = vpop.f32.mrf.mxu0 }
 0x5d1   : > { %v1970_v55 = vadd.f32 %v7149_v34, %v1848_v49  ;;  %v10666_v49 = vld [vmem:[#allocation23_spill] sm:$0xff]  ;;  %v10671_v34 = vld [vmem:[#allocation28_spill] sm:$0xff] }
 0x5d2   : > { %v1950_v5 = vpop.f32.mrf.mxu0 }
 0x5d3   : > { %1615 = vrot.lane.b32.xlu0 %v1614_v4, %s8055_s20  ;;  %v1969_v44 = vadd.f32 %v1950_v5, %v1843_v45  ;;  %v1979_v14 = vadd.f32 %v8280_v52, %v1970_v55  ;;  %v10667_v5 = vld [vmem:[#allocation24_spill] sm:$0xff] }
 0x5d4   : > { %v7152_v10 = vpop.f32.mrf.mxu0 }
 0x5d5   : > { %v1972_v59 = vadd.f32 %v7152_v10, %v1858_v57  ;;  %v1978_v30 = vadd.f32 %v8280_v52, %v1969_v44  ;;  %v10665_v57 = vld [vmem:[#allocation22_spill] sm:$0xff] }
 0x5d6   : > { %v1960_v63 = vpop.f32.mrf.mxu0  ;;  %v10673_v10 = vld [vmem:[#allocation30_spill] sm:$0xff] }
 0x5d7   : > { %v1981_v60 = vadd.f32 %v8280_v52, %v1972_v59  ;;  %v1971_v0 = vadd.f32 %v1960_v63, %v1853_v47  ;;  %1624 = vrot.lane.b32.xlu0 %v1623_v56, %s8053_s17  ;;  %v1983_v47 = vmax.f32 %v1979_v14, 0.0  ;;  %v1982_v56 = vmax.f32 %v1978_v30, 0.0  ;;  %v10675_v14 = vld [vmem:[#allocation32_spill] sm:$0xff] }
 0x5d8   : > { %v10679_v30 = vld [vmem:[#allocation36_spill] sm:$0xff] }
 0x5d9   : > { %v1985_v3 = vmax.f32 %v1981_v60, 0.0  ;;  %v1980_v6 = vadd.f32 %v8280_v52, %v1971_v0  ;;  %v1601_v52 = vld [vmem:[%s10426_s1 + $0x320] sm:$0x1]  ;;  %v10674_v60 = vld [vmem:[#allocation31_spill] sm:$0xff] }
 0x5db   : > { %v1984_v32 = vmax.f32 %v1980_v6, 0.0  ;;  %7153 = vmatprep.subr.msk.mxu1 %vm227_vm2, %v1985_v3  ;;  %7164 = vmatprep.subr.msk.mxu0 %vm227_vm2, %v1985_v3  ;;  %v10677_v6 = vld [vmem:[#allocation34_spill] sm:$0xff] }
 0x5dc   : > { %7154 = vmatpush3.msk.msra.mxu1 %vm227_vm2, %v1985_v3  ;;  %7165 = vmatpush3.msk.msra.mxu0 %vm227_vm2, %v1985_v3  ;;  %v10676_v3 = vld [vmem:[#allocation33_spill] sm:$0xff] }
 0x5dd   : > { %1629 = vrot.lane.b32.xlu0 %v1628_v58, %s8054_s19  ;;  %7155 = vmatprep.subr.mxu1 %v1984_v32  ;;  %v10678_v58 = vld [vmem:[#allocation35_spill] sm:$0xff] }
 0x5de   : > { %7166 = vmatprep.subr.mxu0 %v1984_v32  ;;  %7156 = vmatpush3.msra.mxu1 %v1984_v32 }
 0x5df   : > { %7167 = vmatpush3.msra.mxu0 %v1984_v32  ;;  %7157 = vmatprep.subr.mxu1 %v1983_v47  ;;  %v10680_v32 = vld [vmem:[#allocation37_spill] sm:$0xff] }
 0x5e0   : > { %7168 = vmatprep.subr.mxu0 %v1983_v47  ;;  %7158 = vmatpush3.msra.mxu1 %v1983_v47 }
 0x5e1   : > { %7169 = vmatpush3.msra.mxu0 %v1983_v47  ;;  %7159 = vmatprep.subr.mxu1 %v1982_v56  ;;  %v10681_v47 = vld [vmem:[#allocation38_spill] sm:$0xff] }
 0x5e2   : > { %7170 = vmatprep.subr.mxu0 %v1982_v56  ;;  %7160 = vmatpush3.msra.mxu1 %v1982_v56 }
 0x5e3   : > { %7171 = vmatpush3.msra.mxu0 %v1982_v56  ;;  %7162 = vmatmul.mubr.msk.f32.vlgmr.msra.gmra.mxu1 %vm184_vm0, %v8293_v1  ;;  %v10682_v56 = vld [vmem:[#allocation52_spill] sm:$0xff] }
 0x5e4   : > { %7173 = vmatmul.mubr.msk.f32.vlgmr.msra.gmra.mxu0 %vm184_vm0, %v8298_v2  ;;  %7175 = vmatprep.subr.mxu1 %v8303_v7  ;;  %v1602_v2 = vadd.f32 %v1601_v52, %v9000_v46  ;;  %v10668_v46 = vld [vmem:[#allocation25_spill] sm:$0xff]  ;;  %v10683_v52 = vld [vmem:[#allocation54_spill] sm:$0xff] }
 0x5e5   : > { %7206 = vmatprep.subr.mxu0 %v8308_v9  ;;  %7176 = vmatpush3.msra.mxu1 %v8303_v7 }
 0x5e6   : > { %7207 = vmatpush3.msra.mxu0 %v8308_v9  ;;  %7177 = vmatprep.subr.mxu1 %v8317_v11 }
 0x5e7   : > { %7208 = vmatprep.subr.mxu0 %v8322_v12  ;;  %7178 = vmatpush3.msra.mxu1 %v8317_v11 }
 0x5e8   : > { %7209 = vmatpush3.msra.mxu0 %v8322_v12  ;;  %7179 = vmatprep.subr.mxu1 %v8331_v13 }
 0x5e9   : > { %7210 = vmatprep.subr.mxu0 %v8336_v15  ;;  %7180 = vmatpush3.msra.mxu1 %v8331_v13  ;;  %v1620_v13 = vrot.slane %v9005_v33, 4  ;;  %v10670_v33 = vld [vmem:[#allocation27_spill] sm:$0xff] }
 0x5ea   : > { %7211 = vmatpush3.msra.mxu0 %v8336_v15  ;;  %7181 = vmatprep.subr.mxu1 %v8345_v16 }
 0x5eb   : > { %7212 = vmatprep.subr.mxu0 %v8350_v17  ;;  %7182 = vmatpush3.msra.mxu1 %v8345_v16 }
 0x5ec   : > { %7213 = vmatpush3.msra.mxu0 %v8350_v17  ;;  %7183 = vmatprep.subr.mxu1 %v8359_v18 }
 0x5ed   : > { %7214 = vmatprep.subr.mxu0 %v8364_v19  ;;  %7184 = vmatpush3.msra.mxu1 %v8359_v18 }
 0x5ee   : > { %7215 = vmatpush3.msra.mxu0 %v8364_v19  ;;  %7185 = vmatprep.subr.mxu1 %v8373_v20 }
 0x5ef   : > { %7216 = vmatprep.subr.mxu0 %v8378_v21  ;;  %7186 = vmatpush3.msra.mxu1 %v8373_v20 }
 0x5f0   : > { %7217 = vmatpush3.msra.mxu0 %v8378_v21  ;;  %7187 = vmatprep.subr.mxu1 %v8387_v22 }
 0x5f1   : > { %7218 = vmatprep.subr.mxu0 %v8392_v23  ;;  %7188 = vmatpush3.msra.mxu1 %v8387_v22 }
 0x5f2   : > { %7219 = vmatpush3.msra.mxu0 %v8392_v23  ;;  %7189 = vmatprep.subr.mxu1 %v8401_v24 }
 0x5f3   : > { %7220 = vmatprep.subr.mxu0 %v8406_v25  ;;  %7190 = vmatpush3.msra.mxu1 %v8401_v24 }
 0x5f4   : > { %7221 = vmatpush3.msra.mxu0 %v8406_v25  ;;  %7191 = vmatprep.subr.mxu1 %v8415_v26 }
 0x5f5   : > { %7222 = vmatprep.subr.mxu0 %v8420_v27  ;;  %7192 = vmatpush3.msra.mxu1 %v8415_v26 }
 0x5f6   : > { %7223 = vmatpush3.msra.mxu0 %v8420_v27  ;;  %7193 = vmatprep.subr.mxu1 %v8429_v28 }
 0x5f7   : > { %7224 = vmatprep.subr.mxu0 %v8434_v29  ;;  %7194 = vmatpush3.msra.mxu1 %v8429_v28  ;;  %v10654_v28 = vld [vmem:[#allocation11_spill] sm:$0xff] }
 0x5f8   : > { %7225 = vmatpush3.msra.mxu0 %v8434_v29  ;;  %7195 = vmatprep.subr.mxu1 %v8443_v31  ;;  %v10655_v29 = vld [vmem:[#allocation12_spill] sm:$0xff] }
 0x5f9   : > { %7226 = vmatprep.subr.mxu0 %v8448_v35  ;;  %7196 = vmatpush3.msra.mxu1 %v8443_v31  ;;  %v10656_v31 = vld [vmem:[#allocation13_spill] sm:$0xff] }
 0x5fa   : > { %7227 = vmatpush3.msra.mxu0 %v8448_v35  ;;  %7197 = vmatprep.subr.mxu1 %v8461_v36  ;;  %v10657_v35 = vld [vmem:[#allocation14_spill] sm:$0xff] }
 0x5fb   : > { %7228 = vmatprep.subr.mxu0 %v8466_v37  ;;  %7198 = vmatpush3.msra.mxu1 %v8461_v36  ;;  %v10658_v36 = vld [vmem:[#allocation15_spill] sm:$0xff] }
 0x5fc   : > { %7229 = vmatpush3.msra.mxu0 %v8466_v37  ;;  %7199 = vmatprep.subr.mxu1 %v8475_v38  ;;  %v10659_v37 = vld [vmem:[#allocation16_spill] sm:$0xff] }
 0x5fd   : > { %7230 = vmatprep.subr.mxu0 %v8480_v39  ;;  %7200 = vmatpush3.msra.mxu1 %v8475_v38  ;;  %v10660_v38 = vld [vmem:[#allocation17_spill] sm:$0xff] }
 0x5fe   : > { %7231 = vmatpush3.msra.mxu0 %v8480_v39  ;;  %7201 = vmatprep.subr.mxu1 %v8489_v40  ;;  %v10661_v39 = vld [vmem:[#allocation18_spill] sm:$0xff] }
 0x5ff   : > { %7232 = vmatprep.subr.mxu0 %v8494_v41  ;;  %7202 = vmatpush3.msra.mxu1 %v8489_v40  ;;  %v10662_v40 = vld [vmem:[#allocation19_spill] sm:$0xff] }
 0x600   : > { %7233 = vmatpush3.msra.mxu0 %v8494_v41  ;;  %7237 = vmatprep.subr.mxu1 %v8503_v42  ;;  %v10663_v41 = vld [vmem:[#allocation20_spill] sm:$0xff] }
 0x601   : > { %7256 = vmatprep.subr.mxu0 %v8509_v43 }
 0x63d   : > { %v1606_v1 = vpop.permute.xlu0 %1605 }
 0x63e   : > { %v1608_v9 = vadd.f32 %v1606_v1, %v1602_v2  ;;  %v10684_v1 = vld [vmem:[#allocation56_spill] sm:$0xff] }
 0x641   : > { %v1611_v7 = vpop.permute.xlu0 %1610 }
 0x642   : > { %v1613_v11 = vadd.f32 %v1611_v7, %v1608_v9 }
 0x645   : > { %v1616_v12 = vpop.permute.xlu0 %1615 }
 0x646   : > { %v1618_v15 = vadd.f32 %v1616_v12, %v1613_v11 }
 0x648   : > { %v1622_v16 = vadd.f32 %v1620_v13, %v1618_v15 }
 0x649   : > { %v1625_v17 = vpop.permute.xlu0 %1624 }
 0x64a   : > { %v1627_v18 = vadd.f32 %v1625_v17, %v1622_v16  ;;  %v10685_v17 = vld [vmem:[#allocation39_spill] sm:$0xff] }
 0x64f   : > { %v1630_v19 = vpop.permute.xlu0 %1629 }
 0x650   : > { %v1632_v20 = vadd.f32 %v1630_v19, %v1627_v18 }
 0x652   : > { %v1633_v21 = vmax.f32 %v1632_v20, 0.0 }
 0x654   : > { %1635 = vst.msk [vmem:[#allocation4] sm:$0x1] %vm1634_vm10, %v1633_v21 }
 0x6a3   : > { %v7163_v22 = vpop.f32.mrf.mxu1 }
 0x6a4   : > { %v7174_v23 = vpop.f32.mrf.mxu0 }
 0x6a5   : > { %v2063_v24 = vpop.f32.mrf.mxu1  ;;  %v2156_v27 = vmax.f32 %v7163_v22, %v7174_v23  ;;  %v2629_v23 = vld [vmem:[%s10426_s1 + $0x220] sm:$0x7f] }
 0x6a6   : > { %v2146_v25 = vpop.f32.mrf.mxu0 }
 0x6a7   : > { %v2155_v26 = vmax.f32 %v2063_v24, %v2146_v25  ;;  %v2706_v24 = vld [vmem:[%s10426_s1 + $0x228] sm:$0x7f]  ;;  %v10686_v25 = vld [vmem:[#allocation40_spill] sm:$0xff] }
 0x6a9   : > { %7203 = vmatprep.mubr.msk.f32.mxu1 %vm726_vm4, %v2155_v26  ;;  %7234 = vmatprep.mubr.msk.f32.mxu0 %vm726_vm4, %v2155_v26  ;;  %v10687_v26 = vld [vmem:[#allocation41_spill] sm:$0xff] }
 0x6aa   : > { %7204 = vmatmul.mubr.msk.f32.vlgmr.msra.gmra.mxu1 %vm726_vm4, %v2156_v27  ;;  %7235 = vmatmul.mubr.msk.f32.vlgmr.msra.gmra.mxu0 %vm726_vm4, %v2156_v27  ;;  %v10688_v27 = vld [vmem:[#allocation42_spill] sm:$0xff] }
 0x6ab   : > { %7238 = vmatpush3.msra.mxu1 %v8503_v42  ;;  %7257 = vmatpush3.msra.mxu0 %v8509_v43  ;;  %v10664_v42 = vld [vmem:[#allocation21_spill] sm:$0xff] }
 0x6ac   : > { %7239 = vmatprep.subr.mxu1 %v8517_v50  ;;  %7258 = vmatprep.subr.mxu0 %v8528_v51 }
 0x6ad   : > { %7240 = vmatpush3.msra.mxu1 %v8517_v50  ;;  %7259 = vmatpush3.msra.mxu0 %v8528_v51 }
 0x6ae   : > { %7241 = vmatprep.subr.mxu1 %v8534_v53  ;;  %7260 = vmatprep.subr.mxu0 %v8541_v54 }
 0x6af   : > { %7242 = vmatpush3.msra.mxu1 %v8534_v53  ;;  %7261 = vmatpush3.msra.mxu0 %v8541_v54 }
 0x6b0   : > { %7243 = vmatprep.subr.mxu1 %v10654_v28  ;;  %7262 = vmatprep.subr.mxu0 %v10655_v29 }
 0x6b1   : > { %7244 = vmatpush3.msra.mxu1 %v10654_v28  ;;  %7263 = vmatpush3.msra.mxu0 %v10655_v29  ;;  %v10689_v28 = vld [vmem:[#allocation43_spill] sm:$0xff]  ;;  %v10690_v29 = vld [vmem:[#allocation44_spill] sm:$0xff] }
 0x6b2   : > { %7245 = vmatprep.subr.mxu1 %v10656_v31  ;;  %7264 = vmatprep.subr.mxu0 %v10657_v35 }
 0x6b3   : > { %7246 = vmatpush3.msra.mxu1 %v10656_v31  ;;  %7265 = vmatpush3.msra.mxu0 %v10657_v35  ;;  %v10691_v31 = vld [vmem:[#allocation45_spill] sm:$0xff]  ;;  %v10692_v35 = vld [vmem:[#allocation46_spill] sm:$0xff] }
 0x6b4   : > { %7247 = vmatprep.subr.mxu1 %v10658_v36  ;;  %7266 = vmatprep.subr.mxu0 %v10659_v37 }
 0x6b5   : > { %7248 = vmatpush3.msra.mxu1 %v10658_v36  ;;  %7267 = vmatpush3.msra.mxu0 %v10659_v37  ;;  %v10693_v36 = vld [vmem:[#allocation47_spill] sm:$0xff]  ;;  %v10694_v37 = vld [vmem:[#allocation48_spill] sm:$0xff] }
 0x6b6   : > { %7249 = vmatprep.subr.mxu1 %v10660_v38  ;;  %7268 = vmatprep.subr.mxu0 %v10661_v39 }
 0x6b7   : > { %7250 = vmatpush3.msra.mxu1 %v10660_v38  ;;  %7269 = vmatpush3.msra.mxu0 %v10661_v39  ;;  %v10695_v38 = vld [vmem:[#allocation49_spill] sm:$0xff]  ;;  %v10696_v39 = vld [vmem:[#allocation50_spill] sm:$0xff] }
 0x6b8   : > { %7251 = vmatprep.subr.mxu1 %v10662_v40  ;;  %7270 = vmatprep.subr.mxu0 %v10663_v41 }
 0x6b9   : > { %7252 = vmatpush3.msra.mxu1 %v10662_v40  ;;  %7271 = vmatpush3.msra.mxu0 %v10663_v41  ;;  %v10697_v40 = vld [vmem:[#allocation51_spill] sm:$0xff]  ;;  %v10698_v41 = vld [vmem:[#allocation53_spill] sm:$0xff] }
 0x6ba   : > { %7275 = vmatprep.subr.mxu1 %v10664_v42  ;;  %7294 = vmatprep.subr.mxu0 %v10611_v48 }
 0x76a   : > { %v7205_v43 = vpop.f32.mrf.mxu1  ;;  %v7236_v50 = vpop.f32.mrf.mxu0 }
 0x76b   : > { %v2342_v51 = vmax.f32 %v7205_v43, %v7236_v50  ;;  %v10700_v43 = vld [vmem:[#allocation57_spill] sm:$0xff]  ;;  %v3099_v50 = vld [vmem:[%s10426_s1 + $0x38] sm:$0xf] }
 0x76c   : > { %v2243_v53 = vpop.f32.mrf.mxu1  ;;  %v2332_v54 = vpop.f32.mrf.mxu0 }
 0x76d   : > { %2344 = vst.msk [vmem:[#allocation3 + $0x8] sm:$0xff] %vm899_vm5, %v2342_v51  ;;  %v2341_v55 = vmax.f32 %v2243_v53, %v2332_v54  ;;  %v6216_v51 = vld [vmem:[%s8155_s9 + $0x40] sm:$0xff]  ;;  %v6217_v53 = vld [vmem:[%s8155_s9 + $0x48] sm:$0xff]  ;;  %v6218_v54 = vld [vmem:[%s8155_s9 + $0x50] sm:$0xff] }
 0x76e   : > { %3080 = vst.msk [vmem:[#allocation2 + $0x1] sm:$0xff] %vm184_vm0, %v6216_v51  ;;  %3081 = vst.msk [vmem:[#allocation2 + $0x9] sm:$0xff] %vm184_vm0, %v6217_v53 }
 0x76f   : > { %2343 = vst.msk [vmem:[#allocation3] sm:$0xff] %vm899_vm5, %v2341_v55  ;;  %v6219_v55 = vld [vmem:[%s8155_s9 + $0x58] sm:$0xf] }
 0x770   : > { %3082 = vst.msk [vmem:[#allocation2 + $0x11] sm:$0xff] %vm184_vm0, %v6218_v54 }
 0x771   : > { %3083 = vst.msk [vmem:[#allocation2 + $0x19] sm:$0xf] %vm197_vm3, %v6219_v55 }
 0x774   : > { %v2356_v44 = vld [vmem:[#allocation3 + $0x9] sm:$0x3f] }
 0x775   : > { %v2346_v0 = vld [vmem:[#allocation3 + $0x8] sm:$0x3f] }
 0x776   : > { %v2355_v59 = vld [vmem:[#allocation3 + $0x1] sm:$0xff]  ;;  %v2528_v4 = vld [vmem:[#allocation3 + $0xa] sm:$0x3f] }
 0x777   : > { %v2345_v63 = vld [vmem:[#allocation3] sm:$0xff]  ;;  %7253 = vmatprep.mubr.msk.f32.mxu1 %vm899_vm5, %v2355_v59 }
 0x778   : > { %7272 = vmatprep.mubr.msk.f32.mxu0 %vm899_vm5, %v2345_v63  ;;  %7254 = vmatmul.mubr.msk.f32.vlgmr.msra.gmra.mxu1 %vm899_vm5, %v2356_v44  ;;  %v2527_v45 = vld [vmem:[#allocation3 + $0x2] sm:$0xff] }
 0x779   : > { %7273 = vmatmul.mubr.msk.f32.vlgmr.msra.gmra.mxu0 %vm899_vm5, %v2346_v0  ;;  %7276 = vmatpush3.msra.mxu1 %v10664_v42  ;;  %v10699_v42 = vld [vmem:[#allocation55_spill] sm:$0xff] }
 0x77a   : > { %7291 = vmatprep.mubr.msk.f32.mxu1 %vm899_vm5, %v2527_v45  ;;  %7277 = vmatprep.subr.mxu1 %v10665_v57 }
 0x77b   : > { %7298 = vmatprep.mubr.msk.f32.mxu0 %vm8052_vm6, %v10611_v48  ;;  %7278 = vmatpush3.msra.mxu1 %v10665_v57  ;;  %v9244_v57 = vld [vmem:[%s10426_s1 + $0x30] sm:$0xff] }
 0x77c   : > { %7279 = vmatprep.subr.mxu1 %v10666_v49 }
 0x77d   : > { %7280 = vmatpush3.msra.mxu1 %v10666_v49  ;;  %v3092_v49 = vld [vmem:[#allocation2 + $0x1] sm:$0xff] }
 0x77e   : > { %7281 = vmatprep.subr.mxu1 %v10667_v5 }
 0x77f   : > { %7282 = vmatpush3.msra.mxu1 %v10667_v5  ;;  %v9252_v5 = vld [vmem:[%s10426_s1 + $0x28] sm:$0xff] }
 0x780   : > { %7283 = vmatprep.subr.mxu1 %v10668_v46 }
 0x781   : > { %7284 = vmatpush3.msra.mxu1 %v10668_v46  ;;  %v10701_v46 = vld [vmem:[#allocation58_spill] sm:$0xff] }
 0x782   : > { %7285 = vmatprep.subr.mxu1 %v10669_v61 }
 0x783   : > { %7286 = vmatpush3.msra.mxu1 %v10669_v61  ;;  %v9261_v61 = vld [vmem:[%s10426_s1 + $0x20] sm:$0xff] }
 0x784   : > { %7287 = vmatprep.subr.mxu1 %v10670_v33 }
 0x785   : > { %7288 = vmatpush3.msra.mxu1 %v10670_v33  ;;  %v10702_v33 = vld [vmem:[#allocation59_spill] sm:$0xff] }
 0x786   : > { %7289 = vmatprep.subr.mxu1 %v10671_v34 }
 0x787   : > { %7290 = vmatpush3.msra.mxu1 %v10671_v34  ;;  %v10703_v34 = vld [vmem:[#allocation60_spill] sm:$0xff] }
 0x788   : > { %7292 = vmatmul.mubr.msk.f32.vlgmr.msra.gmra.mxu1 %vm899_vm5, %v2528_v4  ;;  %7339 = vmatprep.subr.mxu1 %v10611_v48  ;;  %v3093_v4 = vld [vmem:[#allocation2 + $0x9] sm:$0xff] }
 0x789   : > { %7340 = vmatpush3.msra.mxu1 %v10672_v8  ;;  %7367 = vmatprep.mubr.msk.f32.mxu1 %vm8052_vm6, %v10611_v48  ;;  %v3091_v8 = vld [vmem:[%s10426_s1 + $0x18] sm:$0xf] }
 0x78a   : > { %7341 = vmatprep.subr.mxu1 %v10611_v48 }
 0x78b   : > { %7342 = vmatpush3.msra.mxu1 %v10673_v10  ;;  %v10704_v10 = vld [vmem:[#allocation61_spill] sm:$0xff] }
 0x78c   : > { %7343 = vmatprep.subr.mxu1 %v10611_v48 }
 0x78d   : > { %7344 = vmatpush3.msra.mxu1 %v10674_v60  ;;  %v10705_v60 = vld [vmem:[#allocation62_spill] sm:$0xff] }
 0x78e   : > { %7345 = vmatprep.subr.mxu1 %v10611_v48 }
 0x78f   : > { %7346 = vmatpush3.msra.mxu1 %v10675_v14  ;;  %v3094_v14 = vld [vmem:[#allocation2 + $0x11] sm:$0xff] }
 0x790   : > { %7347 = vmatprep.subr.mxu1 %v10611_v48 }
 0x791   : > { %7348 = vmatpush3.msra.mxu1 %v10676_v3  ;;  %v9277_v3 = vld [vmem:[%s10426_s1 + $0x10] sm:$0xff] }
 0x792   : > { %7349 = vmatprep.subr.mxu1 %v10611_v48 }
 0x793   : > { %7350 = vmatpush3.msra.mxu1 %v10677_v6  ;;  %v10706_v6 = vld [vmem:[#allocation63_spill] sm:$0xff] }
 0x794   : > { %7351 = vmatprep.subr.mxu1 %v10611_v48 }
 0x795   : > { %7352 = vmatpush3.msra.mxu1 %v10678_v58  ;;  %v3095_v58 = vld [vmem:[#allocation2 + $0x19] sm:$0xf] }
 0x796   : > { %7353 = vmatprep.subr.mxu1 %v10611_v48 }
 0x797   : > { %7354 = vmatpush3.msra.mxu1 %v10679_v30  ;;  %v9287_v30 = vld [vmem:[%s10426_s1 + $0x8] sm:$0xff] }
 0x798   : > { %7355 = vmatprep.subr.mxu1 %v10611_v48 }
 0x799   : > { %7356 = vmatpush3.msra.mxu1 %v10680_v32  ;;  %v10707_v32 = vld [vmem:[#allocation64_spill] sm:$0xff] }
 0x79a   : > { %7357 = vmatprep.subr.mxu1 %v10611_v48 }
 0x79b   : > { %7358 = vmatpush3.msra.mxu1 %v10681_v47  ;;  %v10708_v47 = vld [vmem:[#allocation65_spill] sm:$0xff] }
 0x79c   : > { %7359 = vmatprep.subr.mxu1 %v10611_v48 }
 0x79d   : > { %7360 = vmatpush3.msra.mxu1 %v8859_v62 }
 0x79e   : > { %7361 = vmatprep.subr.mxu1 %v10611_v48 }
 0x79f   : > { %7362 = vmatpush3.msra.mxu1 %v10682_v56  ;;  %v9296_v56 = vld [vmem:[%s10426_s1] sm:$0xff] }
 0x7a0   : > { %7363 = vmatprep.subr.mxu1 %v10611_v48 }
 0x7a1   : > { %7364 = vmatpush3.msra.mxu1 %v10683_v52  ;;  %v3084_v52 = vld [vmem:[#allocation2] sm:$0xff] }
 0x7a2   : > { %7365 = vmatprep.subr.mxu1 %v10611_v48 }
 0x7a3   : > { %7366 = vmatpush3.msra.mxu1 %v10684_v1  ;;  %v10709_v1 = vld [vmem:[#allocation66_spill] sm:$0xff] }
 0x7a4   : > { %7370 = vmatprep.subr.msk.mxu1 %vm227_vm2, %v3099_v50 }
 0x838   : > { %v7255_v2 = vpop.f32.mrf.mxu1 }
 0x839   : > { %v7274_v7 = vpop.f32.mrf.mxu0 }
 0x83a   : > { %v2437_v9 = vpop.f32.mrf.mxu1  ;;  %v2524_v12 = vadd.f32 %v7274_v7, %v7255_v2  ;;  %v3085_v2 = vld [vmem:[#allocation2 + $0x8] sm:$0xff] }
 0x83b   : > { %v2518_v11 = vpop.f32.mrf.mxu0  ;;  %v10710_v7 = vld [vmem:[#allocation67_spill] sm:$0xff] }
 0x83c   : > { %v2519_v15 = vadd.f32 %v2518_v11, %v2437_v9  ;;  %v10711_v9 = vld [vmem:[#allocation68_spill] sm:$0xff]  ;;  %v10712_v11 = vld [vmem:[#allocation69_spill] sm:$0xff] }
 0x848   : > { %v7293_v13 = vpop.f32.mrf.mxu1 }
 0x849   : > { %v2619_v62 = vadd.f32 %v7293_v13, %v2524_v12  ;;  %v10713_v12 = vld [vmem:[#allocation70_spill] sm:$0xff]  ;;  %v3086_v13 = vld [vmem:[#allocation2 + $0x10] sm:$0xff] }
 0x84a   : > { %v2609_v16 = vpop.f32.mrf.mxu1 }
 0x84b   : > { %v2626_v18 = vadd.f32 %v10685_v17, %v2619_v62  ;;  %v2618_v19 = vadd.f32 %v2609_v16, %v2519_v15  ;;  %v3087_v15 = vld [vmem:[#allocation2 + $0x18] sm:$0xf] }
 0x84c   : > { %v3307_v62 = vld [vmem:[%s10426_s1 + $0x58] sm:$0xf] }
 0x84d   : > { %v2628_v20 = vmax.f32 %v2626_v18, 0.0  ;;  %v2625_v21 = vadd.f32 %v10685_v17, %v2618_v19  ;;  %v3300_v19 = vld [vmem:[#allocation2 + $0x2] sm:$0xff] }
 0x84f   : > { %v2627_v22 = vmax.f32 %v2625_v21, 0.0  ;;  %7295 = vmatpush3.msk.msra.mxu0 %vm1191_vm7, %v2628_v20 }
 0x850   : > { %7296 = vmatprep.subr.mxu0 %v10611_v48 }
 0x851   : > { %7297 = vmatpush3.msra.mxu0 %v2627_v22 }
 0x852   : > { %7299 = vmatmul.mubr.msk.f32.vlgmr.msra.gmra.mxu0 %vm1187_vm8, %v2629_v23  ;;  %7301 = vmatprep.subr.mxu0 %v10611_v48  ;;  %v9327_v23 = vld [vmem:[%s10426_s1 + $0x48] sm:$0xff] }
 0x853   : > { %7302 = vmatpush3.msk.msra.mxu0 %vm1191_vm7, %v2628_v20  ;;  %7305 = vmatprep.mubr.msk.f32.mxu0 %vm8052_vm6, %v10611_v48 }
 0x854   : > { %7303 = vmatprep.subr.mxu0 %v10611_v48 }
 0x855   : > { %7304 = vmatpush3.msra.mxu0 %v2627_v22  ;;  %v9320_v22 = vld [vmem:[%s10426_s1 + $0x50] sm:$0xff] }
 0x856   : > { %7306 = vmatmul.mubr.msk.f32.vlgmr.msra.gmra.mxu0 %vm1187_vm8, %v2706_v24  ;;  %7308 = vmatprep.subr.mxu0 %v10611_v48  ;;  %v9335_v24 = vld [vmem:[%s10426_s1 + $0x40] sm:$0xff] }
 0x857   : > { %7309 = vmatpush3.msra.mxu0 %v10686_v25  ;;  %7336 = vmatprep.mubr.msk.f32.mxu0 %vm8052_vm6, %v10611_v48  ;;  %v3301_v25 = vld [vmem:[#allocation2 + $0xa] sm:$0xff] }
 0x858   : > { %7310 = vmatprep.subr.mxu0 %v10611_v48 }
 0x859   : > { %7311 = vmatpush3.msra.mxu0 %v10687_v26  ;;  %v3302_v26 = vld [vmem:[#allocation2 + $0x12] sm:$0xff] }
 0x85a   : > { %7312 = vmatprep.subr.mxu0 %v10611_v48 }
 0x85b   : > { %7313 = vmatpush3.msra.mxu0 %v10688_v27  ;;  %v3303_v27 = vld [vmem:[#allocation2 + $0x1a] sm:$0xf] }
 0x85c   : > { %7314 = vmatprep.subr.mxu0 %v10611_v48 }
 0x85d   : > { %7315 = vmatpush3.msra.mxu0 %v10689_v28  ;;  %v9347_v28 = vld [vmem:[%s10426_s1 + $0x120] sm:$0xff] }
 0x85e   : > { %7316 = vmatprep.subr.mxu0 %v10611_v48 }
 0x85f   : > { %7317 = vmatpush3.msra.mxu0 %v10690_v29  ;;  %v9352_v29 = vld [vmem:[%s10426_s1 + $0x130] sm:$0xff] }
 0x860   : > { %7318 = vmatprep.subr.mxu0 %v10611_v48 }
 0x861   : > { %7319 = vmatpush3.msra.mxu0 %v10691_v31 }
 0x862   : > { %7320 = vmatprep.subr.mxu0 %v10611_v48 }
 0x863   : > { %7321 = vmatpush3.msra.mxu0 %v10692_v35 }
 0x864   : > { %7322 = vmatprep.subr.mxu0 %v10611_v48 }
 0x865   : > { %7323 = vmatpush3.msra.mxu0 %v10693_v36 }
 0x866   : > { %7324 = vmatprep.subr.mxu0 %v10611_v48 }
 0x867   : > { %7325 = vmatpush3.msra.mxu0 %v10694_v37 }
 0x868   : > { %7326 = vmatprep.subr.mxu0 %v10611_v48 }
 0x869   : > { %7327 = vmatpush3.msra.mxu0 %v10695_v38 }
 0x86a   : > { %7328 = vmatprep.subr.mxu0 %v10611_v48 }
 0x86b   : > { %7329 = vmatpush3.msra.mxu0 %v10696_v39 }
 0x86c   : > { %7330 = vmatprep.subr.mxu0 %v10611_v48 }
 0x86d   : > { %7331 = vmatpush3.msra.mxu0 %v10697_v40 }
 0x86e   : > { %7332 = vmatprep.subr.mxu0 %v10611_v48 }
 0x86f   : > { %7333 = vmatpush3.msra.mxu0 %v10698_v41 }
 0x870   : > { %7334 = vmatprep.subr.mxu0 %v10611_v48 }
 0x871   : > { %7335 = vmatpush3.msra.mxu0 %v10699_v42 }
 0x872   : > { %2988 = vmatprep.subr.mxu0 %v10700_v43 }
 0x912   : > { %v2702_v59 = vpop.f32.mrf.mxu0 }
 0x914   : > { %v7300_v63 = vpop.f32.mrf.mxu0 }
 0x916   : > { %v2776_v44 = vpop.f32.mrf.mxu0 }
 0x917   : > { %v2780_v0 = vmax.f32 %v2702_v59, %v2776_v44 }
 0x918   : > { %v7307_v45 = vpop.f32.mrf.mxu0 }
 0x919   : > { %7337 = vmatmul.mubr.msk.f32.vlgmr.msra.gmra.mxu0 %vm726_vm4, %v2780_v0  ;;  %7368 = vmatmul.mubr.msk.f32.vlgmr.msra.gmra.mxu1 %vm726_vm4, %v2780_v0 }
 0x91a   : > { %7371 = vmatpush3.msk.msra.mxu1 %vm227_vm2, %v3099_v50  ;;  %2989 = vmatpush1.msra.mxu0 %v10701_v46 }
 0x91b   : > { %7372 = vmatprep.subr.mxu1 %v9244_v57  ;;  %7378 = vmatprep.mubr.msk.f32.mxu1 %vm184_vm0, %v3092_v49 }
 0x91c   : > { %7373 = vmatpush3.msra.mxu1 %v9244_v57  ;;  %2990 = vmatprep.subr.mxu0 %v10702_v33 }
 0x91d   : > { %7374 = vmatprep.subr.mxu1 %v9252_v5  ;;  %2991 = vmatpush1.msra.mxu0 %v10703_v34 }
 0x91e   : > { %7375 = vmatpush3.msra.mxu1 %v9252_v5  ;;  %2992 = vmatprep.subr.mxu0 %v10704_v10 }
 0x91f   : > { %7376 = vmatprep.subr.mxu1 %v9261_v61  ;;  %2993 = vmatpush1.msra.mxu0 %v10705_v60 }
 0x920   : > { %7377 = vmatpush3.msra.mxu1 %v9261_v61  ;;  %2994 = vmatprep.subr.mxu0 %v10706_v6 }
 0x921   : > { %7379 = vmatmul.mubr.msk.f32.vlgmr.msra.gmra.mxu1 %vm184_vm0, %v3093_v4  ;;  %7384 = vmatprep.subr.msk.mxu1 %vm227_vm2, %v3091_v8  ;;  %v9374_v4 = vld [vmem:[%s10426_s1 + $0x310] ss:$0 sm:$0xff] }
 0x922   : > { %7385 = vmatpush3.msk.msra.mxu1 %vm227_vm2, %v3091_v8  ;;  %7381 = vmatprep.mubr.msk.f32.mxu1 %vm184_vm0, %v3094_v14 }
 0x923   : > { %7386 = vmatprep.subr.mxu1 %v9277_v3  ;;  %2995 = vmatpush1.msra.mxu0 %v10707_v32 }
 0x924   : > { %7387 = vmatpush3.msra.mxu1 %v9277_v3  ;;  %2996 = vmatprep.subr.mxu0 %v10708_v47 }
 0x925   : > { %7382 = vmatmul.mubr.msk.f32.gmra.mxu1 %vm184_vm0, %v3095_v58  ;;  %7388 = vmatprep.subr.mxu1 %v9287_v30 }
 0x926   : > { %7389 = vmatpush3.msra.mxu1 %v9287_v30  ;;  %2997 = vmatpush1.msra.mxu0 %v10709_v1 }
 0x927   : > { %7390 = vmatprep.subr.mxu1 %v9296_v56  ;;  %7392 = vmatprep.mubr.msk.f32.mxu1 %vm184_vm0, %v3084_v52 }
 0x928   : > { %7391 = vmatpush3.msra.mxu1 %v9296_v56  ;;  %2998 = vmatprep.subr.mxu0 %v10710_v7  ;;  %v9388_v7 = vld [vmem:[%s10426_s1 + $0x128] sm:$0xff] }
 0x929   : > { %7393 = vmatmul.mubr.msk.f32.vlgmr.msra.gmra.mxu1 %vm184_vm0, %v3085_v2  ;;  %2999 = vmatpush1.msra.mxu0 %v10711_v9  ;;  %v9393_v9 = vld [vmem:[%s10426_s1 + $0x138] sm:$0xff] }
 0x92a   : > { %3000 = vmatprep.subr.mxu0 %v10712_v11  ;;  %3034 = vmatprep.mubr.f32.mxu0 %v10611_v48  ;;  %v9398_v11 = vld [vmem:[%s10426_s1 + $0x1a8] sm:$0xff] }
 0x92b   : > { %3001 = vmatpush1.msra.mxu0 %v10713_v12  ;;  %7395 = vmatprep.mubr.msk.f32.mxu1 %vm184_vm0, %v3086_v13  ;;  %v9403_v12 = vld [vmem:[%s10426_s1 + $0x218] sm:$0xff]  ;;  %v9412_v13 = vld [vmem:[%s10426_s1 + $0x1a0] sm:$0xff] }
 0x92c   : > { %7398 = vmatprep.subr.msk.mxu0 %vm227_vm2, %v3307_v62 }
 0x92d   : > { %7396 = vmatmul.mubr.msk.f32.gmra.mxu1 %vm184_vm0, %v3087_v15  ;;  %v9417_v15 = vld [vmem:[%s10426_s1 + $0x210] sm:$0xff] }
 0x92e   : > { %7420 = vmatprep.mubr.msk.f32.mxu1 %vm184_vm0, %v9347_v28 }
 0x9d9   : > { %v2864_v16 = vpop.f32.mrf.mxu0  ;;  %v2948_v17 = vpop.f32.mrf.mxu1 }
 0x9da   : > { %v2952_v18 = vmax.f32 %v2864_v16, %v2948_v17  ;;  %v9431_v16 = vld [vmem:[%s10426_s1 + $0x208] sm:$0xff]  ;;  %v9440_v17 = vld [vmem:[%s10426_s1 + $0x190] sm:$0xff] }
 0x9db   : > { %v7338_v20 = vpop.f32.mrf.mxu0  ;;  %v7369_v21 = vpop.f32.mrf.mxu1 }
 0x9dc   : > { %6215 = vmatmul.mubr.msk.f32.vlgmr.msra.gmra.mxu0 %vm1526_vm9, %v2952_v18  ;;  %v9445_v18 = vld [vmem:[%s10426_s1 + $0x200] sm:$0xff]  ;;  %v9459_v20 = vld [vmem:[%s10426_s1 + $0x1f8] sm:$0xff] }
 0x9dd   : > { %7399 = vmatpush3.msk.msra.mxu0 %vm227_vm2, %v3307_v62  ;;  %7406 = vmatprep.mubr.msk.f32.mxu0 %vm184_vm0, %v3300_v19  ;;  %v9426_v62 = vld [vmem:[%s10426_s1 + $0x198] sm:$0xff]  ;;  %v9454_v19 = vld [vmem:[%s10426_s1 + $0x188] sm:$0xff]  ;;  %v9468_v21 = vld [vmem:[%s10426_s1 + $0x180] sm:$0xff] }
 0x9de   : > { %7400 = vmatprep.subr.mxu0 %v9320_v22 }
 0x9df   : > { %7401 = vmatpush3.msra.mxu0 %v9320_v22 }
 0x9e0   : > { %7402 = vmatprep.subr.mxu0 %v9327_v23 }
 0x9e1   : > { %7403 = vmatpush3.msra.mxu0 %v9327_v23  ;;  %v7380_v31 = vpop.f32.mrf.mxu1 }
 0x9e2   : > { %7404 = vmatprep.subr.mxu0 %v9335_v24 }
 0x9e3   : > { %7405 = vmatpush3.msra.mxu0 %v9335_v24  ;;  %v3181_v35 = vpop.f32.mrf.mxu1 }
 0x9e4   : > { %7407 = vmatmul.mubr.msk.f32.vlgmr.msra.gmra.mxu0 %vm184_vm0, %v3301_v25  ;;  %v9473_v25 = vld [vmem:[%s10426_s1 + $0x1f0] sm:$0xff] }
 0x9e5   : > { %7409 = vmatprep.mubr.msk.f32.mxu0 %vm184_vm0, %v3302_v26  ;;  %v7383_v36 = vpop.f32.mrf.mxu1  ;;  %v9482_v26 = vld [vmem:[%s10426_s1 + $0x178] sm:$0xff] }
 0x9e7   : > { %v3191_v37 = vpop.f32.mrf.mxu1 }
 0x9e8   : > { %7410 = vmatmul.mubr.msk.f32.gmra.mxu0 %vm184_vm0, %v3303_v27  ;;  %v9487_v27 = vld [vmem:[%s10426_s1 + $0x1e8] sm:$0xff] }
 0x9e9   : > { %7431 = vmatprep.mubr.msk.f32.mxu0 %vm184_vm0, %v9352_v29  ;;  %v7394_v38 = vpop.f32.mrf.mxu1 }
 0x9ea   : > { %v3287_v63 = vadd.f32 %v7394_v38, %v7380_v31  ;;  %v9496_v31 = vld [vmem:[%s10426_s1 + $0x170] sm:$0xff]  ;;  %v9524_v38 = vld [vmem:[%s10426_s1 + $0x160] sm:$0xff] }
 0x9eb   : > { %v3281_v42 = vpop.f32.mrf.mxu1 }
 0x9ec   : > { %v3282_v0 = vadd.f32 %v3281_v42, %v3181_v35  ;;  %v9501_v35 = vld [vmem:[%s10426_s1 + $0x1e0] sm:$0xff]  ;;  %v9543_v42 = vld [vmem:[%s10426_s1 + $0x1c8] sm:$0xff] }
 0x9ed   : > { %v7397_v50 = vpop.f32.mrf.mxu1 }
 0x9ee   : > { %v3297_v44 = vadd.f32 %v7397_v50, %v7383_v36  ;;  %v9510_v36 = vld [vmem:[%s10426_s1 + $0x168] sm:$0xff]  ;;  %v9561_v50 = vld [vmem:[%s10426_s1 + $0x1c0] sm:$0xff] }
 0x9ef   : > { %v3291_v55 = vpop.f32.mrf.mxu1 }
 0x9f0   : > { %v3292_v49 = vadd.f32 %v3291_v55, %v3191_v37  ;;  %v9515_v37 = vld [vmem:[%s10426_s1 + $0x1d8] sm:$0xff]  ;;  %v9584_v55 = vld [vmem:[%s10426_s1 + $0x140] sm:$0xff] }
 0x9f1   : > { %10714 = vst [vmem:[#allocation11_spill] sm:$0xff] %v9584_v55 }
 0xa9c   : > { %v9358_v39 = vpop.f32.mrf.mxu0 }
 0xa9d   : > { %v3049_v40 = vrot.slane %v9358_v39, 2  ;;  %v3044_v41 = vrot.slane %v9358_v39, 1  ;;  %v3054_v43 = vrot.slane %v9358_v39, 3 }
 0xa9e   : > { %v9365_v51 = vpop.f32.mrf.mxu0 }
 0xa9f   : > { %3050 = vrot.lane.b32.xlu1 %v3049_v40, %s8054_s19  ;;  %3045 = vrot.lane.b32.xlu0 %v3044_v41, %s8053_s17  ;;  %v3063_v54 = vrot.slane %v9365_v51, 5  ;;  %v3068_v46 = vrot.slane %v9365_v51, 6  ;;  %v9529_v40 = vld [vmem:[%s10426_s1 + $0x1d0] sm:$0xff]  ;;  %v9538_v41 = vld [vmem:[%s10426_s1 + $0x158] sm:$0xff] }
 0xaa3   : > { %3055 = vrot.lane.b32.xlu1 %v3054_v43, %s8055_s20  ;;  %v9556_v43 = vld [vmem:[%s10426_s1 + $0x150] sm:$0xff] }
 0xaa4   : > { %v7408_v53 = vpop.f32.mrf.mxu0 }
 0xaa5   : > { %v3409_v33 = vadd.f32 %v7408_v53, %v3287_v63  ;;  %v9570_v53 = vld [vmem:[%s10426_s1 + $0x148] sm:$0xff]  ;;  %v9598_v63 = vld [vmem:[%s10426_s1 + $0xd8] sm:$0xff] }
 0xaa6   : > { %v3389_v59 = vpop.f32.mrf.mxu0 }
 0xaa7   : > { %3064 = vrot.lane.b32.xlu1 %v3063_v54, %s8053_s17  ;;  %v3408_v10 = vadd.f32 %v3389_v59, %v3282_v0  ;;  %v3418_v6 = vadd.f32 %v9374_v4, %v3409_v33  ;;  %v9575_v54 = vld [vmem:[%s10426_s1 + $0x1b8] sm:$0xff]  ;;  %v9589_v59 = vld [vmem:[%s10426_s1 + $0x1b0] sm:$0xff]  ;;  %v3041_v0 = vld [vmem:[%s10426_s1 + $0x320] sm:$0x1] }
 0xaa8   : > { %v7411_v45 = vpop.f32.mrf.mxu0  ;;  %10715 = vst [vmem:[#allocation12_spill] sm:$0xff] %v9589_v59 }
 0xaa9   : > { %v3411_v34 = vadd.f32 %v7411_v45, %v3297_v44  ;;  %v3417_v47 = vadd.f32 %v9374_v4, %v3408_v10  ;;  %v3422_v1 = vmax.f32 %v3418_v6, 0.0  ;;  %v9604_v44 = vld [vmem:[%s10426_s1 + $0x98] sm:$0xff]  ;;  %v3042_v45 = vadd.f32 %v3041_v0, %v9358_v39 }
 0xaaa   : > { %v3399_v8 = vpop.f32.mrf.mxu0  ;;  %v3060_v10 = vrot.slane %v9365_v51, 4  ;;  %v9618_v51 = vld [vmem:[%s10426_s1 + $0xd0] sm:$0xff] }
 0xaab   : > { %v3420_v60 = vadd.f32 %v9374_v4, %v3411_v34  ;;  %v3410_v14 = vadd.f32 %v3399_v8, %v3292_v49  ;;  %3069 = vrot.lane.b32.xlu1 %v3068_v46, %s8054_s19  ;;  %v3421_v2 = vmax.f32 %v3417_v47, 0.0 }
 0xaad   : > { %v3424_v58 = vmax.f32 %v3420_v60, 0.0  ;;  %v3419_v32 = vadd.f32 %v9374_v4, %v3410_v14 }
 0xaaf   : > { %v3423_v52 = vmax.f32 %v3419_v32, 0.0  ;;  %7412 = vmatprep.subr.msk.mxu1 %vm227_vm2, %v3424_v58  ;;  %7423 = vmatprep.subr.msk.mxu0 %vm227_vm2, %v3424_v58 }
 0xab0   : > { %7413 = vmatpush3.msk.msra.mxu1 %vm227_vm2, %v3424_v58  ;;  %7424 = vmatpush3.msk.msra.mxu0 %vm227_vm2, %v3424_v58 }
 0xab1   : > { %7414 = vmatprep.subr.mxu1 %v3423_v52  ;;  %7425 = vmatprep.subr.mxu0 %v3423_v52 }
 0xab2   : > { %7415 = vmatpush3.msra.mxu1 %v3423_v52  ;;  %7426 = vmatpush3.msra.mxu0 %v3423_v52 }
 0xab3   : > { %7416 = vmatprep.subr.mxu1 %v3422_v1  ;;  %7427 = vmatprep.subr.mxu0 %v3422_v1 }
 0xab4   : > { %7417 = vmatpush3.msra.mxu1 %v3422_v1  ;;  %7428 = vmatpush3.msra.mxu0 %v3422_v1 }
 0xab5   : > { %7418 = vmatprep.subr.mxu1 %v3421_v2  ;;  %7429 = vmatprep.subr.mxu0 %v3421_v2 }
 0xab6   : > { %7419 = vmatpush3.msra.mxu1 %v3421_v2  ;;  %7430 = vmatpush3.msra.mxu0 %v3421_v2 }
 0xab7   : > { %7421 = vmatmul.mubr.msk.f32.vlgmr.msra.gmra.mxu1 %vm184_vm0, %v9388_v7  ;;  %7432 = vmatmul.mubr.msk.f32.vlgmr.msra.gmra.mxu0 %vm184_vm0, %v9393_v9 }
 0xab8   : > { %7434 = vmatprep.subr.mxu1 %v9398_v11  ;;  %7465 = vmatprep.subr.mxu0 %v9403_v12 }
 0xab9   : > { %7435 = vmatpush3.msra.mxu1 %v9398_v11  ;;  %7466 = vmatpush3.msra.mxu0 %v9403_v12 }
 0xaba   : > { %7436 = vmatprep.subr.mxu1 %v9412_v13  ;;  %7467 = vmatprep.subr.mxu0 %v9417_v15 }
 0xabb   : > { %7437 = vmatpush3.msra.mxu1 %v9412_v13  ;;  %7468 = vmatpush3.msra.mxu0 %v9417_v15 }
 0xabc   : > { %7438 = vmatprep.subr.mxu1 %v9426_v62  ;;  %7469 = vmatprep.subr.mxu0 %v9431_v16 }
 0xabd   : > { %7439 = vmatpush3.msra.mxu1 %v9426_v62  ;;  %7470 = vmatpush3.msra.mxu0 %v9431_v16 }
 0xabe   : > { %7440 = vmatprep.subr.mxu1 %v9440_v17  ;;  %7471 = vmatprep.subr.mxu0 %v9445_v18 }
 0xabf   : > { %7441 = vmatpush3.msra.mxu1 %v9440_v17  ;;  %7472 = vmatpush3.msra.mxu0 %v9445_v18 }
 0xac0   : > { %7442 = vmatprep.subr.mxu1 %v9454_v19  ;;  %7473 = vmatprep.subr.mxu0 %v9459_v20 }
 0xac1   : > { %7443 = vmatpush3.msra.mxu1 %v9454_v19  ;;  %7474 = vmatpush3.msra.mxu0 %v9459_v20 }
 0xac2   : > { %7444 = vmatprep.subr.mxu1 %v9468_v21  ;;  %7475 = vmatprep.subr.mxu0 %v9473_v25 }
 0xac3   : > { %7445 = vmatpush3.msra.mxu1 %v9468_v21  ;;  %7476 = vmatpush3.msra.mxu0 %v9473_v25 }
 0xac4   : > { %7446 = vmatprep.subr.mxu1 %v9482_v26  ;;  %7477 = vmatprep.subr.mxu0 %v9487_v27 }
 0xac5   : > { %7447 = vmatpush3.msra.mxu1 %v9482_v26  ;;  %7478 = vmatpush3.msra.mxu0 %v9487_v27 }
 0xac6   : > { %7448 = vmatprep.subr.mxu1 %v9496_v31  ;;  %7479 = vmatprep.subr.mxu0 %v9501_v35 }
 0xac7   : > { %7449 = vmatpush3.msra.mxu1 %v9496_v31  ;;  %7480 = vmatpush3.msra.mxu0 %v9501_v35 }
 0xac8   : > { %7450 = vmatprep.subr.mxu1 %v9510_v36  ;;  %7481 = vmatprep.subr.mxu0 %v9515_v37 }
 0xac9   : > { %7451 = vmatpush3.msra.mxu1 %v9510_v36  ;;  %7482 = vmatpush3.msra.mxu0 %v9515_v37 }
 0xaca   : > { %7452 = vmatprep.subr.mxu1 %v9524_v38  ;;  %7483 = vmatprep.subr.mxu0 %v9529_v40 }
 0xacb   : > { %7453 = vmatpush3.msra.mxu1 %v9524_v38  ;;  %7484 = vmatpush3.msra.mxu0 %v9529_v40 }
 0xacc   : > { %7454 = vmatprep.subr.mxu1 %v9538_v41  ;;  %7485 = vmatprep.subr.mxu0 %v9543_v42 }
 0xacd   : > { %7455 = vmatpush3.msra.mxu1 %v9538_v41  ;;  %7486 = vmatpush3.msra.mxu0 %v9543_v42 }
 0xace   : > { %7456 = vmatprep.subr.mxu1 %v9556_v43  ;;  %7487 = vmatprep.subr.mxu0 %v9561_v50 }
 0xacf   : > { %7457 = vmatpush3.msra.mxu1 %v9556_v43  ;;  %7488 = vmatpush3.msra.mxu0 %v9561_v50 }
 0xad0   : > { %7458 = vmatprep.subr.mxu1 %v9570_v53  ;;  %7489 = vmatprep.subr.mxu0 %v9575_v54 }
 0xad1   : > { %7459 = vmatpush3.msra.mxu1 %v9570_v53  ;;  %7490 = vmatpush3.msra.mxu0 %v9575_v54 }
 0xad2   : > { %7460 = vmatprep.subr.mxu1 %v9584_v55  ;;  %7491 = vmatprep.subr.mxu0 %v9589_v59 }
 0xad3   : > { %7461 = vmatpush3.msra.mxu1 %v9584_v55  ;;  %7492 = vmatpush3.msra.mxu0 %v9589_v59 }
 0xad4   : > { %7496 = vmatprep.subr.mxu1 %v9598_v63  ;;  %7515 = vmatprep.subr.mxu0 %v9604_v44 }
 0xb11   : > { %v3051_v49 = vpop.permute.xlu1 %3050  ;;  %v3046_v46 = vpop.permute.xlu0 %3045 }
 0xb12   : > { %v3048_v33 = vadd.f32 %v3046_v46, %v3042_v45  ;;  %v9635_v45 = vld [vmem:[%s10426_s1 + $0xc8] sm:$0xff]  ;;  %v9656_v46 = vld [vmem:[%s10426_s1 + $0x80] sm:$0xff] }
 0xb14   : > { %v3053_v34 = vadd.f32 %v3051_v49, %v3048_v33  ;;  %v9649_v49 = vld [vmem:[%s10426_s1 + $0xc0] sm:$0xff]  ;;  %v9663_v33 = vld [vmem:[%s10426_s1 + $0xb8] sm:$0xff] }
 0xb15   : > { %v3056_v8 = vpop.permute.xlu1 %3055  ;;  %10716 = vst [vmem:[#allocation13_spill] sm:$0xff] %v9663_v33 }
 0xb16   : > { %v3058_v60 = vadd.f32 %v3056_v8, %v3053_v34  ;;  %v9670_v34 = vld [vmem:[%s10426_s1 + $0x78] sm:$0xff]  ;;  %v9675_v8 = vld [vmem:[%s10426_s1 + $0xb0] sm:$0xff] }
 0xb17   : > { %10717 = vst [vmem:[#allocation14_spill] sm:$0xff] %v9670_v34  ;;  %10718 = vst [vmem:[#allocation15_spill] sm:$0xff] %v9675_v8 }
 0xb18   : > { %v3062_v14 = vadd.f32 %v3060_v10, %v3058_v60  ;;  %v9680_v10 = vld [vmem:[%s10426_s1 + $0x70] sm:$0xff]  ;;  %v9687_v60 = vld [vmem:[%s10426_s1 + $0xa8] sm:$0xff] }
 0xb19   : > { %v3065_v6 = vpop.permute.xlu1 %3064  ;;  %10719 = vst [vmem:[#allocation16_spill] sm:$0xff] %v9680_v10  ;;  %10720 = vst [vmem:[#allocation17_spill] sm:$0xff] %v9687_v60 }
 0xb1a   : > { %v3067_v58 = vadd.f32 %v3065_v6, %v3062_v14  ;;  %v9694_v14 = vld [vmem:[%s10426_s1 + $0x68] sm:$0xff]  ;;  %v9701_v6 = vld [vmem:[%s10426_s1 + $0xa0] sm:$0xff] }
 0xb1b   : > { %10721 = vst [vmem:[#allocation18_spill] sm:$0xff] %v9694_v14  ;;  %10722 = vst [vmem:[#allocation19_spill] sm:$0xff] %v9701_v6 }
 0xb1d   : > { %v3070_v32 = vpop.permute.xlu1 %3069 }
 0xb1e   : > { %v3072_v47 = vadd.f32 %v3070_v32, %v3067_v58  ;;  %v9708_v58 = vld [vmem:[%s10426_s1 + $0x60] sm:$0xff]  ;;  %v9719_v32 = vld [vmem:[%s10426_s1 + $0x118] sm:$0xff] }
 0xb1f   : > { %10723 = vst [vmem:[#allocation20_spill] sm:$0xff] %v9708_v58  ;;  %10724 = vst [vmem:[#allocation21_spill] sm:$0xff] %v9719_v32 }
 0xb20   : > { %v3073_v52 = vmax.f32 %v3072_v47, 0.0 }
 0xb22   : > { %3074 = vst.msk [vmem:[#allocation4 + $0x1] sm:$0x1] %vm1634_vm10, %v3073_v52 }
 0xb77   : > { %v7422_v1 = vpop.f32.mrf.mxu1  ;;  %v7433_v2 = vpop.f32.mrf.mxu0 }
 0xb78   : > { %v3595_v55 = vmax.f32 %v7422_v1, %v7433_v2 }
 0xb79   : > { %v3502_v59 = vpop.f32.mrf.mxu1  ;;  %v3585_v39 = vpop.f32.mrf.mxu0 }
 0xb7a   : > { %v3594_v0 = vmax.f32 %v3502_v59, %v3585_v39  ;;  %v9629_v59 = vld [vmem:[%s10426_s1 + $0x90] sm:$0xff] }
 0xb7c   : > { %7462 = vmatprep.mubr.msk.f32.mxu1 %vm726_vm4, %v3594_v0  ;;  %7493 = vmatprep.mubr.msk.f32.mxu0 %vm726_vm4, %v3594_v0 }
 0xb7d   : > { %7463 = vmatmul.mubr.msk.f32.vlgmr.msra.gmra.mxu1 %vm726_vm4, %v3595_v55  ;;  %7494 = vmatmul.mubr.msk.f32.vlgmr.msra.gmra.mxu0 %vm726_vm4, %v3595_v55  ;;  %v9642_v55 = vld [vmem:[%s10426_s1 + $0x88] sm:$0xff] }
 0xb7e   : > { %7497 = vmatpush3.msra.mxu1 %v9598_v63  ;;  %7516 = vmatpush3.msra.mxu0 %v9604_v44 }
 0xb7f   : > { %7498 = vmatprep.subr.mxu1 %v9618_v51  ;;  %7517 = vmatprep.subr.mxu0 %v9629_v59 }
 0xb80   : > { %7499 = vmatpush3.msra.mxu1 %v9618_v51  ;;  %7518 = vmatpush3.msra.mxu0 %v9629_v59 }
 0xb81   : > { %7500 = vmatprep.subr.mxu1 %v9635_v45  ;;  %7519 = vmatprep.subr.mxu0 %v9642_v55 }
 0xb82   : > { %7501 = vmatpush3.msra.mxu1 %v9635_v45  ;;  %7520 = vmatpush3.msra.mxu0 %v9642_v55 }
 0xb83   : > { %7502 = vmatprep.subr.mxu1 %v9649_v49  ;;  %7521 = vmatprep.subr.mxu0 %v9656_v46 }
 0xb84   : > { %7503 = vmatpush3.msra.mxu1 %v9649_v49  ;;  %7522 = vmatpush3.msra.mxu0 %v9656_v46 }
 0xb85   : > { %7504 = vmatprep.subr.mxu1 %v9663_v33  ;;  %7523 = vmatprep.subr.mxu0 %v9670_v34 }
 0xb86   : > { %7505 = vmatpush3.msra.mxu1 %v9663_v33  ;;  %7524 = vmatpush3.msra.mxu0 %v9670_v34 }
 0xb87   : > { %7506 = vmatprep.subr.mxu1 %v9675_v8  ;;  %7525 = vmatprep.subr.mxu0 %v9680_v10 }
 0xb88   : > { %7507 = vmatpush3.msra.mxu1 %v9675_v8  ;;  %7526 = vmatpush3.msra.mxu0 %v9680_v10  ;;  %v9731_v10 = vld [vmem:[%s10426_s1 + $0x110] sm:$0xff] }
 0xb89   : > { %7508 = vmatprep.subr.mxu1 %v9687_v60  ;;  %7527 = vmatprep.subr.mxu0 %v9694_v14  ;;  %10725 = vst [vmem:[#allocation22_spill] sm:$0xff] %v9731_v10 }
 0xb8a   : > { %7509 = vmatpush3.msra.mxu1 %v9687_v60  ;;  %7528 = vmatpush3.msra.mxu0 %v9694_v14 }
 0xb8b   : > { %7510 = vmatprep.subr.mxu1 %v9701_v6  ;;  %7529 = vmatprep.subr.mxu0 %v9708_v58 }
 0xb8c   : > { %7511 = vmatpush3.msra.mxu1 %v9701_v6  ;;  %7530 = vmatpush3.msra.mxu0 %v9708_v58 }
 0xb8d   : > { %7534 = vmatprep.subr.mxu1 %v9719_v32  ;;  %7553 = vmatprep.subr.mxu0 %v10611_v48 }
 0xc3d   : > { %v7464_v47 = vpop.f32.mrf.mxu1  ;;  %v7495_v52 = vpop.f32.mrf.mxu0 }
 0xc3e   : > { %v3781_v1 = vmax.f32 %v7464_v47, %v7495_v52  ;;  %v9770_v52 = vld [vmem:[%s10426_s1 + $0xe8] sm:$0xff] }
 0xc3f   : > { %v3682_v2 = vpop.f32.mrf.mxu1  ;;  %v3771_v39 = vpop.f32.mrf.mxu0  ;;  %10730 = vst [vmem:[#allocation27_spill] sm:$0xff] %v9770_v52 }
 0xc40   : > { %3783 = vst.msk [vmem:[#allocation3 + $0x8] sm:$0xff] %vm899_vm5, %v3781_v1  ;;  %v3780_v0 = vmax.f32 %v3682_v2, %v3771_v39  ;;  %v9777_v1 = vld [vmem:[%s10426_s1 + $0xe0] sm:$0xff]  ;;  %v9790_v39 = vld [vmem:[%s10426_s1 + $0x308] sm:$0xff] }
 0xc41   : > { %10731 = vst [vmem:[#allocation28_spill] sm:$0xff] %v9777_v1  ;;  %10732 = vst [vmem:[#allocation29_spill] sm:$0xff] %v9790_v39 }
 0xc42   : > { %3782 = vst.msk [vmem:[#allocation3] sm:$0xff] %vm899_vm5, %v3780_v0  ;;  %v9797_v0 = vld [vmem:[%s10426_s1 + $0x300] sm:$0xff] }
 0xc43   : > { %10733 = vst [vmem:[#allocation30_spill] sm:$0xff] %v9797_v0 }
 0xc47   : > { %v3795_v58 = vld [vmem:[#allocation3 + $0x9] sm:$0x3f] }
 0xc48   : > { %v3785_v60 = vld [vmem:[#allocation3 + $0x8] sm:$0x3f] }
 0xc49   : > { %v3794_v6 = vld [vmem:[#allocation3 + $0x1] sm:$0xff]  ;;  %v3967_v2 = vld [vmem:[#allocation3 + $0xa] sm:$0x3f] }
 0xc4a   : > { %v3784_v14 = vld [vmem:[#allocation3] sm:$0xff]  ;;  %7512 = vmatprep.mubr.msk.f32.mxu1 %vm899_vm5, %v3794_v6  ;;  %v9756_v6 = vld [vmem:[%s10426_s1 + $0xf8] sm:$0xff] }
 0xc4b   : > { %7531 = vmatprep.mubr.msk.f32.mxu0 %vm899_vm5, %v3784_v14  ;;  %7513 = vmatmul.mubr.msk.f32.vlgmr.msra.gmra.mxu1 %vm899_vm5, %v3795_v58  ;;  %v3966_v47 = vld [vmem:[#allocation3 + $0x2] sm:$0xff]  ;;  %10728 = vst [vmem:[#allocation25_spill] sm:$0xff] %v9756_v6  ;;  %v9763_v58 = vld [vmem:[%s10426_s1 + $0xf0] sm:$0xff] }
 0xc4c   : > { %7532 = vmatmul.mubr.msk.f32.vlgmr.msra.gmra.mxu0 %vm899_vm5, %v3785_v60  ;;  %7535 = vmatpush3.msra.mxu1 %v9719_v32  ;;  %v9740_v14 = vld [vmem:[%s10426_s1 + $0x108] sm:$0xff]  ;;  %v9749_v60 = vld [vmem:[%s10426_s1 + $0x100] sm:$0xff]  ;;  %10729 = vst [vmem:[#allocation26_spill] sm:$0xff] %v9763_v58 }
 0xc4d   : > { %7550 = vmatprep.mubr.msk.f32.mxu1 %vm899_vm5, %v3966_v47  ;;  %10726 = vst [vmem:[#allocation23_spill] sm:$0xff] %v9740_v14  ;;  %7536 = vmatprep.subr.mxu1 %v9731_v10  ;;  %10727 = vst [vmem:[#allocation24_spill] sm:$0xff] %v9749_v60  ;;  %v9804_v47 = vld [vmem:[%s10426_s1 + $0x2f8] sm:$0xff] }
 0xc4e   : > { %7557 = vmatprep.mubr.msk.f32.mxu0 %vm8052_vm6, %v10611_v48  ;;  %7537 = vmatpush3.msra.mxu1 %v9731_v10  ;;  %10734 = vst [vmem:[#allocation31_spill] sm:$0xff] %v9804_v47 }
 0xc4f   : > { %7538 = vmatprep.subr.mxu1 %v9740_v14 }
 0xc50   : > { %7539 = vmatpush3.msra.mxu1 %v9740_v14 }
 0xc51   : > { %7540 = vmatprep.subr.mxu1 %v9749_v60 }
 0xc52   : > { %7541 = vmatpush3.msra.mxu1 %v9749_v60 }
 0xc53   : > { %7542 = vmatprep.subr.mxu1 %v9756_v6 }
 0xc54   : > { %7543 = vmatpush3.msra.mxu1 %v9756_v6 }
 0xc55   : > { %7544 = vmatprep.subr.mxu1 %v9763_v58 }
 0xc56   : > { %7545 = vmatpush3.msra.mxu1 %v9763_v58 }
 0xc57   : > { %7546 = vmatprep.subr.mxu1 %v9770_v52 }
 0xc58   : > { %7547 = vmatpush3.msra.mxu1 %v9770_v52 }
 0xc59   : > { %7548 = vmatprep.subr.mxu1 %v9777_v1 }
 0xc5a   : > { %7549 = vmatpush3.msra.mxu1 %v9777_v1 }
 0xc5b   : > { %7551 = vmatmul.mubr.msk.f32.vlgmr.msra.gmra.mxu1 %vm899_vm5, %v3967_v2  ;;  %7598 = vmatprep.subr.mxu1 %v10611_v48  ;;  %v9811_v2 = vld [vmem:[%s10426_s1 + $0x2f0] sm:$0xff] }
 0xc5c   : > { %7626 = vmatprep.mubr.msk.f32.mxu1 %vm8052_vm6, %v10611_v48  ;;  %7599 = vmatpush3.msra.mxu1 %v9790_v39  ;;  %10735 = vst [vmem:[#allocation32_spill] sm:$0xff] %v9811_v2 }
 0xc5d   : > { %7600 = vmatprep.subr.mxu1 %v10611_v48 }
 0xc5e   : > { %7601 = vmatpush3.msra.mxu1 %v9797_v0  ;;  %v9818_v0 = vld [vmem:[%s10426_s1 + $0x2e8] sm:$0xff] }
 0xc5f   : > { %7602 = vmatprep.subr.mxu1 %v10611_v48  ;;  %10736 = vst [vmem:[#allocation33_spill] sm:$0xff] %v9818_v0 }
 0xc60   : > { %7603 = vmatpush3.msra.mxu1 %v9804_v47  ;;  %v9825_v47 = vld [vmem:[%s10426_s1 + $0x2e0] sm:$0xff] }
 0xc61   : > { %7604 = vmatprep.subr.mxu1 %v10611_v48  ;;  %10737 = vst [vmem:[#allocation34_spill] sm:$0xff] %v9825_v47 }
 0xc62   : > { %7605 = vmatpush3.msra.mxu1 %v9811_v2  ;;  %v9832_v2 = vld [vmem:[%s10426_s1 + $0x2d8] sm:$0xff] }
 0xc63   : > { %7606 = vmatprep.subr.mxu1 %v10611_v48  ;;  %10738 = vst [vmem:[#allocation35_spill] sm:$0xff] %v9832_v2 }
 0xc64   : > { %7607 = vmatpush3.msra.mxu1 %v9818_v0  ;;  %v9839_v0 = vld [vmem:[%s10426_s1 + $0x2d0] sm:$0xff] }
 0xc65   : > { %7608 = vmatprep.subr.mxu1 %v10611_v48  ;;  %10739 = vst [vmem:[#allocation36_spill] sm:$0xff] %v9839_v0 }
 0xc66   : > { %7609 = vmatpush3.msra.mxu1 %v9825_v47  ;;  %v9846_v47 = vld [vmem:[%s10426_s1 + $0x2c8] sm:$0xff] }
 0xc67   : > { %7610 = vmatprep.subr.mxu1 %v10611_v48  ;;  %10740 = vst [vmem:[#allocation37_spill] sm:$0xff] %v9846_v47 }
 0xc68   : > { %7611 = vmatpush3.msra.mxu1 %v9832_v2  ;;  %v9853_v2 = vld [vmem:[%s10426_s1 + $0x2c0] sm:$0xff] }
 0xc69   : > { %7612 = vmatprep.subr.mxu1 %v10611_v48  ;;  %10741 = vst [vmem:[#allocation38_spill] sm:$0xff] %v9853_v2 }
 0xc6a   : > { %7613 = vmatpush3.msra.mxu1 %v9839_v0 }
 0xc6b   : > { %7614 = vmatprep.subr.mxu1 %v10611_v48 }
 0xc6c   : > { %7615 = vmatpush3.msra.mxu1 %v9846_v47  ;;  %v9860_v47 = vld [vmem:[%s10426_s1 + $0x318] ss:$0 sm:$0xff] }
 0xc6d   : > { %7616 = vmatprep.subr.mxu1 %v10611_v48  ;;  %10742 = vst [vmem:[#allocation52_spill] sm:$0xff] %v9860_v47 }
 0xc6e   : > { %7617 = vmatpush3.msra.mxu1 %v9853_v2 }
 0xc6f   : > { %7618 = vmatprep.subr.mxu1 %v10611_v48 }
 0xd0b   : > { %v7514_v0 = vpop.f32.mrf.mxu1 }
 0xd0c   : > { %v7533_v39 = vpop.f32.mrf.mxu0 }
 0xd0d   : > { %v3876_v1 = vpop.f32.mrf.mxu1  ;;  %v3963_v58 = vadd.f32 %v7533_v39, %v7514_v0  ;;  %v4068_v39 = vld [vmem:[%s10426_s1 + $0x220] sm:$0x7f]  ;;  %v9955_v0 = vld [vmem:[%s10426_s1 + $0x248] sm:$0xff] }
 0xd0e   : > { %v3957_v52 = vpop.f32.mrf.mxu0  ;;  %10753 = vst [vmem:[#allocation47_spill] sm:$0xff] %v9955_v0 }
 0xd0f   : > { %v3958_v60 = vadd.f32 %v3957_v52, %v3876_v1  ;;  %v9939_v52 = vld [vmem:[%s10426_s1 + $0x258] sm:$0xff]  ;;  %v9946_v1 = vld [vmem:[%s10426_s1 + $0x250] sm:$0xff] }
 0xd10   : > { %10751 = vst [vmem:[#allocation45_spill] sm:$0xff] %v9939_v52  ;;  %10752 = vst [vmem:[#allocation46_spill] sm:$0xff] %v9946_v1 }
 0xd1b   : > { %v7552_v6 = vpop.f32.mrf.mxu1 }
 0xd1c   : > { %v4058_v14 = vadd.f32 %v7552_v6, %v3963_v58  ;;  %v9925_v6 = vld [vmem:[%s10426_s1 + $0x268] sm:$0xff]  ;;  %v9932_v58 = vld [vmem:[%s10426_s1 + $0x260] sm:$0xff] }
 0xd1d   : > { %v4048_v10 = vpop.f32.mrf.mxu1  ;;  %10749 = vst [vmem:[#allocation43_spill] sm:$0xff] %v9925_v6  ;;  %10750 = vst [vmem:[#allocation44_spill] sm:$0xff] %v9932_v58 }
 0xd1e   : > { %v4065_v32 = vadd.f32 %v9860_v47, %v4058_v14  ;;  %v4057_v8 = vadd.f32 %v4048_v10, %v3958_v60  ;;  %v9888_v10 = vld [vmem:[%s10426_s1 + $0x290] sm:$0xff]  ;;  %v9911_v14 = vld [vmem:[%s10426_s1 + $0x278] sm:$0xff] }
 0xd1f   : > { %10744 = vst [vmem:[#allocation56_spill] sm:$0xff] %v9888_v10  ;;  %10747 = vst [vmem:[#allocation41_spill] sm:$0xff] %v9911_v14  ;;  %v9918_v60 = vld [vmem:[%s10426_s1 + $0x270] sm:$0xff] }
 0xd20   : > { %v4067_v2 = vmax.f32 %v4065_v32, 0.0  ;;  %v4064_v34 = vadd.f32 %v9860_v47, %v4057_v8  ;;  %v9881_v8 = vld [vmem:[%s10426_s1 + $0x298] sm:$0xff]  ;;  %v9904_v32 = vld [vmem:[%s10426_s1 + $0x280] sm:$0xff]  ;;  %10748 = vst [vmem:[#allocation42_spill] sm:$0xff] %v9918_v60 }
 0xd21   : > { %10743 = vst [vmem:[#allocation54_spill] sm:$0xff] %v9881_v8  ;;  %10746 = vst [vmem:[#allocation40_spill] sm:$0xff] %v9904_v32  ;;  %v10021_v47 = vld [vmem:[#allocation5 + $0x60] sm:$0xff] }
 0xd22   : > { %v4066_v33 = vmax.f32 %v4064_v34, 0.0  ;;  %7554 = vmatpush3.msk.msra.mxu0 %vm1191_vm7, %v4067_v2  ;;  %v4145_v34 = vld [vmem:[%s10426_s1 + $0x228] sm:$0x7f]  ;;  %10762 = vst [vmem:[#allocation59_spill] sm:$0xff] %v10021_v47 }
 0xd23   : > { %7555 = vmatprep.subr.mxu0 %v10611_v48 }
 0xd24   : > { %7556 = vmatpush3.msra.mxu0 %v4066_v33 }
 0xd25   : > { %7558 = vmatmul.mubr.msk.f32.vlgmr.msra.gmra.mxu0 %vm1187_vm8, %v4068_v39  ;;  %7560 = vmatprep.subr.mxu0 %v10611_v48  ;;  %v9969_v39 = vld [vmem:[%s10426_s1 + $0x240] sm:$0xff] }
 0xd26   : > { %7561 = vmatpush3.msk.msra.mxu0 %vm1191_vm7, %v4067_v2  ;;  %7564 = vmatprep.mubr.msk.f32.mxu0 %vm8052_vm6, %v10611_v48  ;;  %v9960_v2 = vld [vmem:[%s10426_s1 + $0x2b8] sm:$0xff]  ;;  %10755 = vst [vmem:[#allocation49_spill] sm:$0xff] %v9969_v39 }
 0xd27   : > { %7562 = vmatprep.subr.mxu0 %v10611_v48  ;;  %10754 = vst [vmem:[#allocation48_spill] sm:$0xff] %v9960_v2  ;;  %7619 = vmatpush3.msra.mxu1 %v9960_v2 }
 0xd28   : > { %7563 = vmatpush3.msra.mxu0 %v4066_v33  ;;  %v9897_v33 = vld [vmem:[%s10426_s1 + $0x288] sm:$0xff]  ;;  %7620 = vmatprep.subr.mxu1 %v10611_v48 }
 0xd29   : > { %7565 = vmatmul.mubr.msk.f32.vlgmr.msra.gmra.mxu0 %vm1187_vm8, %v4145_v34  ;;  %7567 = vmatprep.subr.mxu0 %v10611_v48  ;;  %10745 = vst [vmem:[#allocation39_spill] sm:$0xff] %v9897_v33  ;;  %v9974_v34 = vld [vmem:[%s10426_s1 + $0x2b0] sm:$0xff] }
 0xd2a   : > { %7568 = vmatpush3.msra.mxu0 %v9881_v8  ;;  %7595 = vmatprep.mubr.msk.f32.mxu0 %vm8052_vm6, %v10611_v48  ;;  %10756 = vst [vmem:[#allocation50_spill] sm:$0xff] %v9974_v34 }
 0xd2b   : > { %7569 = vmatprep.subr.mxu0 %v10611_v48  ;;  %7621 = vmatpush3.msra.mxu1 %v9974_v34 }
 0xd2c   : > { %7570 = vmatpush3.msra.mxu0 %v9888_v10  ;;  %7622 = vmatprep.subr.mxu1 %v10611_v48 }
 0xd2d   : > { %7571 = vmatprep.subr.mxu0 %v10611_v48 }
 0xd2e   : > { %7572 = vmatpush3.msra.mxu0 %v9897_v33 }
 0xd2f   : > { %7573 = vmatprep.subr.mxu0 %v10611_v48 }
 0xd30   : > { %7574 = vmatpush3.msra.mxu0 %v9904_v32 }
 0xd31   : > { %7575 = vmatprep.subr.mxu0 %v10611_v48 }
 0xd32   : > { %7576 = vmatpush3.msra.mxu0 %v9911_v14  ;;  %v6262_v14 = vld [vmem:[%s8155_s9 + $0x70] sm:$0xff] }
 0xd33   : > { %7577 = vmatprep.subr.mxu0 %v10611_v48  ;;  %4521 = vst.msk [vmem:[#allocation2 + $0x11] sm:$0xff] %vm184_vm0, %v6262_v14  ;;  %v10029_v14 = vld [vmem:[#allocation5 + $0x50] sm:$0xff] }
 0xd34   : > { %7578 = vmatpush3.msra.mxu0 %v9918_v60  ;;  %v6261_v60 = vld [vmem:[%s8155_s9 + $0x68] sm:$0xff]  ;;  %10764 = vst [vmem:[#allocation61_spill] sm:$0xff] %v10029_v14 }
 0xd35   : > { %7579 = vmatprep.subr.mxu0 %v10611_v48  ;;  %4520 = vst.msk [vmem:[#allocation2 + $0x9] sm:$0xff] %vm184_vm0, %v6261_v60  ;;  %v4530_v60 = vld [vmem:[%s10426_s1 + $0x18] sm:$0xf] }
 0xd36   : > { %7580 = vmatpush3.msra.mxu0 %v9925_v6  ;;  %v6260_v6 = vld [vmem:[%s8155_s9 + $0x60] sm:$0xff] }
 0xd37   : > { %7581 = vmatprep.subr.mxu0 %v10611_v48  ;;  %4519 = vst.msk [vmem:[#allocation2 + $0x1] sm:$0xff] %vm184_vm0, %v6260_v6  ;;  %v10025_v6 = vld [vmem:[#allocation5 + $0x58] sm:$0xff] }
 0xd38   : > { %7582 = vmatpush3.msra.mxu0 %v9932_v58  ;;  %v10010_v58 = vld [vmem:[#allocation5 + $0x68] sm:$0xff]  ;;  %10763 = vst [vmem:[#allocation60_spill] sm:$0xff] %v10025_v6 }
 0xd39   : > { %7583 = vmatprep.subr.mxu0 %v10611_v48  ;;  %10761 = vst [vmem:[#allocation58_spill] sm:$0xff] %v10010_v58 }
 0xd3a   : > { %7584 = vmatpush3.msra.mxu0 %v9939_v52  ;;  %v10002_v52 = vld [vmem:[%s10426_s1 + $0x2a0] sm:$0xff] }
 0xd3b   : > { %7585 = vmatprep.subr.mxu0 %v10611_v48  ;;  %10760 = vst [vmem:[#allocation57_spill] sm:$0xff] %v10002_v52 }
 0xd3c   : > { %7586 = vmatpush3.msra.mxu0 %v9946_v1  ;;  %v9988_v1 = vld [vmem:[%s10426_s1 + $0x2a8] sm:$0xff] }
 0xd3d   : > { %7587 = vmatprep.subr.mxu0 %v10611_v48  ;;  %10758 = vst [vmem:[#allocation53_spill] sm:$0xff] %v9988_v1  ;;  %7623 = vmatpush3.msra.mxu1 %v9988_v1 }
 0xd3e   : > { %7588 = vmatpush3.msra.mxu0 %v9955_v0  ;;  %v9983_v0 = vld [vmem:[%s10426_s1 + $0x238] sm:$0xff]  ;;  %7624 = vmatprep.subr.mxu1 %v10611_v48 }
 0xd3f   : > { %7589 = vmatprep.subr.mxu0 %v10611_v48  ;;  %10757 = vst [vmem:[#allocation51_spill] sm:$0xff] %v9983_v0  ;;  %7625 = vmatpush3.msra.mxu1 %v10002_v52 }
 0xd40   : > { %7590 = vmatpush3.msra.mxu0 %v9969_v39  ;;  %v9997_v39 = vld [vmem:[%s10426_s1 + $0x230] sm:$0xff] }
 0xd41   : > { %7591 = vmatprep.subr.mxu0 %v10611_v48  ;;  %10759 = vst [vmem:[#allocation55_spill] sm:$0xff] %v9997_v39 }
 0xd42   : > { %7592 = vmatpush3.msra.mxu0 %v9983_v0  ;;  %v4538_v0 = vld [vmem:[%s10426_s1 + $0x38] sm:$0xf] }
 0xd43   : > { %7593 = vmatprep.subr.mxu0 %v10611_v48  ;;  %7629 = vmatprep.subr.msk.mxu1 %vm227_vm2, %v4538_v0 }
 0xd44   : > { %7594 = vmatpush3.msra.mxu0 %v9997_v39  ;;  %v6263_v39 = vld [vmem:[%s8155_s9 + $0x78] sm:$0xf]  ;;  %s7988_s9 = scalar_lea.vmem %s7987_s16, 128 }
 0xd45   : > { %4427 = vmatprep.subr.mxu0 %v10010_v58  ;;  %4522 = vst.msk [vmem:[#allocation2 + $0x19] sm:$0xf] %vm197_vm3, %v6263_v39  ;;  %v4531_v58 = vld [vmem:[#allocation2 + $0x1] sm:$0xff]  ;;  %v10068_v39 = vld [vmem:[#allocation5 + $0x18] sm:$0xff] }
 0xd46   : > { %10771 = vst [vmem:[#allocation68_spill] sm:$0xff] %v10068_v39 }
 0xde5   : > { %v4141_v32 = vpop.f32.mrf.mxu0 }
 0xde7   : > { %v7559_v33 = vpop.f32.mrf.mxu0 }
 0xde8   : > { %v10037_v33 = vld [vmem:[#allocation5 + $0x40] sm:$0xff] }
 0xde9   : > { %v4215_v10 = vpop.f32.mrf.mxu0  ;;  %10766 = vst [vmem:[#allocation63_spill] sm:$0xff] %v10037_v33 }
 0xdea   : > { %v4219_v8 = vmax.f32 %v4141_v32, %v4215_v10  ;;  %v10033_v10 = vld [vmem:[#allocation5 + $0x48] sm:$0xff]  ;;  %v4532_v32 = vld [vmem:[#allocation2 + $0x9] sm:$0xff] }
 0xdeb   : > { %v7566_v52 = vpop.f32.mrf.mxu0  ;;  %10765 = vst [vmem:[#allocation62_spill] sm:$0xff] %v10033_v10 }
 0xdec   : > { %7596 = vmatmul.mubr.msk.f32.vlgmr.msra.gmra.mxu0 %vm726_vm4, %v4219_v8  ;;  %7627 = vmatmul.mubr.msk.f32.vlgmr.msra.gmra.mxu1 %vm726_vm4, %v4219_v8  ;;  %v10041_v8 = vld [vmem:[#allocation5 + $0x38] sm:$0xff]  ;;  %v4534_v52 = vld [vmem:[#allocation2 + $0x19] sm:$0xf] }
 0xded   : > { %7630 = vmatpush3.msk.msra.mxu1 %vm227_vm2, %v4538_v0  ;;  %4428 = vmatpush1.msra.mxu0 %v10021_v47  ;;  %10767 = vst [vmem:[#allocation64_spill] sm:$0xff] %v10041_v8  ;;  %v4523_v0 = vld [vmem:[#allocation2] sm:$0xff] }
 0xdee   : > { %7631 = vmatprep.subr.mxu1 %v9244_v57  ;;  %7637 = vmatprep.mubr.msk.f32.mxu1 %vm184_vm0, %v4531_v58  ;;  %v10052_v58 = vld [vmem:[#allocation5 + $0x30] sm:$0xff] }
 0xdef   : > { %7632 = vmatpush3.msra.mxu1 %v9244_v57  ;;  %4429 = vmatprep.subr.mxu0 %v10025_v6  ;;  %v4533_v57 = vld [vmem:[#allocation2 + $0x11] sm:$0xff]  ;;  %10768 = vst [vmem:[#allocation65_spill] sm:$0xff] %v10052_v58 }
 0xdf0   : > { %7633 = vmatprep.subr.mxu1 %v9252_v5  ;;  %4430 = vmatpush1.msra.mxu0 %v10029_v14 }
 0xdf1   : > { %7634 = vmatpush3.msra.mxu1 %v9252_v5  ;;  %4431 = vmatprep.subr.mxu0 %v10033_v10  ;;  %v10056_v5 = vld [vmem:[#allocation5 + $0x28] sm:$0xff] }
 0xdf2   : > { %7635 = vmatprep.subr.mxu1 %v9261_v61  ;;  %4432 = vmatpush1.msra.mxu0 %v10037_v33  ;;  %10769 = vst [vmem:[#allocation66_spill] sm:$0xff] %v10056_v5 }
 0xdf3   : > { %7636 = vmatpush3.msra.mxu1 %v9261_v61  ;;  %4433 = vmatprep.subr.mxu0 %v10041_v8  ;;  %v10062_v61 = vld [vmem:[#allocation5 + $0x20] sm:$0xff] }
 0xdf4   : > { %7638 = vmatmul.mubr.msk.f32.vlgmr.msra.gmra.mxu1 %vm184_vm0, %v4532_v32  ;;  %7643 = vmatprep.subr.msk.mxu1 %vm227_vm2, %v4530_v60  ;;  %10770 = vst [vmem:[#allocation67_spill] sm:$0xff] %v10062_v61  ;;  %v4524_v32 = vld [vmem:[#allocation2 + $0x8] sm:$0xff] }
 0xdf5   : > { %7644 = vmatpush3.msk.msra.mxu1 %vm227_vm2, %v4530_v60  ;;  %7640 = vmatprep.mubr.msk.f32.mxu1 %vm184_vm0, %v4533_v57  ;;  %v10072_v60 = vld [vmem:[#allocation5 + $0x10] sm:$0xff]  ;;  %v4525_v57 = vld [vmem:[#allocation2 + $0x10] sm:$0xff] }
 0xdf6   : > { %7645 = vmatprep.subr.mxu1 %v9277_v3  ;;  %4434 = vmatpush1.msra.mxu0 %v10052_v58  ;;  %10772 = vst [vmem:[#allocation69_spill] sm:$0xff] %v10072_v60 }
 0xdf7   : > { %7646 = vmatpush3.msra.mxu1 %v9277_v3  ;;  %4435 = vmatprep.subr.mxu0 %v10056_v5  ;;  %v10081_v3 = vld [vmem:[#allocation5 + $0x8] sm:$0xff] }
 0xdf8   : > { %7641 = vmatmul.mubr.msk.f32.gmra.mxu1 %vm184_vm0, %v4534_v52  ;;  %7647 = vmatprep.subr.mxu1 %v9287_v30  ;;  %10773 = vst [vmem:[#allocation70_spill] sm:$0xff] %v10081_v3  ;;  %v4746_v52 = vld [vmem:[%s10426_s1 + $0x58] sm:$0xf] }
 0xdf9   : > { %7648 = vmatpush3.msra.mxu1 %v9287_v30  ;;  %4436 = vmatpush1.msra.mxu0 %v10062_v61  ;;  %v10084_v30 = vld [vmem:[#allocation5] sm:$0xff] }
 0xdfa   : > { %7649 = vmatprep.subr.mxu1 %v9296_v56  ;;  %7651 = vmatprep.mubr.msk.f32.mxu1 %vm184_vm0, %v4523_v0  ;;  %10774 = vst [vmem:[#allocation71_spill] sm:$0xff] %v10084_v30 }
 0xdfb   : > { %7650 = vmatpush3.msra.mxu1 %v9296_v56  ;;  %4437 = vmatprep.subr.mxu0 %v10068_v39  ;;  %v4526_v56 = vld [vmem:[#allocation2 + $0x18] sm:$0xf] }
 0xdfc   : > { %7652 = vmatmul.mubr.msk.f32.vlgmr.msra.gmra.mxu1 %vm184_vm0, %v4524_v32  ;;  %4438 = vmatpush1.msra.mxu0 %v10072_v60  ;;  %v4739_v60 = vld [vmem:[#allocation2 + $0x2] sm:$0xff] }
 0xdfd   : > { %4473 = vmatprep.mubr.f32.mxu0 %v10611_v48  ;;  %4439 = vmatprep.subr.mxu0 %v10081_v3 }
 0xdfe   : > { %4440 = vmatpush1.msra.mxu0 %v10084_v30  ;;  %7654 = vmatprep.mubr.msk.f32.mxu1 %vm184_vm0, %v4525_v57  ;;  %v4741_v57 = vld [vmem:[#allocation2 + $0x12] sm:$0xff] }
 0xdff   : > { %7657 = vmatprep.subr.msk.mxu0 %vm227_vm2, %v4746_v52 }
 0xe00   : > { %7655 = vmatmul.mubr.msk.f32.gmra.mxu1 %vm184_vm0, %v4526_v56 }
 0xe01   : > { %7679 = vmatprep.mubr.msk.f32.mxu1 %vm184_vm0, %v9347_v28  ;;  %v4740_v28 = vld [vmem:[#allocation2 + $0xa] sm:$0xff] }
 0xeac   : > { %v4303_v0 = vpop.f32.mrf.mxu0  ;;  %v4387_v32 = vpop.f32.mrf.mxu1 }
 0xead   : > { %v4391_v3 = vmax.f32 %v4303_v0, %v4387_v32 }
 0xeae   : > { %v7597_v39 = vpop.f32.mrf.mxu0  ;;  %v7628_v30 = vpop.f32.mrf.mxu1 }
 0xeaf   : > { %6259 = vmatmul.mubr.msk.f32.vlgmr.msra.gmra.mxu0 %vm1526_vm9, %v4391_v3  ;;  %v4742_v39 = vld [vmem:[#allocation2 + $0x1a] sm:$0xf] }
 0xeb0   : > { %7658 = vmatpush3.msk.msra.mxu0 %vm227_vm2, %v4746_v52  ;;  %7665 = vmatprep.mubr.msk.f32.mxu0 %vm184_vm0, %v4739_v60 }
 0xeb1   : > { %7659 = vmatprep.subr.mxu0 %v9320_v22 }
 0xeb2   : > { %7660 = vmatpush3.msra.mxu0 %v9320_v22 }
 0xeb3   : > { %7661 = vmatprep.subr.mxu0 %v9327_v23 }
 0xeb4   : > { %7662 = vmatpush3.msra.mxu0 %v9327_v23  ;;  %v7639_v22 = vpop.f32.mrf.mxu1 }
 0xeb5   : > { %7663 = vmatprep.subr.mxu0 %v9335_v24 }
 0xeb6   : > { %7664 = vmatpush3.msra.mxu0 %v9335_v24  ;;  %v4620_v60 = vpop.f32.mrf.mxu1 }
 0xeb7   : > { %7666 = vmatmul.mubr.msk.f32.vlgmr.msra.gmra.mxu0 %vm184_vm0, %v4740_v28 }
 0xeb8   : > { %7668 = vmatprep.mubr.msk.f32.mxu0 %vm184_vm0, %v4741_v57  ;;  %v7642_v3 = vpop.f32.mrf.mxu1 }
 0xeba   : > { %v4630_v23 = vpop.f32.mrf.mxu1 }
 0xebb   : > { %7669 = vmatmul.mubr.msk.f32.gmra.mxu0 %vm184_vm0, %v4742_v39 }
 0xebc   : > { %7690 = vmatprep.mubr.msk.f32.mxu0 %vm184_vm0, %v9352_v29  ;;  %v7653_v30 = vpop.f32.mrf.mxu1 }
 0xebd   : > { %v4726_v58 = vadd.f32 %v7653_v30, %v7639_v22 }
 0xebe   : > { %v4720_v0 = vpop.f32.mrf.mxu1 }
 0xebf   : > { %v4721_v33 = vadd.f32 %v4720_v0, %v4620_v60  ;;  %v10792_v0 = vld [vmem:[#allocation28_spill] sm:$0xff] }
 0xec0   : > { %v7656_v28 = vpop.f32.mrf.mxu1 }
 0xec1   : > { %v4736_v8 = vadd.f32 %v7656_v28, %v7642_v3 }
 0xec2   : > { %v4730_v61 = vpop.f32.mrf.mxu1 }
 0xec3   : > { %v4731_v10 = vadd.f32 %v4730_v61, %v4630_v23  ;;  %v10789_v61 = vld [vmem:[#allocation25_spill] sm:$0xff]  ;;  %v10790_v23 = vld [vmem:[#allocation26_spill] sm:$0xff] }
 0xf6f   : > { %v10109_v56 = vpop.f32.mrf.mxu0 }
 0xf70   : > { %v4483_v52 = vrot.slane %v10109_v56, 1  ;;  %v4488_v24 = vrot.slane %v10109_v56, 2  ;;  %v4493_v32 = vrot.slane %v10109_v56, 3 }
 0xf71   : > { %v10116_v29 = vpop.f32.mrf.mxu0 }
 0xf72   : > { %4484 = vrot.lane.b32.xlu1 %v4483_v52, %s8053_s17  ;;  %4489 = vrot.lane.b32.xlu0 %v4488_v24, %s8054_s19  ;;  %v4502_v39 = vrot.slane %v10116_v29, 5  ;;  %v4507_v24 = vrot.slane %v10116_v29, 6 }
 0xf76   : > { %4494 = vrot.lane.b32.xlu0 %v4493_v32, %s8055_s20 }
 0xf77   : > { %v7667_v57 = vpop.f32.mrf.mxu0 }
 0xf78   : > { %v4848_v14 = vadd.f32 %v7667_v57, %v4726_v58  ;;  %v10787_v58 = vld [vmem:[#allocation23_spill] sm:$0xff]  ;;  %v10794_v57 = vld [vmem:[#allocation30_spill] sm:$0xff] }
 0xf79   : > { %v4828_v5 = vpop.f32.mrf.mxu0 }
 0xf7a   : > { %4503 = vrot.lane.b32.xlu0 %v4502_v39, %s8053_s17  ;;  %v4847_v1 = vadd.f32 %v4828_v5, %v4721_v33  ;;  %v4857_v2 = vadd.f32 %v9374_v4, %v4848_v14  ;;  %v10788_v5 = vld [vmem:[#allocation24_spill] sm:$0xff]  ;;  %v10795_v39 = vld [vmem:[#allocation31_spill] sm:$0xff] }
 0xf7b   : > { %v7670_v52 = vpop.f32.mrf.mxu0 }
 0xf7c   : > { %v4850_v6 = vadd.f32 %v7670_v52, %v4736_v8  ;;  %v4856_v60 = vadd.f32 %v9374_v4, %v4847_v1  ;;  %v10786_v8 = vld [vmem:[#allocation22_spill] sm:$0xff]  ;;  %v10796_v52 = vld [vmem:[#allocation32_spill] sm:$0xff] }
 0xf7d   : > { %v4838_v47 = vpop.f32.mrf.mxu0 }
 0xf7e   : > { %v4859_v32 = vadd.f32 %v9374_v4, %v4850_v6  ;;  %v4849_v34 = vadd.f32 %v4838_v47, %v4731_v10  ;;  %4508 = vrot.lane.b32.xlu0 %v4507_v24, %s8054_s19  ;;  %v4861_v6 = vmax.f32 %v4857_v2, 0.0  ;;  %v4860_v47 = vmax.f32 %v4856_v60, 0.0  ;;  %v10797_v24 = vld [vmem:[#allocation33_spill] sm:$0xff] }
 0xf7f   : > { %v10801_v60 = vld [vmem:[#allocation37_spill] sm:$0xff] }
 0xf80   : > { %v4863_v22 = vmax.f32 %v4859_v32, 0.0  ;;  %v4858_v3 = vadd.f32 %v9374_v4, %v4849_v34  ;;  %v10775_v4 = vld [vmem:[#allocation11_spill] sm:$0xff]  ;;  %v10798_v32 = vld [vmem:[#allocation34_spill] sm:$0xff] }
 0xf82   : > { %v4862_v30 = vmax.f32 %v4858_v3, 0.0  ;;  %7671 = vmatprep.subr.msk.mxu1 %vm227_vm2, %v4863_v22  ;;  %7682 = vmatprep.subr.msk.mxu0 %vm227_vm2, %v4863_v22  ;;  %v10800_v3 = vld [vmem:[#allocation36_spill] sm:$0xff] }
 0xf83   : > { %7672 = vmatpush3.msk.msra.mxu1 %vm227_vm2, %v4863_v22  ;;  %7683 = vmatpush3.msk.msra.mxu0 %vm227_vm2, %v4863_v22  ;;  %v10799_v22 = vld [vmem:[#allocation35_spill] sm:$0xff] }
 0xf84   : > { %7673 = vmatprep.subr.mxu1 %v4862_v30  ;;  %7684 = vmatprep.subr.mxu0 %v4862_v30 }
 0xf85   : > { %7674 = vmatpush3.msra.mxu1 %v4862_v30  ;;  %7685 = vmatpush3.msra.mxu0 %v4862_v30  ;;  %v10802_v30 = vld [vmem:[#allocation38_spill] sm:$0xff] }
 0xf86   : > { %7675 = vmatprep.subr.mxu1 %v4861_v6  ;;  %7686 = vmatprep.subr.mxu0 %v4861_v6 }
 0xf87   : > { %7676 = vmatpush3.msra.mxu1 %v4861_v6  ;;  %7687 = vmatpush3.msra.mxu0 %v4861_v6  ;;  %v10803_v6 = vld [vmem:[#allocation48_spill] sm:$0xff] }
 0xf88   : > { %7677 = vmatprep.subr.mxu1 %v4860_v47  ;;  %7688 = vmatprep.subr.mxu0 %v4860_v47 }
 0xf89   : > { %7678 = vmatpush3.msra.mxu1 %v4860_v47  ;;  %7689 = vmatpush3.msra.mxu0 %v4860_v47  ;;  %v10804_v47 = vld [vmem:[#allocation50_spill] sm:$0xff] }
 0xf8a   : > { %7680 = vmatmul.mubr.msk.f32.vlgmr.msra.gmra.mxu1 %vm184_vm0, %v9388_v7  ;;  %7691 = vmatmul.mubr.msk.f32.vlgmr.msra.gmra.mxu0 %vm184_vm0, %v9393_v9  ;;  %v10776_v7 = vld [vmem:[#allocation12_spill] sm:$0xff]  ;;  %v4480_v9 = vld [vmem:[%s10426_s1 + $0x320] sm:$0x1] }
 0xf8b   : > { %7693 = vmatprep.subr.mxu1 %v9398_v11  ;;  %7724 = vmatprep.subr.mxu0 %v9403_v12 }
 0xf8c   : > { %7694 = vmatpush3.msra.mxu1 %v9398_v11  ;;  %7725 = vmatpush3.msra.mxu0 %v9403_v12  ;;  %v4481_v11 = vadd.f32 %v4480_v9, %v10109_v56  ;;  %v10791_v56 = vld [vmem:[#allocation27_spill] sm:$0xff] }
 0xf8d   : > { %7695 = vmatprep.subr.mxu1 %v9412_v13  ;;  %7726 = vmatprep.subr.mxu0 %v9417_v15 }
 0xf8e   : > { %7696 = vmatpush3.msra.mxu1 %v9412_v13  ;;  %7727 = vmatpush3.msra.mxu0 %v9417_v15 }
 0xf8f   : > { %7697 = vmatprep.subr.mxu1 %v9426_v62  ;;  %7728 = vmatprep.subr.mxu0 %v9431_v16 }
 0xf90   : > { %7698 = vmatpush3.msra.mxu1 %v9426_v62  ;;  %7729 = vmatpush3.msra.mxu0 %v9431_v16 }
 0xf91   : > { %7699 = vmatprep.subr.mxu1 %v9440_v17  ;;  %7730 = vmatprep.subr.mxu0 %v9445_v18 }
 0xf92   : > { %7700 = vmatpush3.msra.mxu1 %v9440_v17  ;;  %7731 = vmatpush3.msra.mxu0 %v9445_v18  ;;  %v4499_v17 = vrot.slane %v10116_v29, 4  ;;  %v10793_v29 = vld [vmem:[#allocation29_spill] sm:$0xff] }
 0xf93   : > { %7701 = vmatprep.subr.mxu1 %v9454_v19  ;;  %7732 = vmatprep.subr.mxu0 %v9459_v20 }
 0xf94   : > { %7702 = vmatpush3.msra.mxu1 %v9454_v19  ;;  %7733 = vmatpush3.msra.mxu0 %v9459_v20 }
 0xf95   : > { %7703 = vmatprep.subr.mxu1 %v9468_v21  ;;  %7734 = vmatprep.subr.mxu0 %v9473_v25 }
 0xf96   : > { %7704 = vmatpush3.msra.mxu1 %v9468_v21  ;;  %7735 = vmatpush3.msra.mxu0 %v9473_v25 }
 0xf97   : > { %7705 = vmatprep.subr.mxu1 %v9482_v26  ;;  %7736 = vmatprep.subr.mxu0 %v9487_v27 }
 0xf98   : > { %7706 = vmatpush3.msra.mxu1 %v9482_v26  ;;  %7737 = vmatpush3.msra.mxu0 %v9487_v27 }
 0xf99   : > { %7707 = vmatprep.subr.mxu1 %v9496_v31  ;;  %7738 = vmatprep.subr.mxu0 %v9501_v35 }
 0xf9a   : > { %7708 = vmatpush3.msra.mxu1 %v9496_v31  ;;  %7739 = vmatpush3.msra.mxu0 %v9501_v35 }
 0xf9b   : > { %7709 = vmatprep.subr.mxu1 %v9510_v36  ;;  %7740 = vmatprep.subr.mxu0 %v9515_v37 }
 0xf9c   : > { %7710 = vmatpush3.msra.mxu1 %v9510_v36  ;;  %7741 = vmatpush3.msra.mxu0 %v9515_v37 }
 0xf9d   : > { %7711 = vmatprep.subr.mxu1 %v9524_v38  ;;  %7742 = vmatprep.subr.mxu0 %v9529_v40 }
 0xf9e   : > { %7712 = vmatpush3.msra.mxu1 %v9524_v38  ;;  %7743 = vmatpush3.msra.mxu0 %v9529_v40 }
 0xf9f   : > { %7713 = vmatprep.subr.mxu1 %v9538_v41  ;;  %7744 = vmatprep.subr.mxu0 %v9543_v42 }
 0xfa0   : > { %7714 = vmatpush3.msra.mxu1 %v9538_v41  ;;  %7745 = vmatpush3.msra.mxu0 %v9543_v42  ;;  %v10777_v41 = vld [vmem:[#allocation13_spill] sm:$0xff]  ;;  %v10778_v42 = vld [vmem:[#allocation14_spill] sm:$0xff] }
 0xfa1   : > { %7715 = vmatprep.subr.mxu1 %v9556_v43  ;;  %7746 = vmatprep.subr.mxu0 %v9561_v50 }
 0xfa2   : > { %7716 = vmatpush3.msra.mxu1 %v9556_v43  ;;  %7747 = vmatpush3.msra.mxu0 %v9561_v50  ;;  %v10779_v43 = vld [vmem:[#allocation15_spill] sm:$0xff]  ;;  %v10780_v50 = vld [vmem:[#allocation16_spill] sm:$0xff] }
 0xfa3   : > { %7717 = vmatprep.subr.mxu1 %v9570_v53  ;;  %7748 = vmatprep.subr.mxu0 %v9575_v54 }
 0xfa4   : > { %7718 = vmatpush3.msra.mxu1 %v9570_v53  ;;  %7749 = vmatpush3.msra.mxu0 %v9575_v54  ;;  %v10781_v53 = vld [vmem:[#allocation17_spill] sm:$0xff]  ;;  %v10782_v54 = vld [vmem:[#allocation18_spill] sm:$0xff] }
 0xfa5   : > { %7719 = vmatprep.subr.mxu1 %v10775_v4  ;;  %7750 = vmatprep.subr.mxu0 %v10776_v7 }
 0xfa6   : > { %7720 = vmatpush3.msra.mxu1 %v10775_v4  ;;  %7751 = vmatpush3.msra.mxu0 %v10776_v7  ;;  %v10805_v4 = vld [vmem:[#allocation53_spill] sm:$0xff] }
 0xfa7   : > { %7755 = vmatprep.subr.mxu1 %v9598_v63  ;;  %7774 = vmatprep.subr.mxu0 %v9604_v44  ;;  %v10806_v7 = vld [vmem:[#allocation57_spill] sm:$0xff] }
 0xfe4   : > { %v4485_v12 = vpop.permute.xlu1 %4484  ;;  %v4490_v13 = vpop.permute.xlu0 %4489 }
 0xfe5   : > { %v4487_v15 = vadd.f32 %v4485_v12, %v4481_v11 }
 0xfe7   : > { %v4492_v62 = vadd.f32 %v4490_v13, %v4487_v15 }
 0xfe8   : > { %v4495_v16 = vpop.permute.xlu0 %4494 }
 0xfe9   : > { %v4497_v18 = vadd.f32 %v4495_v16, %v4492_v62 }
 0xfeb   : > { %v4501_v19 = vadd.f32 %v4499_v17, %v4497_v18 }
 0xfec   : > { %v4504_v20 = vpop.permute.xlu0 %4503 }
 0xfed   : > { %v4506_v21 = vadd.f32 %v4504_v20, %v4501_v19  ;;  %v10807_v19 = vld [vmem:[#allocation52_spill] sm:$0xff] }
 0xff0   : > { %v4509_v25 = vpop.permute.xlu0 %4508 }
 0xff1   : > { %v4511_v26 = vadd.f32 %v4509_v25, %v4506_v21 }
 0xff3   : > { %v4512_v27 = vmax.f32 %v4511_v26, 0.0 }
 0xff5   : > { %4513 = vst.msk [vmem:[#allocation4 + $0x2] sm:$0x1] %vm1634_vm10, %v4512_v27 }
0x104a   : > { %v7681_v31 = vpop.f32.mrf.mxu1  ;;  %v7692_v35 = vpop.f32.mrf.mxu0 }
0x104b   : > { %v5034_v40 = vmax.f32 %v7681_v31, %v7692_v35  ;;  %v5507_v31 = vld [vmem:[%s10426_s1 + $0x220] sm:$0x7f]  ;;  %v5584_v35 = vld [vmem:[%s10426_s1 + $0x228] sm:$0x7f] }
0x104c   : > { %v4941_v36 = vpop.f32.mrf.mxu1  ;;  %v5024_v37 = vpop.f32.mrf.mxu0 }
0x104d   : > { %v5033_v38 = vmax.f32 %v4941_v36, %v5024_v37  ;;  %v10808_v36 = vld [vmem:[#allocation54_spill] sm:$0xff]  ;;  %v10809_v37 = vld [vmem:[#allocation56_spill] sm:$0xff] }
0x104f   : > { %7721 = vmatprep.mubr.msk.f32.mxu1 %vm726_vm4, %v5033_v38  ;;  %7752 = vmatprep.mubr.msk.f32.mxu0 %vm726_vm4, %v5033_v38  ;;  %v10810_v38 = vld [vmem:[#allocation39_spill] sm:$0xff] }
0x1050   : > { %7722 = vmatmul.mubr.msk.f32.vlgmr.msra.gmra.mxu1 %vm726_vm4, %v5034_v40  ;;  %7753 = vmatmul.mubr.msk.f32.vlgmr.msra.gmra.mxu0 %vm726_vm4, %v5034_v40  ;;  %v10811_v40 = vld [vmem:[#allocation40_spill] sm:$0xff] }
0x1051   : > { %7756 = vmatpush3.msra.mxu1 %v9598_v63  ;;  %7775 = vmatpush3.msra.mxu0 %v9604_v44  ;;  %v10783_v63 = vld [vmem:[#allocation19_spill] sm:$0xff]  ;;  %v10784_v44 = vld [vmem:[#allocation20_spill] sm:$0xff] }
0x1052   : > { %7757 = vmatprep.subr.mxu1 %v9618_v51  ;;  %7776 = vmatprep.subr.mxu0 %v9629_v59 }
0x1053   : > { %7758 = vmatpush3.msra.mxu1 %v9618_v51  ;;  %7777 = vmatpush3.msra.mxu0 %v9629_v59  ;;  %v10785_v51 = vld [vmem:[#allocation21_spill] sm:$0xff] }
0x1054   : > { %7759 = vmatprep.subr.mxu1 %v9635_v45  ;;  %7778 = vmatprep.subr.mxu0 %v9642_v55 }
0x1055   : > { %7760 = vmatpush3.msra.mxu1 %v9635_v45  ;;  %7779 = vmatpush3.msra.mxu0 %v9642_v55 }
0x1056   : > { %7761 = vmatprep.subr.mxu1 %v9649_v49  ;;  %7780 = vmatprep.subr.mxu0 %v9656_v46 }
0x1057   : > { %7762 = vmatpush3.msra.mxu1 %v9649_v49  ;;  %7781 = vmatpush3.msra.mxu0 %v9656_v46 }
0x1058   : > { %7763 = vmatprep.subr.mxu1 %v10777_v41  ;;  %7782 = vmatprep.subr.mxu0 %v10778_v42 }
0x1059   : > { %7764 = vmatpush3.msra.mxu1 %v10777_v41  ;;  %7783 = vmatpush3.msra.mxu0 %v10778_v42  ;;  %v10812_v41 = vld [vmem:[#allocation41_spill] sm:$0xff]  ;;  %v10813_v42 = vld [vmem:[#allocation42_spill] sm:$0xff] }
0x105a   : > { %7765 = vmatprep.subr.mxu1 %v10779_v43  ;;  %7784 = vmatprep.subr.mxu0 %v10780_v50 }
0x105b   : > { %7766 = vmatpush3.msra.mxu1 %v10779_v43  ;;  %7785 = vmatpush3.msra.mxu0 %v10780_v50  ;;  %v10814_v43 = vld [vmem:[#allocation43_spill] sm:$0xff]  ;;  %v10815_v50 = vld [vmem:[#allocation44_spill] sm:$0xff] }
0x105c   : > { %7767 = vmatprep.subr.mxu1 %v10781_v53  ;;  %7786 = vmatprep.subr.mxu0 %v10782_v54 }
0x105d   : > { %7768 = vmatpush3.msra.mxu1 %v10781_v53  ;;  %7787 = vmatpush3.msra.mxu0 %v10782_v54  ;;  %v10816_v53 = vld [vmem:[#allocation45_spill] sm:$0xff]  ;;  %v10817_v54 = vld [vmem:[#allocation46_spill] sm:$0xff] }
0x105e   : > { %7769 = vmatprep.subr.mxu1 %v10783_v63  ;;  %7788 = vmatprep.subr.mxu0 %v10784_v44 }
0x105f   : > { %7770 = vmatpush3.msra.mxu1 %v10783_v63  ;;  %7789 = vmatpush3.msra.mxu0 %v10784_v44  ;;  %v10818_v63 = vld [vmem:[#allocation47_spill] sm:$0xff]  ;;  %v10819_v44 = vld [vmem:[#allocation49_spill] sm:$0xff] }
0x1060   : > { %7793 = vmatprep.subr.mxu1 %v10785_v51  ;;  %7812 = vmatprep.subr.mxu0 %v10611_v48 }
0x1110   : > { %v7723_v59 = vpop.f32.mrf.mxu1  ;;  %v7754_v45 = vpop.f32.mrf.mxu0 }
0x1111   : > { %v5220_v55 = vmax.f32 %v7723_v59, %v7754_v45  ;;  %v10821_v59 = vld [vmem:[#allocation55_spill] sm:$0xff]  ;;  %v10822_v45 = vld [vmem:[#allocation58_spill] sm:$0xff] }
0x1112   : > { %v5121_v49 = vpop.f32.mrf.mxu1  ;;  %v5210_v46 = vpop.f32.mrf.mxu0 }
0x1113   : > { %5222 = vst.msk [vmem:[#allocation3 + $0x8] sm:$0xff] %vm899_vm5, %v5220_v55  ;;  %v5219_v1 = vmax.f32 %v5121_v49, %v5210_v46 }
0x1115   : > { %5221 = vst.msk [vmem:[#allocation3] sm:$0xff] %vm899_vm5, %v5219_v1 }
0x111a   : > { %v5234_v14 = vld [vmem:[#allocation3 + $0x9] sm:$0x3f] }
0x111b   : > { %v5224_v10 = vld [vmem:[#allocation3 + $0x8] sm:$0x3f] }
0x111c   : > { %v5233_v2 = vld [vmem:[#allocation3 + $0x1] sm:$0xff]  ;;  %v5406_v28 = vld [vmem:[#allocation3 + $0xa] sm:$0x3f] }
0x111d   : > { %v5223_v34 = vld [vmem:[#allocation3] sm:$0xff]  ;;  %7771 = vmatprep.mubr.msk.f32.mxu1 %vm899_vm5, %v5233_v2 }
0x111e   : > { %7790 = vmatprep.mubr.msk.f32.mxu0 %vm899_vm5, %v5223_v34  ;;  %7772 = vmatmul.mubr.msk.f32.vlgmr.msra.gmra.mxu1 %vm899_vm5, %v5234_v14  ;;  %v5405_v33 = vld [vmem:[#allocation3 + $0x2] sm:$0xff]  ;;  %v10823_v34 = vld [vmem:[#allocation59_spill] sm:$0xff]  ;;  %v10824_v14 = vld [vmem:[#allocation60_spill] sm:$0xff] }
0x111f   : > { %7791 = vmatmul.mubr.msk.f32.vlgmr.msra.gmra.mxu0 %vm899_vm5, %v5224_v10  ;;  %7794 = vmatpush3.msra.mxu1 %v10785_v51  ;;  %v10820_v51 = vld [vmem:[#allocation51_spill] sm:$0xff]  ;;  %v10825_v10 = vld [vmem:[#allocation61_spill] sm:$0xff] }
0x1120   : > { %7809 = vmatprep.mubr.msk.f32.mxu1 %vm899_vm5, %v5405_v33  ;;  %7795 = vmatprep.subr.mxu1 %v10786_v8  ;;  %v10826_v33 = vld [vmem:[#allocation62_spill] sm:$0xff] }
0x1121   : > { %7816 = vmatprep.mubr.msk.f32.mxu0 %vm8052_vm6, %v10611_v48  ;;  %7796 = vmatpush3.msra.mxu1 %v10786_v8  ;;  %v10827_v8 = vld [vmem:[#allocation63_spill] sm:$0xff] }
0x1122   : > { %7797 = vmatprep.subr.mxu1 %v10787_v58 }
0x1123   : > { %7798 = vmatpush3.msra.mxu1 %v10787_v58  ;;  %v10828_v58 = vld [vmem:[#allocation64_spill] sm:$0xff] }
0x1124   : > { %7799 = vmatprep.subr.mxu1 %v10788_v5 }
0x1125   : > { %7800 = vmatpush3.msra.mxu1 %v10788_v5  ;;  %v10829_v5 = vld [vmem:[#allocation65_spill] sm:$0xff] }
0x1126   : > { %7801 = vmatprep.subr.mxu1 %v10789_v61 }
0x1127   : > { %7802 = vmatpush3.msra.mxu1 %v10789_v61  ;;  %v10830_v61 = vld [vmem:[#allocation66_spill] sm:$0xff] }
0x1128   : > { %7803 = vmatprep.subr.mxu1 %v10790_v23 }
0x1129   : > { %7804 = vmatpush3.msra.mxu1 %v10790_v23  ;;  %v10831_v23 = vld [vmem:[#allocation67_spill] sm:$0xff] }
0x112a   : > { %7805 = vmatprep.subr.mxu1 %v10791_v56 }
0x112b   : > { %7806 = vmatpush3.msra.mxu1 %v10791_v56  ;;  %v10832_v56 = vld [vmem:[#allocation68_spill] sm:$0xff] }
0x112c   : > { %7807 = vmatprep.subr.mxu1 %v10792_v0 }
0x112d   : > { %7808 = vmatpush3.msra.mxu1 %v10792_v0  ;;  %v10833_v0 = vld [vmem:[#allocation69_spill] sm:$0xff] }
0x112e   : > { %7810 = vmatmul.mubr.msk.f32.vlgmr.msra.gmra.mxu1 %vm899_vm5, %v5406_v28  ;;  %7857 = vmatprep.subr.mxu1 %v10611_v48  ;;  %v10834_v28 = vld [vmem:[#allocation70_spill] sm:$0xff] }
0x112f   : > { %7858 = vmatpush3.msra.mxu1 %v10793_v29  ;;  %7885 = vmatprep.mubr.msk.f32.mxu1 %vm8052_vm6, %v10611_v48  ;;  %v10835_v29 = vld [vmem:[#allocation71_spill] sm:$0xff] }
0x1130   : > { %7859 = vmatprep.subr.mxu1 %v10611_v48 }
0x1131   : > { %7860 = vmatpush3.msra.mxu1 %v10794_v57 }
0x1132   : > { %7861 = vmatprep.subr.mxu1 %v10611_v48 }
0x1133   : > { %7862 = vmatpush3.msra.mxu1 %v10795_v39 }
0x1134   : > { %7863 = vmatprep.subr.mxu1 %v10611_v48 }
0x1135   : > { %7864 = vmatpush3.msra.mxu1 %v10796_v52 }
0x1136   : > { %7865 = vmatprep.subr.mxu1 %v10611_v48 }
0x1137   : > { %7866 = vmatpush3.msra.mxu1 %v10797_v24 }
0x1138   : > { %7867 = vmatprep.subr.mxu1 %v10611_v48 }
0x1139   : > { %7868 = vmatpush3.msra.mxu1 %v10798_v32 }
0x113a   : > { %7869 = vmatprep.subr.mxu1 %v10611_v48 }
0x113b   : > { %7870 = vmatpush3.msra.mxu1 %v10799_v22 }
0x113c   : > { %7871 = vmatprep.subr.mxu1 %v10611_v48 }
0x113d   : > { %7872 = vmatpush3.msra.mxu1 %v10800_v3 }
0x113e   : > { %7873 = vmatprep.subr.mxu1 %v10611_v48 }
0x113f   : > { %7874 = vmatpush3.msra.mxu1 %v10801_v60 }
0x1140   : > { %7875 = vmatprep.subr.mxu1 %v10611_v48 }
0x1141   : > { %7876 = vmatpush3.msra.mxu1 %v10802_v30 }
0x1142   : > { %7877 = vmatprep.subr.mxu1 %v10611_v48 }
0x1143   : > { %7878 = vmatpush3.msra.mxu1 %v10803_v6 }
0x1144   : > { %7879 = vmatprep.subr.mxu1 %v10611_v48 }
0x1145   : > { %7880 = vmatpush3.msra.mxu1 %v10804_v47  ;;  %v5957_v47 = vld [vmem:[%s10426_s1 + $0x340] sm:$0xff] }
0x1146   : > { %7881 = vmatprep.subr.mxu1 %v10611_v48 }
0x1147   : > { %7882 = vmatpush3.msra.mxu1 %v10805_v4  ;;  %v5956_v4 = vld [vmem:[%s10426_s1 + $0x338] sm:$0xff] }
0x1148   : > { %7883 = vmatprep.subr.mxu1 %v10611_v48 }
0x1149   : > { %7884 = vmatpush3.msra.mxu1 %v10806_v7  ;;  %v5955_v7 = vld [vmem:[%s10426_s1 + $0x330] sm:$0xff] }
0x114a   : > { %7888 = vmatprep.subr.mxu1 %v10611_v48 }
0x11de   : > { %v7773_v9 = vpop.f32.mrf.mxu1 }
0x11df   : > { %v7792_v11 = vpop.f32.mrf.mxu0 }
0x11e0   : > { %v5315_v12 = vpop.f32.mrf.mxu1  ;;  %v5402_v15 = vadd.f32 %v7792_v11, %v7773_v9  ;;  %v5954_v11 = vld [vmem:[%s10426_s1 + $0x328] sm:$0xff] }
0x11e1   : > { %v5396_v13 = vpop.f32.mrf.mxu0 }
0x11e2   : > { %v5397_v16 = vadd.f32 %v5396_v13, %v5315_v12  ;;  %v5919_v13 = vld [vmem:[%s10426_s1 + $0x320] sm:$0x1] }
0x11ee   : > { %v7811_v62 = vpop.f32.mrf.mxu1 }
0x11ef   : > { %v5497_v17 = vadd.f32 %v7811_v62, %v5402_v15 }
0x11f0   : > { %v5487_v18 = vpop.f32.mrf.mxu1 }
0x11f1   : > { %v5504_v20 = vadd.f32 %v10807_v19, %v5497_v17  ;;  %v5496_v21 = vadd.f32 %v5487_v18, %v5397_v16 }
0x11f3   : > { %v5506_v25 = vmax.f32 %v5504_v20, 0.0  ;;  %v5503_v26 = vadd.f32 %v10807_v19, %v5496_v21 }
0x11f5   : > { %v5505_v27 = vmax.f32 %v5503_v26, 0.0  ;;  %7813 = vmatpush3.msk.msra.mxu0 %vm1191_vm7, %v5506_v25 }
0x11f6   : > { %7814 = vmatprep.subr.mxu0 %v10611_v48 }
0x11f7   : > { %7815 = vmatpush3.msra.mxu0 %v5505_v27 }
0x11f8   : > { %7817 = vmatmul.mubr.msk.f32.vlgmr.msra.gmra.mxu0 %vm1187_vm8, %v5507_v31  ;;  %7819 = vmatprep.subr.mxu0 %v10611_v48 }
0x11f9   : > { %7820 = vmatpush3.msk.msra.mxu0 %vm1191_vm7, %v5506_v25  ;;  %7823 = vmatprep.mubr.msk.f32.mxu0 %vm8052_vm6, %v10611_v48 }
0x11fa   : > { %7821 = vmatprep.subr.mxu0 %v10611_v48 }
0x11fb   : > { %7822 = vmatpush3.msra.mxu0 %v5505_v27 }
0x11fc   : > { %7824 = vmatmul.mubr.msk.f32.vlgmr.msra.gmra.mxu0 %vm1187_vm8, %v5584_v35  ;;  %7826 = vmatprep.subr.mxu0 %v10611_v48 }
0x11fd   : > { %7827 = vmatpush3.msra.mxu0 %v10808_v36  ;;  %7854 = vmatprep.mubr.msk.f32.mxu0 %vm8052_vm6, %v10611_v48 }
0x11fe   : > { %7828 = vmatprep.subr.mxu0 %v10611_v48 }
0x11ff   : > { %7829 = vmatpush3.msra.mxu0 %v10809_v37  ;;  %v6304_v37 = vld [vmem:[%s10426_s1 + $0x348] ss:$0 sm:$0xff] }
0x1200   : > { %7830 = vmatprep.subr.mxu0 %v10611_v48 }
0x1201   : > { %7831 = vmatpush3.msra.mxu0 %v10810_v38 }
0x1202   : > { %7832 = vmatprep.subr.mxu0 %v10611_v48 }
0x1203   : > { %7833 = vmatpush3.msra.mxu0 %v10811_v40 }
0x1204   : > { %7834 = vmatprep.subr.mxu0 %v10611_v48 }
0x1205   : > { %7835 = vmatpush3.msra.mxu0 %v10812_v41 }
0x1206   : > { %7836 = vmatprep.subr.mxu0 %v10611_v48 }
0x1207   : > { %7837 = vmatpush3.msra.mxu0 %v10813_v42 }
0x1208   : > { %7838 = vmatprep.subr.mxu0 %v10611_v48 }
0x1209   : > { %7839 = vmatpush3.msra.mxu0 %v10814_v43 }
0x120a   : > { %7840 = vmatprep.subr.mxu0 %v10611_v48 }
0x120b   : > { %7841 = vmatpush3.msra.mxu0 %v10815_v50 }
0x120c   : > { %7842 = vmatprep.subr.mxu0 %v10611_v48 }
0x120d   : > { %7843 = vmatpush3.msra.mxu0 %v10816_v53 }
0x120e   : > { %7844 = vmatprep.subr.mxu0 %v10611_v48 }
0x120f   : > { %7845 = vmatpush3.msra.mxu0 %v10817_v54 }
0x1210   : > { %7846 = vmatprep.subr.mxu0 %v10611_v48 }
0x1211   : > { %7847 = vmatpush3.msra.mxu0 %v10818_v63 }
0x1212   : > { %7848 = vmatprep.subr.mxu0 %v10611_v48 }
0x1213   : > { %7849 = vmatpush3.msra.mxu0 %v10819_v44 }
0x1214   : > { %7850 = vmatprep.subr.mxu0 %v10611_v48 }
0x1215   : > { %7851 = vmatpush3.msra.mxu0 %v10820_v51 }
0x1216   : > { %7852 = vmatprep.subr.mxu0 %v10611_v48 }
0x1217   : > { %7853 = vmatpush3.msra.mxu0 %v10821_v59 }
0x1218   : > { %5866 = vmatprep.subr.mxu0 %v10822_v45 }
0x12b8   : > { %v5580_v55 = vpop.f32.mrf.mxu0 }
0x12ba   : > { %v7818_v49 = vpop.f32.mrf.mxu0 }
0x12bc   : > { %v5654_v46 = vpop.f32.mrf.mxu0 }
0x12bd   : > { %v5658_v1 = vmax.f32 %v5580_v55, %v5654_v46 }
0x12be   : > { %v7825_v2 = vpop.f32.mrf.mxu0 }
0x12bf   : > { %7855 = vmatmul.mubr.msk.f32.vlgmr.msra.gmra.mxu0 %vm726_vm4, %v5658_v1  ;;  %7886 = vmatmul.mubr.msk.f32.vlgmr.msra.gmra.mxu1 %vm726_vm4, %v5658_v1 }
0x12c0   : > { %5867 = vmatpush1.msra.mxu0 %v10823_v34  ;;  %5912 = vmatprep.mubr.f32.mxu0 %v10611_v48 }
0x12c1   : > { %5868 = vmatprep.subr.mxu0 %v10824_v14  ;;  %7896 = vmatprep.mubr.msk.f32.mxu1 %vm8052_vm6, %v10611_v48 }
0x12c2   : > { %5869 = vmatpush1.msra.mxu0 %v10825_v10  ;;  %7889 = vmatpush3.msra.mxu1 %v5957_v47 }
0x12c3   : > { %5870 = vmatprep.subr.mxu0 %v10826_v33  ;;  %7890 = vmatprep.subr.mxu1 %v10611_v48 }
0x12c4   : > { %5871 = vmatpush1.msra.mxu0 %v10827_v8  ;;  %7891 = vmatpush3.msra.mxu1 %v5956_v4 }
0x12c5   : > { %5872 = vmatprep.subr.mxu0 %v10828_v58  ;;  %7892 = vmatprep.subr.mxu1 %v10611_v48 }
0x12c6   : > { %5873 = vmatpush1.msra.mxu0 %v10829_v5  ;;  %7893 = vmatpush3.msra.mxu1 %v5955_v7 }
0x12c7   : > { %5874 = vmatprep.subr.mxu0 %v10830_v61  ;;  %7894 = vmatprep.subr.mxu1 %v10611_v48 }
0x12c8   : > { %5875 = vmatpush1.msra.mxu0 %v10831_v23  ;;  %7895 = vmatpush3.msra.mxu1 %v5954_v11 }
0x12c9   : > { %5876 = vmatprep.subr.mxu0 %v10832_v56 }
0x12ca   : > { %5877 = vmatpush1.msra.mxu0 %v10833_v0 }
0x12cb   : > { %5878 = vmatprep.subr.mxu0 %v10834_v28 }
0x12cc   : > { %5879 = vmatpush1.msra.mxu0 %v10835_v29 }
0x137f   : > { %v5742_v57 = vpop.f32.mrf.mxu0  ;;  %v5826_v39 = vpop.f32.mrf.mxu1 }
0x1380   : > { %v5830_v52 = vmax.f32 %v5742_v57, %v5826_v39 }
0x1381   : > { %v7856_v24 = vpop.f32.mrf.mxu0  ;;  %v7887_v32 = vpop.f32.mrf.mxu1 }
0x1382   : > { %6303 = vmatmul.mubr.msk.f32.vlgmr.msra.gmra.mxu0 %vm1526_vm9, %v5830_v52 }
0x1442   : > { %v5914_v22 = vpop.f32.mrf.mxu0 }
0x1443   : > { %v5922_v3 = vrot.slane %v5914_v22, 1  ;;  %v5927_v60 = vrot.slane %v5914_v22, 2  ;;  %v5932_v30 = vrot.slane %v5914_v22, 3  ;;  %v5920_v62 = vadd.f32 %v5919_v13, %v5914_v22 }
0x1444   : > { %v5916_v6 = vpop.f32.mrf.mxu0 }
0x1445   : > { %5923 = vrot.lane.b32.xlu1 %v5922_v3, %s8053_s17  ;;  %v5941_v9 = vrot.slane %v5916_v6, 5  ;;  %v5946_v12 = vrot.slane %v5916_v6, 6  ;;  %v5938_v20 = vrot.slane %v5916_v6, 4 }
0x1449   : > { %5928 = vrot.lane.b32.xlu1 %v5927_v60, %s8054_s19 }
0x144d   : > { %5933 = vrot.lane.b32.xlu1 %v5932_v30, %s8055_s20 }
0x1451   : > { %5942 = vrot.lane.b32.xlu1 %v5941_v9, %s8053_s17  ;;  %s176_s17 = sand.u32 1, %s8038_s13  }
0x1452   : > { %s6039_s8 = scalar_lea.sflag [#allocation7], %s176_s17 }
0x1455   : > { %5947 = vrot.lane.b32.xlu1 %v5946_v12, %s8054_s19  ;;  %s6129_s19 = sshll.u32 %s176_s17, 2 }
0x1456   : > { %s178_s30 = scalar_lea.vmem [#allocation8], %s6129_s19 }
0x1457   : > { %s6052_s4 = sshll.u32 %s178_s30, 4  ;;  %s6053_s4 = int_to_ptr.vmem [resolvable:$true] %s6052_s4 }
0x1458   : > { %s7982_s10 = scalar_lea.vmem %s6053_s4, 64  ;;  %p7989_p11 = scmp.lt.s32.totalorder %s6053_s4, %s7987_s16 }
0x1459   : > { %p7983_p6 = scmp.ne.s32.totalorder %s6053_s4, %s7982_s10  ;;  %p7990_p12 = scmp.lt.s32.totalorder %s7988_s9, %s7982_s10 }
0x145b   : > { %p7984_p9 = pnand %p7983_p6, %p8115_p5  ;;  %p7991_p13 = por %p7990_p12, %p7989_p11 }
0x145d   : > { %p7985_p10 = pneg %p7984_p9 }
0x145f   : > { %p7992_p0 = pnand %p7991_p13, %p7985_p10 }
0x14b7   : > { %v5924_v15 = vpop.permute.xlu1 %5923 }
0x14b8   : > { %v5926_v17 = vadd.f32 %v5924_v15, %v5920_v62 }
0x14bb   : > { %v5929_v16 = vpop.permute.xlu1 %5928 }
0x14bc   : > { %v5931_v18 = vadd.f32 %v5929_v16, %v5926_v17 }
0x14bf   : > { %v5934_v19 = vpop.permute.xlu1 %5933 }
0x14c0   : > { %v5936_v21 = vadd.f32 %v5934_v19, %v5931_v18 }
0x14c2   : > { %v5940_v25 = vadd.f32 %v5938_v20, %v5936_v21 }
0x14c3   : > { %v5943_v48 = vpop.permute.xlu1 %5942 }
0x14c4   : > { %v5945_v26 = vadd.f32 %v5943_v48, %v5940_v25 }
0x14c7   : > { %v5948_v27 = vpop.permute.xlu1 %5947 }
0x14c8   : > { %v5950_v31 = vadd.f32 %v5948_v27, %v5945_v26 }
0x14ca   : > { %v5951_v35 = vmax.f32 %v5950_v31, 0.0 }
0x14cc   : > { %5952 = vst.msk [vmem:[#allocation4 + $0x3] sm:$0x1] %vm1634_vm10, %v5951_v35 }
0x14d3   : > { %v5953_v36 = vld [vmem:[#allocation4] sm:$0xf] }
0x14d4   : > { %7897 = vmatmul.mubr.msk.f32.vlgmr.msra.gmra.mxu1 %vm5963_vm11, %v5953_v36 }
0x1594   : > { %v6033_v38 = vpop.f32.mrf.mxu1 }
0x1595   : > { %v6034_v40 = vadd.f32 %v6304_v37, %v6033_v38 }
0x1596   : > { %v7898_v41 = vpop.f32.mrf.mxu1 }
0x1597   : > { %6037 = vst [vmem:[%s178_s30] sm:$0xf] %v6034_v40 }
0x1598   : > { %7995 = shalt.err (!%p7992_p0)
}
0x1599   : > { %s7996_s24 = scalar_lea.hbm %s10390_s7, 64  ;;  %s8000_s26 = scalar_lea.hbm %s10428_s3, 128 }
0x159a   : > { %p7997_p1 = scmp.ne.s32.totalorder %s10390_s7, %s7996_s24  ;;  %p8001_p4 = scmp.lt.s32.totalorder %s10390_s7, %s10428_s3 }
0x159b   : > { %p8002_p7 = scmp.lt.s32.totalorder %s8000_s26, %s7996_s24 }
0x159c   : > { %p7998_p2 = pnand %p7997_p1, %p8115_p5 }
0x159d   : > { %p8003_p8 = por %p8002_p7, %p8001_p4 }
0x159e   : > { %p7999_p3 = pneg %p7998_p2 }
0x15a0   : > { %p8004_p6 = pnand %p8003_p8, %p7999_p3 }
0x15a2   : > { %8007 = shalt.err (!%p8004_p6)
}
0x15a3   : > { %7903 = dma.vmem_to_hbm [thread:$0]  (%p8115_p5), %s6053_s4, 64, %s10390_s7, %s6039_s8  }
0x15a4 PF: > { %p7915_p9 = scmp.ge.s32.totalorder %s8046_s15, 2  ;;  %s6064_s27 = sand.u32 1, %s8034_s12  }
0x15a5   : > { %p10836_p10 = scmp.ne.s32.totalorder %s10591_s23, 0  ;;  %s6065_s28 = scalar_lea.sflag [#allocation7], %s6064_s27 }
0x15a7   : > { %p7910_p11 = pnand %p7915_p9, %p10836_p10 }
0x15a9   : > { %p7911_p12 = pneg %p7910_p11 }
0x15ab   : > { %8029 = dma.done.wait (%p7911_p12), %s6065_s28, 64  }
0x15ac   : > { %8031 = vsyncadd (%p7911_p12), %s6065_s28, 4294967232  ;;  %p14_p13 = scmp.ge.s32.totalorder %s8102_s18, 4   ;;  %s10837_s12 = smov %s8038_s13 }
0x15ad   : > { %s10838_s13 = smov %s8042_s14  ;;  %s10839_s14 = smov %s8113_s21 }
0x15ae   : > { %s10840_s15 = smov %s8102_s18  ;;  %16 = sbr.rel (!%p14_p13) target bundleno = 4 (0x4), region = 75 }
0x15b3   :  { %6070 = vsyncpa [#allocation6], 1 }
0x15b4   :  { %6072 = vsyncpa [#allocation6 + $0x1], 1 }
0x15b5   :  { %6073 = vsyncpa [#allocation7], 1 }
0x15b6   :  { %6075 = vsyncpa [#allocation7 + $0x1], 1 }

</bundles_post_ra>
